<compile_context>
chip_gen: v5e
topology: v5e:2x2
jax: 0.10.0
libtpu: 0.0.40
codegen_flags: <defaults>
</compile_context>

<pallas_src>
import jax
import jax.numpy as jnp
from jax.experimental import pallas as pl
from jax.experimental.pallas import tpu as pltpu

EPS = 1e-5
MM_DTYPE = jnp.bfloat16          # MXU-native operand dtype on v5e / v6e / v7x


# ----------------------------- in-kernel helpers -----------------------------

def _bn_fold(v, g, b):
    """One-pass training-mode BatchNorm on (rows, C): per-channel batch stats,
    biased variance, folded into a single scale/shift."""
    r = v.shape[0]
    s = jnp.sum(v, axis=0, keepdims=True)
    ss = jnp.sum(v * v, axis=0, keepdims=True)
    mean = s * (1.0 / r)
    var = jnp.maximum(ss * (1.0 / r) - mean * mean, 0.0)
    scale = g * jax.lax.rsqrt(var + EPS)        # rsqrt -> EUP slot
    shift = b - mean * scale
    return v * scale + shift


def _maxpool2_rows(v, n, h, w):
    """2x2 / stride-2 max pool.  v: (n*h*w, C) rows in (n, h, w) row-major order.
    Uses only last-dim-preserving reshapes + unit-stride slices + maxima."""
    c = v.shape[-1]
    # pool along H: pack (even row | odd row) pairs side by side on the sublane axis
    vh = v.reshape(n * (h // 2), 2 * w, c)
    ph = jnp.maximum(vh[:, :w, :], vh[:, w:, :])          # (n*h/2, w, c)
    # pool along W
    vw = ph.reshape(n * (h // 2) * (w // 2), 2, c)
    pw = jnp.maximum(vw[:, 0:1, :], vw[:, 1:2, :])        # (n*h/2*w/2, 1, c)
    return pw.reshape(n * (h // 2) * (w // 2), c)


# --------------------------------- kernel ------------------------------------

def cnn_kernel(xc_ref, w1_ref, b1_ref, g1_ref, be1_ref,
               w2_ref, b2_ref, g2_ref, be2_ref,
               wfc_ref, bfc_ref, out_ref, pad_ref):
    n = out_ref.shape[0]
    c1 = w1_ref.shape[1]                   # 256
    c2 = w2_ref.shape[1]                   # 128
    h2 = pad_ref.shape[1] - 2              # pooled spatial size after block 1 (= 4)
    h = 2 * h2                             # block-1 spatial size (= 8)
    q = h2 // 2                            # spatial size after block-2 pool (= 2)
    assert xc_ref.shape[0] == n * h * h

    # ---- block 1: Conv(1->256, 3x3, pad 1) as im2col matmul + ReLU + BN + pool ----
    conv1 = jnp.dot(xc_ref[...], w1_ref[...],
                    preferred_element_type=jnp.float32)            # (n*64, c1) f32
    a1 = jnp.maximum(conv1 + b1_ref[...], 0.0)
    a1 = _bn_fold(a1, g1_ref[...], be1_ref[...])
    p1 = _maxpool2_rows(a1, n, h, h)                               # (n*16, c1)

    # ---- zero-padded activation for block-2 conv via VMEM scratch (no concats) ----
    pad_ref[...] = jnp.zeros_like(pad_ref)
    pad_ref[:, 1:1 + h2, 1:1 + h2, :] = (
        p1.reshape(n, h2, h2, c1).astype(pad_ref.dtype))

    # ---- block 2: Conv(256->128, 3x3, pad 1) as one long-K matmul + ReLU + BN + pool ----
    taps = [pad_ref[:, kh:kh + h2, kw:kw + h2, :].reshape(n * h2 * h2, c1)
            for kh in range(3) for kw in range(3)]
    cols2 = jnp.concatenate(taps, axis=-1)                         # (n*16, 9*c1) bf16
    conv2 = jnp.dot(cols2, w2_ref[...],
                    preferred_element_type=jnp.float32)            # (n*16, c2) f32
    a2 = jnp.maximum(conv2 + b2_ref[...], 0.0)
    a2 = _bn_fold(a2, g2_ref[...], be2_ref[...])
    p2 = _maxpool2_rows(a2, n, h2, h2)                             # (n*4, c2)

    # ---- Flatten (NHWC order; FC weight pre-permuted) + Linear (lane-dense output) ----
    flat = p2.reshape(n, q * q * c2)                               # (n, 512), row-major
    out_ref[...] = (jnp.dot(flat.astype(wfc_ref.dtype), wfc_ref[...],
                            preferred_element_type=jnp.float32)
                    + bfc_ref[...])


# -------------------------------- wrapper -------------------------------------

@jax.jit
def cnn_forward(x_nchw, params):
    """x_nchw: (N, 1, 8, 8) float32; params in PyTorch layouts."""
    w1, b1, g1, be1, w2, b2, g2, be2, wfc, bfc = params
    n, cin, h, w = x_nchw.shape
    assert cin == 1 and h == 8 and w == 8, "Linear(128*2*2) implies 8x8 single-channel input"
    c1, c2 = w1.shape[0], w2.shape[0]
    out_dim = wfc.shape[0]
    out_pad = -(-out_dim // 128) * 128                             # lane-dense output width

    # ---- block-1 im2col built in the wrapper (C_in == 1 is lane-sparse in-kernel) ----
    xp = jnp.pad(x_nchw[:, 0].astype(jnp.float32), ((0, 0), (1, 1), (1, 1)))   # (N,10,10)
    cols = jnp.stack([xp[:, kh:kh + h, kw:kw + w]
                      for kh in range(3) for kw in range(3)], axis=-1)          # (N,8,8,9)
    x_cols = cols.reshape(n * h * w, 9)
    x_cols = jnp.pad(x_cols, ((0, 0), (0, 128 - 9))).astype(MM_DTYPE)           # (N*64,128)

    # conv-1 weight: OIHW -> (tap, Cout), K padded 9 -> 128 (matches x_cols padding)
    w1k = jnp.transpose(w1, (2, 3, 1, 0)).reshape(9, c1)
    w1k = jnp.pad(w1k, ((0, 128 - 9), (0, 0))).astype(MM_DTYPE)                 # (128, c1)

    # conv-2 weight: OIHW -> ((tap, Cin), Cout), tap-major to match lane-axis concat order
    w2k = jnp.transpose(w2, (2, 3, 1, 0)).reshape(9 * c1, c2).astype(MM_DTYPE)  # (2304, c2)

    # FC weight: (out, C*2*2) NCHW-flatten order -> (2*2*C, out) NHWC-flatten order,
    # zero-padded to 128 output lanes.
    wfck = jnp.transpose(wfc.reshape(out_dim, c2, 2, 2), (2, 3, 1, 0)).reshape(4 * c2, out_dim)
    wfck = jnp.pad(wfck, ((0, 0), (0, out_pad - out_dim))).astype(MM_DTYPE)     # (512, 128)
    bfck = jnp.pad(bfc, (0, out_pad - out_dim)).reshape(1, out_pad).astype(jnp.float32)

    args = (x_cols, w1k,
            b1.reshape(1, c1).astype(jnp.float32),
            g1.reshape(1, c1).astype(jnp.float32),
            be1.reshape(1, c1).astype(jnp.float32),
            w2k,
            b2.reshape(1, c2).astype(jnp.float32),
            g2.reshape(1, c2).astype(jnp.float32),
            be2.reshape(1, c2).astype(jnp.float32),
            wfck, bfck)

    out = pl.pallas_call(
        cnn_kernel,
        out_shape=jax.ShapeDtypeStruct((n, out_pad), jnp.float32),
        in_specs=[pl.BlockSpec(memory_space=pltpu.MemorySpace.VMEM)] * len(args),
        out_specs=pl.BlockSpec(memory_space=pltpu.MemorySpace.VMEM),
        scratch_shapes=[pltpu.VMEM((n, h // 2 + 2, w // 2 + 2, c1), jnp.bfloat16)],
    )(*args)
    return out[:, :out_dim]


# ----------------------- pure-JAX (PyTorch-semantics) reference ----------------

def torch_style_reference(x, params):
    w1, b1, g1, be1, w2, b2, g2, be2, wfc, bfc = params

    def conv(v, wt, b):
        y = jax.lax.conv_general_dilated(
            v, wt, window_strides=(1, 1), padding=((1, 1), (1, 1)),
            dimension_numbers=("NCHW", "OIHW", "NCHW"),
            precision=jax.lax.Precision.HIGHEST)
        return y + b[None, :, None, None]

    def bn(v, g, b):
        m = jnp.mean(v, axis=(0, 2, 3), keepdims=True)
        var = jnp.mean((v - m) ** 2, axis=(0, 2, 3), keepdims=True)
        return g[None, :, None, None] * (v - m) * jax.lax.rsqrt(var + EPS) + b[None, :, None, None]

    def pool(v):
        return jax.lax.reduce_window(v, -jnp.inf, jax.lax.max,
                                     (1, 1, 2, 2), (1, 1, 2, 2), "VALID")

    hh = pool(bn(jax.nn.relu(conv(x, w1, b1)), g1, be1))
    hh = pool(bn(jax.nn.relu(conv(hh, w2, b2)), g2, be2))
    hh = hh.reshape(hh.shape[0], -1)
    return jnp.dot(hh, wfc.T, precision=jax.lax.Precision.HIGHEST) + bfc


# ---------------------------------- main ---------------------------------------

if __name__ == "__main__":
    key = jax.random.PRNGKey(0)
    ks = jax.random.split(key, 11)
    N, OUT = 2, 10
    C1, C2 = 256, 128

    x = jax.random.normal(ks[0], (N, 1, 8, 8), jnp.float32)
    w1 = 0.10 * jax.random.normal(ks[1], (C1, 1, 3, 3), jnp.float32)
    b1 = 0.10 * jax.random.normal(ks[2], (C1,), jnp.float32)
    g1 = 1.0 + 0.10 * jax.random.normal(ks[3], (C1,), jnp.float32)
    be1 = 0.10 * jax.random.normal(ks[4], (C1,), jnp.float32)
    w2 = 0.02 * jax.random.normal(ks[5], (C2, C1, 3, 3), jnp.float32)
    b2 = 0.10 * jax.random.normal(ks[6], (C2,), jnp.float32)
    g2 = 1.0 + 0.10 * jax.random.normal(ks[7], (C2,), jnp.float32)
    be2 = 0.10 * jax.random.normal(ks[8], (C2,), jnp.float32)
    wfc = 0.05 * jax.random.normal(ks[9], (OUT, C2 * 2 * 2), jnp.float32)
    bfc = 0.05 * jax.random.normal(ks[10], (OUT,), jnp.float32)
    params = (w1, b1, g1, be1, w2, b2, g2, be2, wfc, bfc)

    out = jax.block_until_ready(cnn_forward(x, params))
    ref = torch_style_reference(x, params)

    assert out.shape == (N, OUT)
    assert bool(jnp.all(jnp.isfinite(out)))
    # bf16 MXU operands -> slightly looser tolerance than pure f32.
    assert bool(jnp.allclose(out, ref, rtol=2e-2, atol=2e-2)), (out, ref)
    print("KERNEL_OK")
</pallas_src>

<mosaic_0001>
module attributes {stable_mosaic.version = 11 : i64} {
  func.func @cnn_kernel(%arg0: memref<128x128xbf16, #tpu.memory_space<vmem>>, %arg1: memref<128x256xbf16, #tpu.memory_space<vmem>>, %arg2: memref<1x256xf32, #tpu.memory_space<vmem>>, %arg3: memref<1x256xf32, #tpu.memory_space<vmem>>, %arg4: memref<1x256xf32, #tpu.memory_space<vmem>>, %arg5: memref<2304x128xbf16, #tpu.memory_space<vmem>>, %arg6: memref<1x128xf32, #tpu.memory_space<vmem>>, %arg7: memref<1x128xf32, #tpu.memory_space<vmem>>, %arg8: memref<1x128xf32, #tpu.memory_space<vmem>>, %arg9: memref<512x128xbf16, #tpu.memory_space<vmem>>, %arg10: memref<1x128xf32, #tpu.memory_space<vmem>>, %arg11: memref<2x128xf32, #tpu.memory_space<vmem>>, %arg12: memref<2x6x6x256xbf16, #tpu.memory_space<vmem>>) attributes {dimension_semantics = [], scalar_prefetch = 0 : i64, scratch_operands = 1 : i64, tpu.core_type = #tpu.core_type<tc>} {
    %c0 = arith.constant 0 : index
    %c0_0 = arith.constant 0 : index
    %0 = vector.load %arg0[%c0, %c0_0] : memref<128x128xbf16, #tpu.memory_space<vmem>>, vector<128x128xbf16>
    %c0_1 = arith.constant 0 : index
    %c0_2 = arith.constant 0 : index
    %1 = vector.load %arg1[%c0_1, %c0_2] : memref<128x256xbf16, #tpu.memory_space<vmem>>, vector<128x256xbf16>
    %cst = arith.constant dense<0.000000e+00> : vector<128x256xf32>
    %2 = tpu.matmul %0, %1, %cst {dimension_numbers = #tpu.dot_dimension_numbers<[1], [0], [0], [1], [0, 0, 1, 1], [], []>} : vector<128x128xbf16>, vector<128x256xbf16>, vector<128x256xf32> -> vector<128x256xf32>
    %c0_3 = arith.constant 0 : index
    %c0_4 = arith.constant 0 : index
    %3 = vector.load %arg2[%c0_3, %c0_4] : memref<1x256xf32, #tpu.memory_space<vmem>>, vector<1x256xf32>
    %4 = vector.broadcast %3 : vector<1x256xf32> to vector<128x256xf32>
    %5 = arith.addf %2, %4 : vector<128x256xf32>
    %cst_5 = arith.constant 0.000000e+00 : f32
    %6 = vector.broadcast %cst_5 : f32 to vector<128x256xf32>
    %7 = arith.maximumf %5, %6 : vector<128x256xf32>
    %c0_6 = arith.constant 0 : index
    %c0_7 = arith.constant 0 : index
    %8 = vector.load %arg3[%c0_6, %c0_7] : memref<1x256xf32, #tpu.memory_space<vmem>>, vector<1x256xf32>
    %c0_8 = arith.constant 0 : index
    %c0_9 = arith.constant 0 : index
    %9 = vector.load %arg4[%c0_8, %c0_9] : memref<1x256xf32, #tpu.memory_space<vmem>>, vector<1x256xf32>
    %cst_10 = arith.constant dense<0.000000e+00> : vector<256xf32>
    %10 = vector.multi_reduction <add>, %7, %cst_10 [0] : vector<128x256xf32> to vector<256xf32>
    %11 = vector.shape_cast %10 : vector<256xf32> to vector<1x256xf32>
    %12 = arith.mulf %7, %7 : vector<128x256xf32>
    %cst_11 = arith.constant dense<0.000000e+00> : vector<256xf32>
    %13 = vector.multi_reduction <add>, %12, %cst_11 [0] : vector<128x256xf32> to vector<256xf32>
    %14 = vector.shape_cast %13 : vector<256xf32> to vector<1x256xf32>
    %cst_12 = arith.constant 7.812500e-03 : f32
    %15 = vector.broadcast %cst_12 : f32 to vector<1x256xf32>
    %16 = arith.mulf %11, %15 : vector<1x256xf32>
    %cst_13 = arith.constant 7.812500e-03 : f32
    %17 = vector.broadcast %cst_13 : f32 to vector<1x256xf32>
    %18 = arith.mulf %14, %17 : vector<1x256xf32>
    %19 = arith.mulf %16, %16 : vector<1x256xf32>
    %20 = arith.subf %18, %19 : vector<1x256xf32>
    %cst_14 = arith.constant 0.000000e+00 : f32
    %21 = vector.broadcast %cst_14 : f32 to vector<1x256xf32>
    %22 = arith.maximumf %20, %21 : vector<1x256xf32>
    %cst_15 = arith.constant 9.99999974E-6 : f32
    %23 = vector.broadcast %cst_15 : f32 to vector<1x256xf32>
    %24 = arith.addf %22, %23 : vector<1x256xf32>
    %25 = math.rsqrt %24 : vector<1x256xf32>
    %26 = arith.mulf %8, %25 : vector<1x256xf32>
    %27 = arith.mulf %16, %26 : vector<1x256xf32>
    %28 = arith.subf %9, %27 : vector<1x256xf32>
    %29 = vector.broadcast %26 : vector<1x256xf32> to vector<128x256xf32>
    %30 = arith.mulf %7, %29 : vector<128x256xf32>
    %31 = vector.broadcast %28 : vector<1x256xf32> to vector<128x256xf32>
    %32 = arith.addf %30, %31 : vector<128x256xf32>
    %33 = vector.shape_cast %32 : vector<128x256xf32> to vector<8x16x256xf32>
    %34 = vector.extract_strided_slice %33 {offsets = [0, 0, 0], sizes = [8, 8, 256], strides = [1, 1, 1]} : vector<8x16x256xf32> to vector<8x8x256xf32>
    %35 = vector.extract_strided_slice %33 {offsets = [0, 8, 0], sizes = [8, 8, 256], strides = [1, 1, 1]} : vector<8x16x256xf32> to vector<8x8x256xf32>
    %36 = arith.maximumf %34, %35 : vector<8x8x256xf32>
    %37 = vector.shape_cast %36 : vector<8x8x256xf32> to vector<32x2x256xf32>
    %38 = vector.extract_strided_slice %37 {offsets = [0, 0, 0], sizes = [32, 1, 256], strides = [1, 1, 1]} : vector<32x2x256xf32> to vector<32x1x256xf32>
    %39 = vector.extract_strided_slice %37 {offsets = [0, 1, 0], sizes = [32, 1, 256], strides = [1, 1, 1]} : vector<32x2x256xf32> to vector<32x1x256xf32>
    %40 = arith.maximumf %38, %39 : vector<32x1x256xf32>
    %41 = vector.shape_cast %40 : vector<32x1x256xf32> to vector<32x256xf32>
    %cst_16 = arith.constant 0.000000e+00 : bf16
    %42 = vector.broadcast %cst_16 : bf16 to vector<2x6x6x256xbf16>
    %c0_17 = arith.constant 0 : index
    %c0_18 = arith.constant 0 : index
    %c0_19 = arith.constant 0 : index
    %c0_20 = arith.constant 0 : index
    %43 = vector.load %arg12[%c0_17, %c0_18, %c0_19, %c0_20] : memref<2x6x6x256xbf16, #tpu.memory_space<vmem>>, vector<2x6x6x256xbf16>
    tpu.vector_store %arg12[%c0_17, %c0_18, %c0_19, %c0_20], %42 {strides = array<i32>} : memref<2x6x6x256xbf16, #tpu.memory_space<vmem>>, vector<2x6x6x256xbf16>,
    %44 = vector.shape_cast %41 : vector<32x256xf32> to vector<2x4x4x256xf32>
    %45 = arith.truncf %44 : vector<2x4x4x256xf32> to vector<2x4x4x256xbf16>
    %c0_21 = arith.constant 0 : index
    %c1 = arith.constant 1 : index
    %c1_22 = arith.constant 1 : index
    %c0_23 = arith.constant 0 : index
    %46 = vector.load %arg12[%c0_21, %c1, %c1_22, %c0_23] : memref<2x6x6x256xbf16, #tpu.memory_space<vmem>>, vector<2x4x4x256xbf16>
    tpu.vector_store %arg12[%c0_21, %c1, %c1_22, %c0_23], %45 {strides = array<i32>} : memref<2x6x6x256xbf16, #tpu.memory_space<vmem>>, vector<2x4x4x256xbf16>,
    %c0_24 = arith.constant 0 : index
    %c0_25 = arith.constant 0 : index
    %c0_26 = arith.constant 0 : index
    %c0_27 = arith.constant 0 : index
    %47 = vector.load %arg12[%c0_24, %c0_25, %c0_26, %c0_27] : memref<2x6x6x256xbf16, #tpu.memory_space<vmem>>, vector<2x4x4x256xbf16>
    %48 = vector.shape_cast %47 : vector<2x4x4x256xbf16> to vector<32x256xbf16>
    %c0_28 = arith.constant 0 : index
    %c0_29 = arith.constant 0 : index
    %c1_30 = arith.constant 1 : index
    %c0_31 = arith.constant 0 : index
    %49 = vector.load %arg12[%c0_28, %c0_29, %c1_30, %c0_31] : memref<2x6x6x256xbf16, #tpu.memory_space<vmem>>, vector<2x4x4x256xbf16>
    %50 = vector.shape_cast %49 : vector<2x4x4x256xbf16> to vector<32x256xbf16>
    %c0_32 = arith.constant 0 : index
    %c0_33 = arith.constant 0 : index
    %c2 = arith.constant 2 : index
    %c0_34 = arith.constant 0 : index
    %51 = vector.load %arg12[%c0_32, %c0_33, %c2, %c0_34] : memref<2x6x6x256xbf16, #tpu.memory_space<vmem>>, vector<2x4x4x256xbf16>
    %52 = vector.shape_cast %51 : vector<2x4x4x256xbf16> to vector<32x256xbf16>
    %c0_35 = arith.constant 0 : index
    %c1_36 = arith.constant 1 : index
    %c0_37 = arith.constant 0 : index
    %c0_38 = arith.constant 0 : index
    %53 = vector.load %arg12[%c0_35, %c1_36, %c0_37, %c0_38] : memref<2x6x6x256xbf16, #tpu.memory_space<vmem>>, vector<2x4x4x256xbf16>
    %54 = vector.shape_cast %53 : vector<2x4x4x256xbf16> to vector<32x256xbf16>
    %c0_39 = arith.constant 0 : index
    %c1_40 = arith.constant 1 : index
    %c1_41 = arith.constant 1 : index
    %c0_42 = arith.constant 0 : index
    %55 = vector.load %arg12[%c0_39, %c1_40, %c1_41, %c0_42] : memref<2x6x6x256xbf16, #tpu.memory_space<vmem>>, vector<2x4x4x256xbf16>
    %56 = vector.shape_cast %55 : vector<2x4x4x256xbf16> to vector<32x256xbf16>
    %c0_43 = arith.constant 0 : index
    %c1_44 = arith.constant 1 : index
    %c2_45 = arith.constant 2 : index
    %c0_46 = arith.constant 0 : index
    %57 = vector.load %arg12[%c0_43, %c1_44, %c2_45, %c0_46] : memref<2x6x6x256xbf16, #tpu.memory_space<vmem>>, vector<2x4x4x256xbf16>
    %58 = vector.shape_cast %57 : vector<2x4x4x256xbf16> to vector<32x256xbf16>
    %c0_47 = arith.constant 0 : index
    %c2_48 = arith.constant 2 : index
    %c0_49 = arith.constant 0 : index
    %c0_50 = arith.constant 0 : index
    %59 = vector.load %arg12[%c0_47, %c2_48, %c0_49, %c0_50] : memref<2x6x6x256xbf16, #tpu.memory_space<vmem>>, vector<2x4x4x256xbf16>
    %60 = vector.shape_cast %59 : vector<2x4x4x256xbf16> to vector<32x256xbf16>
    %c0_51 = arith.constant 0 : index
    %c2_52 = arith.constant 2 : index
    %c1_53 = arith.constant 1 : index
    %c0_54 = arith.constant 0 : index
    %61 = vector.load %arg12[%c0_51, %c2_52, %c1_53, %c0_54] : memref<2x6x6x256xbf16, #tpu.memory_space<vmem>>, vector<2x4x4x256xbf16>
    %62 = vector.shape_cast %61 : vector<2x4x4x256xbf16> to vector<32x256xbf16>
    %c0_55 = arith.constant 0 : index
    %c2_56 = arith.constant 2 : index
    %c2_57 = arith.constant 2 : index
    %c0_58 = arith.constant 0 : index
    %63 = vector.load %arg12[%c0_55, %c2_56, %c2_57, %c0_58] : memref<2x6x6x256xbf16, #tpu.memory_space<vmem>>, vector<2x4x4x256xbf16>
    %64 = vector.shape_cast %63 : vector<2x4x4x256xbf16> to vector<32x256xbf16>
    %65 = tpu.concatenate %48, %50, %52, %54, %56, %58, %60, %62, %64 in 1 : vector<32x256xbf16>, vector<32x256xbf16>, vector<32x256xbf16>, vector<32x256xbf16>, vector<32x256xbf16>, vector<32x256xbf16>, vector<32x256xbf16>, vector<32x256xbf16>, vector<32x256xbf16> -> vector<32x2304xbf16>
    %c0_59 = arith.constant 0 : index
    %c0_60 = arith.constant 0 : index
    %66 = vector.load %arg5[%c0_59, %c0_60] : memref<2304x128xbf16, #tpu.memory_space<vmem>>, vector<2304x128xbf16>
    %cst_61 = arith.constant dense<0.000000e+00> : vector<32x128xf32>
    %67 = tpu.matmul %65, %66, %cst_61 {dimension_numbers = #tpu.dot_dimension_numbers<[1], [0], [0], [1], [0, 0, 1, 1], [], []>} : vector<32x2304xbf16>, vector<2304x128xbf16>, vector<32x128xf32> -> vector<32x128xf32>
    %c0_62 = arith.constant 0 : index
    %c0_63 = arith.constant 0 : index
    %68 = vector.load %arg6[%c0_62, %c0_63] : memref<1x128xf32, #tpu.memory_space<vmem>>, vector<1x128xf32>
    %69 = vector.broadcast %68 : vector<1x128xf32> to vector<32x128xf32>
    %70 = arith.addf %67, %69 : vector<32x128xf32>
    %cst_64 = arith.constant 0.000000e+00 : f32
    %71 = vector.broadcast %cst_64 : f32 to vector<32x128xf32>
    %72 = arith.maximumf %70, %71 : vector<32x128xf32>
    %c0_65 = arith.constant 0 : index
    %c0_66 = arith.constant 0 : index
    %73 = vector.load %arg7[%c0_65, %c0_66] : memref<1x128xf32, #tpu.memory_space<vmem>>, vector<1x128xf32>
    %c0_67 = arith.constant 0 : index
    %c0_68 = arith.constant 0 : index
    %74 = vector.load %arg8[%c0_67, %c0_68] : memref<1x128xf32, #tpu.memory_space<vmem>>, vector<1x128xf32>
    %cst_69 = arith.constant dense<0.000000e+00> : vector<128xf32>
    %75 = vector.multi_reduction <add>, %72, %cst_69 [0] : vector<32x128xf32> to vector<128xf32>
    %76 = vector.shape_cast %75 : vector<128xf32> to vector<1x128xf32>
    %77 = arith.mulf %72, %72 : vector<32x128xf32>
    %cst_70 = arith.constant dense<0.000000e+00> : vector<128xf32>
    %78 = vector.multi_reduction <add>, %77, %cst_70 [0] : vector<32x128xf32> to vector<128xf32>
    %79 = vector.shape_cast %78 : vector<128xf32> to vector<1x128xf32>
    %cst_71 = arith.constant 3.125000e-02 : f32
    %80 = vector.broadcast %cst_71 : f32 to vector<1x128xf32>
    %81 = arith.mulf %76, %80 : vector<1x128xf32>
    %cst_72 = arith.constant 3.125000e-02 : f32
    %82 = vector.broadcast %cst_72 : f32 to vector<1x128xf32>
    %83 = arith.mulf %79, %82 : vector<1x128xf32>
    %84 = arith.mulf %81, %81 : vector<1x128xf32>
    %85 = arith.subf %83, %84 : vector<1x128xf32>
    %cst_73 = arith.constant 0.000000e+00 : f32
    %86 = vector.broadcast %cst_73 : f32 to vector<1x128xf32>
    %87 = arith.maximumf %85, %86 : vector<1x128xf32>
    %cst_74 = arith.constant 9.99999974E-6 : f32
    %88 = vector.broadcast %cst_74 : f32 to vector<1x128xf32>
    %89 = arith.addf %87, %88 : vector<1x128xf32>
    %90 = math.rsqrt %89 : vector<1x128xf32>
    %91 = arith.mulf %73, %90 : vector<1x128xf32>
    %92 = arith.mulf %81, %91 : vector<1x128xf32>
    %93 = arith.subf %74, %92 : vector<1x128xf32>
    %94 = vector.broadcast %91 : vector<1x128xf32> to vector<32x128xf32>
    %95 = arith.mulf %72, %94 : vector<32x128xf32>
    %96 = vector.broadcast %93 : vector<1x128xf32> to vector<32x128xf32>
    %97 = arith.addf %95, %96 : vector<32x128xf32>
    %98 = vector.shape_cast %97 : vector<32x128xf32> to vector<4x8x128xf32>
    %99 = vector.extract_strided_slice %98 {offsets = [0, 0, 0], sizes = [4, 4, 128], strides = [1, 1, 1]} : vector<4x8x128xf32> to vector<4x4x128xf32>
    %100 = vector.extract_strided_slice %98 {offsets = [0, 4, 0], sizes = [4, 4, 128], strides = [1, 1, 1]} : vector<4x8x128xf32> to vector<4x4x128xf32>
    %101 = arith.maximumf %99, %100 : vector<4x4x128xf32>
    %102 = vector.shape_cast %101 : vector<4x4x128xf32> to vector<8x2x128xf32>
    %103 = vector.extract_strided_slice %102 {offsets = [0, 0, 0], sizes = [8, 1, 128], strides = [1, 1, 1]} : vector<8x2x128xf32> to vector<8x1x128xf32>
    %104 = vector.extract_strided_slice %102 {offsets = [0, 1, 0], sizes = [8, 1, 128], strides = [1, 1, 1]} : vector<8x2x128xf32> to vector<8x1x128xf32>
    %105 = arith.maximumf %103, %104 : vector<8x1x128xf32>
    %106 = vector.shape_cast %105 : vector<8x1x128xf32> to vector<8x128xf32>
    %107 = vector.shape_cast %106 : vector<8x128xf32> to vector<2x512xf32>
    %108 = arith.truncf %107 : vector<2x512xf32> to vector<2x512xbf16>
    %c0_75 = arith.constant 0 : index
    %c0_76 = arith.constant 0 : index
    %109 = vector.load %arg9[%c0_75, %c0_76] : memref<512x128xbf16, #tpu.memory_space<vmem>>, vector<512x128xbf16>
    %cst_77 = arith.constant dense<0.000000e+00> : vector<2x128xf32>
    %110 = tpu.matmul %108, %109, %cst_77 {dimension_numbers = #tpu.dot_dimension_numbers<[1], [0], [0], [1], [0, 0, 1, 1], [], []>} : vector<2x512xbf16>, vector<512x128xbf16>, vector<2x128xf32> -> vector<2x128xf32>
    %c0_78 = arith.constant 0 : index
    %c0_79 = arith.constant 0 : index
    %111 = vector.load %arg10[%c0_78, %c0_79] : memref<1x128xf32, #tpu.memory_space<vmem>>, vector<1x128xf32>
    %112 = vector.broadcast %111 : vector<1x128xf32> to vector<2x128xf32>
    %113 = arith.addf %110, %112 : vector<2x128xf32>
    %c0_80 = arith.constant 0 : index
    %c0_81 = arith.constant 0 : index
    %114 = vector.load %arg11[%c0_80, %c0_81] : memref<2x128xf32, #tpu.memory_space<vmem>>, vector<2x128xf32>
    tpu.vector_store %arg11[%c0_80, %c0_81], %113 {strides = array<i32>} : memref<2x128xf32, #tpu.memory_space<vmem>>, vector<2x128xf32>,
    return
  }
}

</mosaic_0001>

<bundles_post_ra>
// kernel: cnn_forward.1
= control target key start
LH: loop header
LB: loop body
LE: loop exit
PB: predicated region body
PF: predicated region fallthrough
CT: control target
= control target key end

     0   :  { %s8432_s0 = inlined_call_operand.vmem [shape: bf16[128,128], index: 0, kind: input, shape index: {}]   ;;  %s8433_s1 = inlined_call_operand.vmem [shape: bf16[128,256], index: 1, kind: input, shape index: {}]   ;;  %s8434_s2 = inlined_call_operand.vmem [shape: f32[1,256], index: 2, kind: input, shape index: {}]   ;;  %s8435_s3 = inlined_call_operand.vmem [shape: f32[1,256], index: 3, kind: input, shape index: {}]   ;;  %s8436_s4 = inlined_call_operand.vmem [shape: f32[1,256], index: 4, kind: input, shape index: {}]   ;;  %s8437_s5 = inlined_call_operand.vmem [shape: bf16[2304,128], index: 5, kind: input, shape index: {}]   ;;  %s8438_s6 = inlined_call_operand.vmem [shape: f32[1,128], index: 6, kind: input, shape index: {}]   ;;  %s8439_s7 = inlined_call_operand.vmem [shape: f32[1,128], index: 7, kind: input, shape index: {}]   ;;  %s8440_s8 = inlined_call_operand.vmem [shape: f32[1,128], index: 8, kind: input, shape index: {}]   ;;  %s8441_s9 = inlined_call_operand.vmem [shape: bf16[512,128], index: 9, kind: input, shape index: {}]   ;;  %s8442_s10 = inlined_call_operand.vmem [shape: f32[1,128], index: 10, kind: input, shape index: {}]   ;;  %s8443_s11 = inlined_call_operand.hbm [shape: f32[2,128], index: 11, kind: output, shape index: {}]  }
   0x1   :  { %v4631_v0 = vld [vmem:[%s8433_s1 + $0x70] sm:$0xf]  ;;  %v5452_v1 = vld [vmem:[%s8433_s1 + $0x74] sm:$0xf0]  ;;  %v5451_v2 = vld [vmem:[%s8433_s1 + $0x74] sm:$0xf] }
   0x2   :  { %v4632_v3 = vor.u32 %v5452_v1, %v4631_v0  ;;  %v4633_v4 = vld [vmem:[%s8433_s1 + $0x78] sm:$0xf0]  ;;  %v4623_v5 = vld [vmem:[%s8433_s1 + $0x60] sm:$0xf]  ;;  %v5450_v6 = vld [vmem:[%s8433_s1 + $0x64] sm:$0xf0] }
   0x3   :  { %v4636_v7 = vor.u32 %v5451_v2, %v4633_v4  ;;  %v5449_v8 = vld [vmem:[%s8433_s1 + $0x64] sm:$0xf]  ;;  %v4625_v9 = vld [vmem:[%s8433_s1 + $0x68] sm:$0xf0]  ;;  %v4624_v10 = vor.u32 %v5450_v6, %v4623_v5  ;;  %v4615_v12 = vld [vmem:[%s8433_s1 + $0x50] sm:$0xf] }
   0x4   :  { %206 = vmatpush.bf16.msra.mxu0 %v4632_v3  ;;  %v4628_v11 = vor.u32 %v5449_v8, %v4625_v9  ;;  %v5448_v13 = vld [vmem:[%s8433_s1 + $0x54] sm:$0xf0]  ;;  %v5447_v14 = vld [vmem:[%s8433_s1 + $0x54] sm:$0xf]  ;;  %v4617_v15 = vld [vmem:[%s8433_s1 + $0x58] sm:$0xf0] }
   0x5   :  { %255 = vmatpush.bf16.msra.mxu1 %v4636_v7  ;;  %v4616_v16 = vor.u32 %v5448_v13, %v4615_v12  ;;  %v4620_v17 = vor.u32 %v5447_v14, %v4617_v15  ;;  %v4607_v18 = vld [vmem:[%s8433_s1 + $0x40] sm:$0xf]  ;;  %v5446_v19 = vld [vmem:[%s8433_s1 + $0x44] sm:$0xf0]  ;;  %v5445_v20 = vld [vmem:[%s8433_s1 + $0x44] sm:$0xf] }
   0x6   :  { %v4609_v21 = vld [vmem:[%s8433_s1 + $0x48] sm:$0xf0]  ;;  %v4608_v22 = vor.u32 %v5446_v19, %v4607_v18  ;;  %v4599_v24 = vld [vmem:[%s8433_s1 + $0x30] sm:$0xf]  ;;  %v5444_v25 = vld [vmem:[%s8433_s1 + $0x34] sm:$0xf0] }
   0x7   :  { %v4612_v23 = vor.u32 %v5445_v20, %v4609_v21 }
   0x8   :  { %207 = vmatpush.bf16.msra.mxu0 %v4624_v10 }
   0x9   :  { %256 = vmatpush.bf16.msra.mxu1 %v4628_v11 }
   0xc   :  { %208 = vmatpush.bf16.msra.mxu0 %v4616_v16 }
   0xd   :  { %257 = vmatpush.bf16.msra.mxu1 %v4620_v17 }
   0xe   :  { %16 = vsyncpa [#allocation4], 0  ;;  %v5443_v26 = vld [vmem:[%s8433_s1 + $0x34] sm:$0xf]  ;;  %v4601_v27 = vld [vmem:[%s8433_s1 + $0x38] sm:$0xf0]  ;;  %v4600_v28 = vor.u32 %v5444_v25, %v4599_v24 }
   0xf   :  { %v4604_v29 = vor.u32 %v5443_v26, %v4601_v27  ;;  %v4591_v30 = vld [vmem:[%s8433_s1 + $0x20] sm:$0xf]  ;;  %v5442_v31 = vld [vmem:[%s8433_s1 + $0x24] sm:$0xf0]  ;;  %v5441_v32 = vld [vmem:[%s8433_s1 + $0x24] sm:$0xf] }
  0x10   :  { %209 = vmatpush.bf16.msra.mxu0 %v4608_v22  ;;  %v4593_v33 = vld [vmem:[%s8433_s1 + $0x28] sm:$0xf0]  ;;  %v4592_v34 = vor.u32 %v5442_v31, %v4591_v30  ;;  %v4583_v36 = vld [vmem:[%s8433_s1 + $0x10] sm:$0xf]  ;;  %v5440_v37 = vld [vmem:[%s8433_s1 + $0x14] sm:$0xf0] }
  0x11   :  { %258 = vmatpush.bf16.msra.mxu1 %v4612_v23  ;;  %v4596_v35 = vor.u32 %v5441_v32, %v4593_v33  ;;  %v5439_v38 = vld [vmem:[%s8433_s1 + $0x14] sm:$0xf]  ;;  %v4585_v39 = vld [vmem:[%s8433_s1 + $0x18] sm:$0xf0]  ;;  %v4584_v40 = vor.u32 %v5440_v37, %v4583_v36  ;;  %v4575_v42 = vld [vmem:[%s8433_s1] sm:$0xf] }
  0x12   :  { %v4588_v41 = vor.u32 %v5439_v38, %v4585_v39  ;;  %v5438_v43 = vld [vmem:[%s8433_s1 + $0x4] sm:$0xf0]  ;;  %v5437_v44 = vld [vmem:[%s8433_s1 + $0x4] sm:$0xf]  ;;  %v4577_v45 = vld [vmem:[%s8433_s1 + $0x8] sm:$0xf0] }
  0x13   :  { %v4576_v46 = vor.u32 %v5438_v43, %v4575_v42  ;;  %v4580_v47 = vor.u32 %v5437_v44, %v4577_v45  ;;  %v5429_v48 = vld [vmem:[%s8432_s0] sm:$0xff]  ;;  %v5430_v49 = vld [vmem:[%s8432_s0 + $0x8] sm:$0xff]  ;;  %v5431_v50 = vld [vmem:[%s8432_s0 + $0x10] sm:$0xff]  ;;  %vm489_vm5 = vcmask 1040384   ;;  %vm617_vm7 = vcmask 1043458   ;;  %s5666_s16 = smov [#allocation3]  }
  0x14   :  { %210 = vmatpush.bf16.msra.mxu0 %v4600_v28  ;;  %v5432_v51 = vld [vmem:[%s8432_s0 + $0x18] sm:$0xff]  ;;  %v5433_v52 = vld [vmem:[%s8432_s0 + $0x20] sm:$0xff]  ;;  %v5434_v53 = vld [vmem:[%s8432_s0 + $0x28] sm:$0xff]  ;;  %vm620_vm8 = vcmask 1045508   ;;  %vm623_vm9 = vcmask 1045504   ;;  %vm615_vm10 = vcmask 1041408  }
  0x15   :  { %259 = vmatpush.bf16.msra.mxu1 %v4604_v29  ;;  %v5435_v54 = vld [vmem:[%s8432_s0 + $0x30] sm:$0xff]  ;;  %v5436_v55 = vld [vmem:[%s8432_s0 + $0x38] sm:$0xff]  ;;  %v72_v12 = vld [vmem:[%s8434_s2] sm:$0x3]  ;;  %vm1137_vm11 = vcmask 1042434   ;;  %vm1140_vm12 = vcmask 1043459  }
  0x16   :  { %v5858_v13 = vperm.slane %v72_v12, 0  ;;  %v5860_v14 = vperm.slane %v72_v12, 1  ;;  %vm1143_vm13 = vcmask 1044484   ;;  %vm1267_vm14 = vcmask 1042432   ;;  %s4530_s17 = sshll.u32 %s5666_s16, 4  ;;  %s4532_s19 = sshll.u32 %s8443_s11, 4  ;;  %s4531_s17 = int_to_ptr.vmem [resolvable:$true] %s4530_s17  ;;  %s4533_s19 = int_to_ptr.hbm [resolvable:$true] %s4532_s19 }
  0x17   :  { %vm1268_vm15 = vsmask.f32 2306 }
  0x18   :  { %211 = vmatpush.bf16.msra.mxu0 %v4592_v34 }
  0x19   :  { %260 = vmatpush.bf16.msra.mxu1 %v4596_v35 }
  0x1c   :  { %212 = vmatpush.bf16.msra.mxu0 %v4584_v40 }
  0x1d   :  { %261 = vmatpush.bf16.msra.mxu1 %v4588_v41 }
  0x20   :  { %213 = vmatpush.bf16.msra.mxu0 %v4576_v46 }
  0x21   :  { %262 = vmatpush.bf16.msra.mxu1 %v4580_v47 }
  0x23   :  { %214 = vmatmul.bf16.vlgmr.msra.gmra.mxu0 %v5429_v48 }
  0x24   :  { %263 = vmatmul.bf16.vlgmr.msra.gmra.mxu1 %v5429_v48 }
  0x33   :  { %219 = vmatmul.bf16.gmra.mxu0 %v5430_v49 }
  0x34   :  { %268 = vmatmul.bf16.gmra.mxu1 %v5430_v49 }
  0x43   :  { %224 = vmatmul.bf16.gmra.mxu0 %v5431_v50 }
  0x44   :  { %273 = vmatmul.bf16.gmra.mxu1 %v5431_v50 }
  0x53   :  { %229 = vmatmul.bf16.gmra.mxu0 %v5432_v51 }
  0x54   :  { %278 = vmatmul.bf16.gmra.mxu1 %v5432_v51 }
  0x63   :  { %234 = vmatmul.bf16.gmra.mxu0 %v5433_v52 }
  0x64   :  { %283 = vmatmul.bf16.gmra.mxu1 %v5433_v52 }
  0x73   :  { %239 = vmatmul.bf16.gmra.mxu0 %v5434_v53 }
  0x74   :  { %288 = vmatmul.bf16.gmra.mxu1 %v5434_v53 }
  0x83   :  { %244 = vmatmul.bf16.gmra.mxu0 %v5435_v54 }
  0x84   :  { %293 = vmatmul.bf16.gmra.mxu1 %v5435_v54 }
  0x93   :  { %249 = vmatmul.bf16.gmra.mxu0 %v5436_v55 }
  0x94   :  { %298 = vmatmul.bf16.gmra.mxu1 %v5436_v55 }
  0xa0   :  { %v215_v56 = vpop.f32.mrf.mxu0 }
  0xa1   :  { %v264_v57 = vpop.f32.mrf.mxu1  ;;  %v216_v17 = vadd.f32 %v215_v56, %v5858_v13 }
  0xa2   :  { %v265_v20 = vadd.f32 %v264_v57, %v5860_v14 }
  0xa3   :  { %v5872_v23 = vmax.f32 %v216_v17, 0.0 }
  0xa4   :  { %v5879_v27 = vmax.f32 %v265_v20, 0.0 }
  0xa5   :  { %v380_v35 = vmul.f32 %v5872_v23, %v5872_v23 }
  0xa6   :  { %v381_v39 = vmul.f32 %v5879_v27, %v5879_v27 }
  0xa8   :  { %v217_v58 = vpop.f32.mrf.mxu0 }
  0xa9   :  { %v266_v59 = vpop.f32.mrf.mxu1  ;;  %v218_v18 = vadd.f32 %v217_v58, %v5858_v13 }
  0xaa   :  { %v267_v19 = vadd.f32 %v266_v59, %v5860_v14 }
  0xab   :  { %v5874_v24 = vmax.f32 %v218_v18, 0.0 }
  0xac   :  { %v5876_v25 = vmax.f32 %v267_v19, 0.0 }
  0xad   :  { %v382_v36 = vmul.f32 %v5874_v24, %v5874_v24  ;;  %v338_v43 = vadd.f32 %v5874_v24, %v5872_v23 }
  0xae   :  { %v383_v37 = vmul.f32 %v5876_v25, %v5876_v25  ;;  %v359_v44 = vadd.f32 %v5876_v25, %v5879_v27 }
  0xaf   :  { %v412_v51 = vadd.f32 %v382_v36, %v380_v35 }
  0xb0   :  { %v220_v60 = vpop.f32.mrf.mxu0  ;;  %v433_v52 = vadd.f32 %v383_v37, %v381_v39 }
  0xb1   :  { %v269_v61 = vpop.f32.mrf.mxu1  ;;  %v221_v21 = vadd.f32 %v220_v60, %v5858_v13 }
  0xb2   :  { %v270_v22 = vadd.f32 %v269_v61, %v5860_v14 }
  0xb3   :  { %v5884_v30 = vmax.f32 %v221_v21, 0.0 }
  0xb4   :  { %v5886_v31 = vmax.f32 %v270_v22, 0.0 }
  0xb5   :  { %v384_v45 = vmul.f32 %v5884_v30, %v5884_v30  ;;  %v339_v53 = vadd.f32 %v338_v43, %v5884_v30 }
  0xb6   :  { %v385_v46 = vmul.f32 %v5886_v31, %v5886_v31  ;;  %v360_v55 = vadd.f32 %v359_v44, %v5886_v31 }
  0xb7   :  { %v413_v60 = vadd.f32 %v412_v51, %v384_v45 }
  0xb8   :  { %v222_v62 = vpop.f32.mrf.mxu0  ;;  %v434_v61 = vadd.f32 %v433_v52, %v385_v46 }
  0xb9   :  { %v271_v63 = vpop.f32.mrf.mxu1  ;;  %v223_v26 = vadd.f32 %v222_v62, %v5858_v13 }
  0xba   :  { %v272_v28 = vadd.f32 %v271_v63, %v5860_v14 }
  0xbb   :  { %v5898_v38 = vmax.f32 %v223_v26, 0.0 }
  0xbc   :  { %v5902_v40 = vmax.f32 %v272_v28, 0.0 }
  0xbd   :  { %v386_v54 = vmul.f32 %v5898_v38, %v5898_v38 }
  0xbe   :  { %v387_v56 = vmul.f32 %v5902_v40, %v5902_v40  ;;  %v361_v17 = vadd.f32 %v360_v55, %v5902_v40 }
  0xbf   :  { %v414_v12 = vadd.f32 %v413_v60, %v386_v54 }
  0xc0   :  { %v225_v0 = vpop.f32.mrf.mxu0 }
  0xc1   :  { %v274_v1 = vpop.f32.mrf.mxu1  ;;  %v226_v33 = vadd.f32 %v225_v0, %v5858_v13 }
  0xc2   :  { %v275_v34 = vadd.f32 %v274_v1, %v5860_v14 }
  0xc3   :  { %v5914_v47 = vmax.f32 %v226_v33, 0.0 }
  0xc4   :  { %v5916_v48 = vmax.f32 %v275_v34, 0.0 }
  0xc5   :  { %v388_v1 = vmul.f32 %v5914_v47, %v5914_v47 }
  0xc6   :  { %v362_v22 = vadd.f32 %v361_v17, %v5916_v48 }
  0xc7   :  { %v415_v33 = vadd.f32 %v414_v12, %v388_v1 }
  0xc8   :  { %v227_v2 = vpop.f32.mrf.mxu0 }
  0xc9   :  { %v276_v3 = vpop.f32.mrf.mxu1  ;;  %v228_v41 = vadd.f32 %v227_v2, %v5858_v13  ;;  %v389_v2 = vmul.f32 %v5916_v48, %v5916_v48 }
  0xca   :  { %v277_v42 = vadd.f32 %v276_v3, %v5860_v14 }
  0xcb   :  { %v5926_v57 = vmax.f32 %v228_v41, 0.0 }
  0xcc   :  { %v5928_v58 = vmax.f32 %v277_v42, 0.0 }
  0xcd   :  { %v390_v18 = vmul.f32 %v5926_v57, %v5926_v57 }
  0xce   :  { %v391_v19 = vmul.f32 %v5928_v58, %v5928_v58 }
  0xcf   :  { %v416_v41 = vadd.f32 %v415_v33, %v390_v18 }
  0xd0   :  { %v230_v4 = vpop.f32.mrf.mxu0 }
  0xd1   :  { %v279_v5 = vpop.f32.mrf.mxu1  ;;  %v231_v49 = vadd.f32 %v230_v4, %v5858_v13 }
  0xd2   :  { %v280_v50 = vadd.f32 %v279_v5, %v5860_v14  ;;  %v340_v5 = vadd.f32 %v339_v53, %v5898_v38 }
  0xd3   :  { %v5936_v3 = vmax.f32 %v231_v49, 0.0 }
  0xd4   :  { %v5938_v4 = vmax.f32 %v280_v50, 0.0  ;;  %v341_v21 = vadd.f32 %v340_v5, %v5914_v47 }
  0xd5   :  { %v392_v34 = vmul.f32 %v5936_v3, %v5936_v3 }
  0xd6   :  { %v393_v35 = vmul.f32 %v5938_v4, %v5938_v4  ;;  %v342_v36 = vadd.f32 %v341_v21, %v5926_v57 }
  0xd7   :  { %v417_v52 = vadd.f32 %v416_v41, %v392_v34 }
  0xd8   :  { %v232_v6 = vpop.f32.mrf.mxu0  ;;  %v343_v46 = vadd.f32 %v342_v36, %v5936_v3 }
  0xd9   :  { %v281_v7 = vpop.f32.mrf.mxu1  ;;  %v233_v62 = vadd.f32 %v232_v6, %v5858_v13 }
  0xda   :  { %v282_v63 = vadd.f32 %v281_v7, %v5860_v14  ;;  %v435_v7 = vadd.f32 %v434_v61, %v387_v56 }
  0xdb   :  { %v5952_v26 = vmax.f32 %v233_v62, 0.0 }
  0xdc   :  { %v5954_v28 = vmax.f32 %v282_v63, 0.0 }
  0xdd   :  { %v394_v49 = vmul.f32 %v5952_v26, %v5952_v26  ;;  %v344_v55 = vadd.f32 %v343_v46, %v5952_v26 }
  0xde   :  { %v395_v50 = vmul.f32 %v5954_v28, %v5954_v28 }
  0xdf   :  { %v418_v1 = vadd.f32 %v417_v52, %v394_v49 }
  0xe0   :  { %v5847_v8 = vpop.f32.mrf.mxu0 }
  0xe1   :  { %v5849_v9 = vpop.f32.mrf.mxu1  ;;  %v236_v6 = vadd.f32 %v5847_v8, %v5858_v13  ;;  %v436_v8 = vadd.f32 %v435_v7, %v389_v2 }
  0xe2   :  { %v285_v20 = vadd.f32 %v5849_v9, %v5860_v14  ;;  %v363_v9 = vadd.f32 %v362_v22, %v5928_v58 }
  0xe3   :  { %v5962_v37 = vmax.f32 %v236_v6, 0.0  ;;  %v437_v42 = vadd.f32 %v436_v8, %v391_v19 }
  0xe4   :  { %v5966_v43 = vmax.f32 %v285_v20, 0.0  ;;  %v364_v53 = vadd.f32 %v363_v9, %v5938_v4 }
  0xe5   :  { %v438_v54 = vadd.f32 %v437_v42, %v393_v35  ;;  %v396_v56 = vmul.f32 %v5962_v37, %v5962_v37  ;;  %v345_v17 = vadd.f32 %v344_v55, %v5962_v37 }
  0xe6   :  { %v397_v62 = vmul.f32 %v5966_v43, %v5966_v43 }
  0xe7   :  { %v439_v2 = vadd.f32 %v438_v54, %v395_v50  ;;  %v419_v18 = vadd.f32 %v418_v1, %v396_v56 }
  0xe8   :  { %v5851_v10 = vpop.f32.mrf.mxu0 }
  0xe9   :  { %v5853_v11 = vpop.f32.mrf.mxu1  ;;  %v238_v39 = vadd.f32 %v5851_v10, %v5858_v13  ;;  %v440_v21 = vadd.f32 %v439_v2, %v397_v62 }
  0xea   :  { %v287_v44 = vadd.f32 %v5853_v11, %v5860_v14 }
  0xeb   :  { %v5983_v60 = vmax.f32 %v238_v39, 0.0 }
  0xec   :  { %v5990_v63 = vmax.f32 %v287_v44, 0.0 }
  0xed   :  { %v398_v19 = vmul.f32 %v5983_v60, %v5983_v60  ;;  %v346_v34 = vadd.f32 %v345_v17, %v5983_v60 }
  0xf0   :  { %v5862_v15 = vpop.f32.mrf.mxu0 }
  0xf1   :  { %v5864_v16 = vpop.f32.mrf.mxu1  ;;  %v241_v51 = vadd.f32 %v5862_v15, %v5858_v13  ;;  %v365_v15 = vadd.f32 %v364_v53, %v5954_v28 }
  0xf2   :  { %v290_v11 = vadd.f32 %v5864_v16, %v5860_v14 }
  0xf3   :  { %v5994_v5 = vmax.f32 %v241_v51, 0.0 }
  0xf4   :  { %v5999_v6 = vmax.f32 %v290_v11, 0.0 }
  0xf5   :  { %v347_v46 = vadd.f32 %v346_v34, %v5994_v5 }
  0xf6   :  { %v401_v41 = vmul.f32 %v5999_v6, %v5999_v6 }
  0xf8   :  { %v5882_v29 = vpop.f32.mrf.mxu0 }
  0xf9   :  { %v5888_v32 = vpop.f32.mrf.mxu1  ;;  %v243_v61 = vadd.f32 %v5882_v29, %v5858_v13  ;;  %v366_v29 = vadd.f32 %v365_v15, %v5966_v43 }
  0xfa   :  { %v292_v16 = vadd.f32 %v5888_v32, %v5860_v14 }
  0xfb   :  { %v6004_v20 = vmax.f32 %v243_v61, 0.0  ;;  %v367_v39 = vadd.f32 %v366_v29, %v5990_v63 }
  0xfc   :  { %v6009_v22 = vmax.f32 %v292_v16, 0.0 }
  0xfd   :  { %v402_v49 = vmul.f32 %v6004_v20, %v6004_v20  ;;  %v348_v11 = vadd.f32 %v347_v46, %v6004_v20 }
  0xfe   :  { %v403_v52 = vmul.f32 %v6009_v22, %v6009_v22 }
 0x100   :  { %v245_v59 = vpop.f32.mrf.mxu0 }
 0x101   :  { %v294_v0 = vpop.f32.mrf.mxu1  ;;  %v246_v12 = vadd.f32 %v245_v59, %v5858_v13  ;;  %v399_v59 = vmul.f32 %v5990_v63, %v5990_v63 }
 0x102   :  { %v295_v7 = vadd.f32 %v294_v0, %v5860_v14  ;;  %v400_v0 = vmul.f32 %v5994_v5, %v5994_v5 }
 0x103   :  { %v6015_v35 = vmax.f32 %v246_v12, 0.0  ;;  %v441_v51 = vadd.f32 %v440_v21, %v399_v59 }
 0x104   :  { %v6021_v42 = vmax.f32 %v295_v7, 0.0 }
 0x105   :  { %v404_v55 = vmul.f32 %v6015_v35, %v6015_v35  ;;  %v442_v61 = vadd.f32 %v441_v51, %v401_v41  ;;  %v349_v2 = vadd.f32 %v348_v11, %v6015_v35 }
 0x106   :  { %v405_v62 = vmul.f32 %v6021_v42, %v6021_v42 }
 0x107   :  { %v443_v17 = vadd.f32 %v442_v61, %v403_v52 }
 0x108   :  { %v247_v45 = vpop.f32.mrf.mxu0 }
 0x109   :  { %v296_v10 = vpop.f32.mrf.mxu1  ;;  %v248_v32 = vadd.f32 %v247_v45, %v5858_v13  ;;  %v420_v45 = vadd.f32 %v419_v18, %v398_v19 }
 0x10a   :  { %v297_v33 = vadd.f32 %v296_v10, %v5860_v14  ;;  %v368_v10 = vadd.f32 %v367_v39, %v5999_v6 }
 0x10b   :  { %v6027_v50 = vmax.f32 %v248_v32, 0.0  ;;  %v421_v54 = vadd.f32 %v420_v45, %v400_v0 }
 0x10c   :  { %v6032_v53 = vmax.f32 %v297_v33, 0.0  ;;  %v369_v15 = vadd.f32 %v368_v10, %v6009_v22 }
 0x10d   :  { %v422_v1 = vadd.f32 %v421_v54, %v402_v49  ;;  %v406_v12 = vmul.f32 %v6027_v50, %v6027_v50  ;;  %v350_v32 = vadd.f32 %v349_v2, %v6027_v50 }
 0x10e   :  { %v370_v29 = vadd.f32 %v369_v15, %v6021_v42  ;;  %v407_v7 = vmul.f32 %v6032_v53, %v6032_v53 }
 0x10f   :  { %v423_v19 = vadd.f32 %v422_v1, %v404_v55 }
 0x110   :  { %v250_v8 = vpop.f32.mrf.mxu0  ;;  %v371_v34 = vadd.f32 %v370_v29, %v6032_v53 }
 0x111   :  { %v251_v36 = vadd.f32 %v250_v8, %v5858_v13  ;;  %v299_v9 = vpop.f32.mrf.mxu1  ;;  %v444_v8 = vadd.f32 %v443_v17, %v405_v62 }
 0x112   :  { %v300_v44 = vadd.f32 %v299_v9, %v5860_v14  ;;  %v424_v9 = vadd.f32 %v423_v19, %v406_v12 }
 0x113   :  { %v6037_v56 = vmax.f32 %v251_v36, 0.0 }
 0x114   :  { %v6042_v16 = vmax.f32 %v300_v44, 0.0  ;;  %v445_v44 = vadd.f32 %v444_v8, %v407_v7 }
 0x115   :  { %v408_v21 = vmul.f32 %v6037_v56, %v6037_v56  ;;  %v351_v39 = vadd.f32 %v350_v32, %v6037_v56 }
 0x116   :  { %v409_v0 = vmul.f32 %v6042_v16, %v6042_v16  ;;  %v372_v45 = vadd.f32 %v371_v34, %v6042_v16 }
 0x118   :  { %v252_v18 = vpop.f32.mrf.mxu0  ;;  %v446_v10 = vadd.f32 %v445_v44, %v409_v0 }
 0x119   :  { %v253_v59 = vadd.f32 %v252_v18, %v5858_v13  ;;  %v301_v33 = vpop.f32.mrf.mxu1  ;;  %v425_v13 = vadd.f32 %v424_v9, %v408_v21 }
 0x11a   :  { %v302_v36 = vadd.f32 %v301_v33, %v5860_v14 }
 0x11b   :  { %v6059_v41 = vmax.f32 %v253_v59, 0.0 }
 0x11c   :  { %v6062_v46 = vmax.f32 %v302_v36, 0.0 }
 0x11d   :  { %v352_v49 = vadd.f32 %v351_v39, %v6059_v41  ;;  %v410_v51 = vmul.f32 %v6059_v41, %v6059_v41 }
 0x11e   :  { %v373_v52 = vadd.f32 %v372_v45, %v6062_v46  ;;  %v411_v14 = vmul.f32 %v6062_v46, %v6062_v46 }
 0x11f   :  { %v353_v54 = vrot.slane %v352_v49, 4  ;;  %v426_v11 = vadd.f32 %v425_v13, %v410_v51 }
 0x120   :  { %v374_v55 = vrot.slane %v373_v52, 4  ;;  %v447_v61 = vadd.f32 %v446_v10, %v411_v14 }
 0x121   :  { %v354_v15 = vadd.f32 %v353_v54, %v352_v49  ;;  %v427_v62 = vrot.slane %v426_v11, 4 }
 0x122   :  { %v375_v1 = vadd.f32 %v374_v55, %v373_v52  ;;  %v448_v2 = vrot.slane %v447_v61, 4 }
 0x123   :  { %v355_v12 = vrot.slane %v354_v15, 2  ;;  %v428_v17 = vadd.f32 %v427_v62, %v426_v11 }
 0x124   :  { %v376_v29 = vrot.slane %v375_v1, 2  ;;  %v449_v7 = vadd.f32 %v448_v2, %v447_v61 }
 0x125   :  { %v356_v18 = vadd.f32 %v355_v12, %v354_v15  ;;  %v429_v19 = vrot.slane %v428_v17, 2 }
 0x126   :  { %v377_v32 = vadd.f32 %v376_v29, %v375_v1  ;;  %v450_v21 = vrot.slane %v449_v7, 2 }
 0x127   :  { %v357_v59 = vrot.slane %v356_v18, 1  ;;  %v430_v33 = vadd.f32 %v429_v19, %v428_v17 }
 0x128   :  { %v378_v8 = vrot.slane %v377_v32, 1  ;;  %v451_v34 = vadd.f32 %v450_v21, %v449_v7 }
 0x129   :  { %v358_v0 = vadd.f32 %v357_v59, %v356_v18  ;;  %v431_v36 = vrot.slane %v430_v33, 1 }
 0x12a   :  { %v379_v9 = vadd.f32 %v378_v8, %v377_v32  ;;  %v452_v39 = vrot.slane %v451_v34, 1 }
 0x12b   :  { %v432_v44 = vadd.f32 %v431_v36, %v430_v33  ;;  %v454_v45 = vmul.f32 0.0078125, %v358_v0 }
 0x12c   :  { %v453_v13 = vadd.f32 %v452_v39, %v451_v34  ;;  %v455_v49 = vmul.f32 0.0078125, %v379_v9  ;;  %v336_v34 = vld [vmem:[%s8435_s3] sm:$0x3] }
 0x12d   :  { %v456_v51 = vmul.f32 0.0078125, %v432_v44  ;;  %v458_v10 = vmul.f32 %v454_v45, %v454_v45 }
 0x12e   :  { %v457_v52 = vmul.f32 0.0078125, %v453_v13  ;;  %v459_v14 = vmul.f32 %v455_v49, %v455_v49 }
 0x12f   :  { %v460_v54 = vsub.f32 %v456_v51, %v458_v10  ;;  %v337_v10 = vld [vmem:[%s8436_s4] sm:$0x3] }
 0x130   :  { %v461_v11 = vsub.f32 %v457_v52, %v459_v14 }
 0x131   :  { %v462_v55 = vmax.f32 %v460_v54, 0.0 }
 0x132   :  { %v463_v61 = vmax.f32 %v461_v11, 0.0 }
 0x133   :  { %v464_v15 = vadd.f32 1e-05, %v462_v55 }
 0x134   :  { %v465_v62 = vadd.f32 1e-05, %v463_v61 }
 0x135   :  { %5633 = vrsqrt.f32 %v464_v15  ;;  %vm472_vm4 = vweird.f32 %v464_v15 }
 0x136   :  { %5635 = vrsqrt.f32 %v465_v62  ;;  %vm482_vm2 = vweird.f32 %v465_v62 }
 0x13b   :  { %v5634_v1 = vpop.eup %5633 }
 0x13c   :  { %v5636_v2 = vpop.eup %5635  ;;  %v467_v12 = vmul.f32 %v5634_v1, %v464_v15  ;;  %vm473_vm1 = vweird.f32 %v5634_v1 }
 0x13d   :  { %v477_v17 = vmul.f32 %v5636_v2, %v465_v62  ;;  %vm483_vm0 = vweird.f32 %v5636_v2  ;;  %vm474_vm6 = vmor %vm472_vm4, %vm473_vm1  ;;  %vm1271_vm1 = vsmask.f32 6418 }
 0x13e   :  { %v468_v29 = vmul.f32 %v5634_v1, %v467_v12  ;;  %vm484_vm3 = vmor %vm482_vm2, %vm483_vm0  ;;  %vm1270_vm0 = vcmask 1046532  }
 0x13f   :  { %v478_v7 = vmul.f32 %v5636_v2, %v477_v17  ;;  %vm1269_vm2 = vmand %vm1267_vm14, %vm1268_vm15 }
 0x140   :  { %v469_v18 = vmul.f32 0.5, %v468_v29 }
 0x141   :  { %v479_v19 = vmul.f32 0.5, %v478_v7 }
 0x142   :  { %v470_v32 = vsub.f32 1.5, %v469_v18 }
 0x143   :  { %v480_v21 = vsub.f32 1.5, %v479_v19 }
 0x144   :  { %v471_v59 = vmul.f32 %v5634_v1, %v470_v32 }
 0x145   :  { %v481_v33 = vmul.f32 %v5636_v2, %v480_v21 }
 0x146   :  { %v475_v36 = vsel %vm474_vm6, %v5634_v1, %v471_v59  ;;  %vm1611_vm6 = vmor %vm489_vm5, %vm1137_vm11 }
 0x147   :  { %v485_v8 = vsel %vm484_vm3, %v5636_v2, %v481_v33  ;;  %vm1272_vm3 = vmand %vm1270_vm0, %vm1271_vm1  ;;  %vm1614_vm1 = vcmask 1046534  }
 0x148   :  { %v488_v0 = vrot.slane %v485_v8, 7  ;;  %vm6835_vm4 = vmor %vm1272_vm3, %vm1269_vm2 }
 0x14a   :  { %v490_v9 = vsel %vm489_vm5, %v475_v36, %v488_v0 }
 0x14b   :  { %v492_v39 = vmul.f32 %v490_v9, %v336_v34 }
 0x14d   :  { %v494_v44 = vperm.slane %v492_v39, 0  ;;  %v495_v13 = vperm.slane %v492_v39, 1 }
 0x14f   :  { %v499_v51 = vmul.f32 %v495_v13, %v455_v49  ;;  %v498_v52 = vmul.f32 %v494_v44, %v454_v45  ;;  %v506_v54 = vmul.f32 %v494_v44, %v5872_v23  ;;  %v507_v11 = vmul.f32 %v495_v13, %v5879_v27 }
 0x150   :  { %v508_v61 = vmul.f32 %v494_v44, %v5874_v24  ;;  %v509_v15 = vmul.f32 %v495_v13, %v5876_v25  ;;  %v510_v62 = vmul.f32 %v494_v44, %v5884_v30  ;;  %v511_v49 = vmul.f32 %v495_v13, %v5886_v31 }
 0x151   :  { %v502_v14 = vrot.slane %v499_v51, 7  ;;  %v512_v2 = vmul.f32 %v494_v44, %v5898_v38  ;;  %v513_v45 = vmul.f32 %v495_v13, %v5902_v40  ;;  %v514_v12 = vmul.f32 %v494_v44, %v5914_v47 }
 0x152   :  { %v515_v23 = vmul.f32 %v495_v13, %v5916_v48  ;;  %v516_v27 = vmul.f32 %v494_v44, %v5926_v57  ;;  %v517_v17 = vmul.f32 %v495_v13, %v5928_v58  ;;  %v518_v24 = vmul.f32 %v494_v44, %v5936_v3 }
 0x153   :  { %v503_v55 = vsel %vm489_vm5, %v498_v52, %v502_v14  ;;  %v519_v25 = vmul.f32 %v495_v13, %v5938_v4  ;;  %v520_v30 = vmul.f32 %v494_v44, %v5952_v26  ;;  %v521_v31 = vmul.f32 %v495_v13, %v5954_v28 }
 0x154   :  { %v505_v1 = vsub.f32 %v337_v10, %v503_v55  ;;  %v522_v38 = vmul.f32 %v494_v44, %v5962_v37  ;;  %v523_v40 = vmul.f32 %v495_v13, %v5966_v43  ;;  %v524_v47 = vmul.f32 %v494_v44, %v5983_v60 }
 0x155   :  { %v525_v48 = vmul.f32 %v495_v13, %v5990_v63  ;;  %v526_v57 = vmul.f32 %v494_v44, %v5994_v5  ;;  %v527_v58 = vmul.f32 %v495_v13, %v5999_v6  ;;  %v528_v4 = vmul.f32 %v494_v44, %v6004_v20 }
 0x156   :  { %v539_v29 = vperm.slane %v505_v1, 0  ;;  %v540_v3 = vperm.slane %v505_v1, 1  ;;  %v529_v26 = vmul.f32 %v495_v13, %v6009_v22  ;;  %v530_v28 = vmul.f32 %v494_v44, %v6015_v35 }
 0x157   :  { %v531_v37 = vmul.f32 %v495_v13, %v6021_v42  ;;  %v532_v43 = vmul.f32 %v494_v44, %v6027_v50  ;;  %v533_v60 = vmul.f32 %v495_v13, %v6032_v53  ;;  %v534_v63 = vmul.f32 %v494_v44, %v6037_v56 }
 0x158   :  { %v535_v5 = vmul.f32 %v495_v13, %v6042_v16  ;;  %v536_v6 = vmul.f32 %v494_v44, %v6059_v41  ;;  %v537_v7 = vmul.f32 %v495_v13, %v6062_v46  ;;  %v543_v18 = vadd.f32 %v539_v29, %v506_v54 }
 0x159   :  { %v544_v20 = vadd.f32 %v540_v3, %v507_v11  ;;  %v545_v19 = vadd.f32 %v539_v29, %v508_v61  ;;  %v546_v22 = vadd.f32 %v540_v3, %v509_v15  ;;  %v547_v32 = vadd.f32 %v539_v29, %v510_v62 }
 0x15a   :  { %v548_v35 = vadd.f32 %v540_v3, %v511_v49  ;;  %v549_v21 = vadd.f32 %v539_v29, %v512_v2  ;;  %v550_v42 = vadd.f32 %v540_v3, %v513_v45  ;;  %v551_v59 = vadd.f32 %v539_v29, %v514_v12 }
 0x15b   :  { %v552_v50 = vadd.f32 %v540_v3, %v515_v23  ;;  %v553_v53 = vadd.f32 %v539_v29, %v516_v27  ;;  %v554_v56 = vadd.f32 %v540_v3, %v517_v17  ;;  %v555_v33 = vadd.f32 %v539_v29, %v518_v24 }
 0x15c   :  { %v556_v16 = vadd.f32 %v540_v3, %v519_v25  ;;  %v557_v41 = vadd.f32 %v539_v29, %v520_v30  ;;  %v558_v8 = vadd.f32 %v540_v3, %v521_v31  ;;  %v559_v46 = vadd.f32 %v539_v29, %v522_v38 }
 0x15d   :  { %v560_v34 = vadd.f32 %v540_v3, %v523_v40  ;;  %v561_v0 = vadd.f32 %v539_v29, %v524_v47  ;;  %v562_v36 = vadd.f32 %v540_v3, %v525_v48  ;;  %v563_v9 = vadd.f32 %v539_v29, %v526_v57 }
 0x15e   :  { %v564_v39 = vadd.f32 %v540_v3, %v527_v58  ;;  %v565_v44 = vadd.f32 %v539_v29, %v528_v4  ;;  %v566_v13 = vadd.f32 %v540_v3, %v529_v26  ;;  %v568_v51 = vadd.f32 %v540_v3, %v531_v37 }
 0x15f   :  { %v570_v10 = vadd.f32 %v540_v3, %v533_v60  ;;  %v572_v52 = vadd.f32 %v540_v3, %v535_v5  ;;  %v574_v14 = vadd.f32 %v540_v3, %v537_v7  ;;  %v576_v54 = vmax.f32 %v544_v20, %v546_v22 }
 0x160   :  { %v578_v11 = vmax.f32 %v548_v35, %v550_v42  ;;  %v567_v55 = vadd.f32 %v539_v29, %v530_v28  ;;  %v569_v61 = vadd.f32 %v539_v29, %v532_v43  ;;  %v571_v15 = vadd.f32 %v539_v29, %v534_v63 }
 0x161   :  { %v580_v62 = vmax.f32 %v552_v50, %v554_v56  ;;  %v573_v1 = vadd.f32 %v539_v29, %v536_v6  ;;  %v575_v49 = vmax.f32 %v543_v18, %v545_v19  ;;  %v577_v2 = vmax.f32 %v547_v32, %v549_v21 }
 0x162   :  { %v582_v45 = vmax.f32 %v556_v16, %v558_v8  ;;  %v579_v12 = vmax.f32 %v551_v59, %v553_v53  ;;  %v584_v23 = vmax.f32 %v560_v34, %v562_v36  ;;  %v586_v27 = vmax.f32 %v564_v39, %v566_v13 }
 0x163   :  { %v588_v17 = vmax.f32 %v568_v51, %v570_v10  ;;  %v581_v24 = vmax.f32 %v555_v33, %v557_v41  ;;  %v590_v25 = vmax.f32 %v572_v52, %v574_v14  ;;  %v607_v30 = vrot.slane %v576_v54, 6 }
 0x164   :  { %v608_v31 = vrot.slane %v578_v11, 6  ;;  %v583_v38 = vmax.f32 %v559_v46, %v561_v0  ;;  %v585_v40 = vmax.f32 %v563_v9, %v565_v44  ;;  %v587_v47 = vmax.f32 %v567_v55, %v569_v61 }
 0x165   :  { %v609_v48 = vrot.slane %v580_v62, 6  ;;  %v589_v57 = vmax.f32 %v571_v15, %v573_v1  ;;  %v610_v58 = vrot.slane %v582_v45, 6  ;;  %v6111_v3 = vsel %vm617_vm7, %v575_v49, %v607_v30 }
 0x166   :  { %v6114_v29 = vsel %vm620_vm8, %v575_v49, %v607_v30  ;;  %v611_v4 = vrot.slane %v584_v23, 6  ;;  %v612_v26 = vrot.slane %v586_v27, 6  ;;  %v613_v28 = vrot.slane %v588_v17, 6 }
 0x167   :  { %v6117_v37 = vsel %vm623_vm9, %v607_v30, %v575_v49  ;;  %v614_v43 = vrot.slane %v590_v25, 6  ;;  %v6120_v60 = vsel %vm615_vm10, %v575_v49, %v607_v30  ;;  %v8444_v63 = vrot.slane %v6111_v3, 2 }
 0x168   :  { %v6124_v5 = vsel %vm617_vm7, %v577_v2, %v608_v31  ;;  %v8445_v6 = vrot.slane %v6114_v29, 4  ;;  %v6128_v7 = vsel %vm620_vm8, %v577_v2, %v608_v31  ;;  %v6131_v18 = vsel %vm623_vm9, %v608_v31, %v577_v2 }
 0x169   :  { %v6134_v20 = vsel %vm617_vm7, %v579_v12, %v609_v48  ;;  %v8446_v19 = vrot.slane %v6117_v37, 6  ;;  %v6138_v22 = vsel %vm615_vm10, %v577_v2, %v608_v31  ;;  %v8447_v32 = vrot.slane %v6124_v5, 2 }
 0x16a   :  { %v6142_v35 = vsel %vm615_vm10, %v579_v12, %v609_v48  ;;  %v6145_v21 = vsel %vm620_vm8, %v579_v12, %v609_v48  ;;  %v6148_v42 = vsel %vm623_vm9, %v609_v48, %v579_v12  ;;  %v6151_v59 = vsel %vm617_vm7, %v581_v24, %v610_v58 }
 0x16b   :  { %v6154_v50 = vsel %vm620_vm8, %v581_v24, %v610_v58  ;;  %v8448_v53 = vrot.slane %v6128_v7, 4  ;;  %v8449_v56 = vrot.slane %v6131_v18, 6  ;;  %v8450_v33 = vrot.slane %v6134_v20, 2 }
 0x16c   :  { %v6160_v16 = vsel %vm623_vm9, %v610_v58, %v581_v24  ;;  %v6163_v41 = vsel %vm615_vm10, %v581_v24, %v610_v58  ;;  %v6166_v8 = vsel %vm617_vm7, %v583_v38, %v611_v4  ;;  %v6169_v46 = vsel %vm620_vm8, %v583_v38, %v611_v4 }
 0x16d   :  { %v6172_v34 = vsel %vm623_vm9, %v611_v4, %v583_v38  ;;  %v8451_v0 = vrot.slane %v6145_v21, 4  ;;  %v8452_v36 = vrot.slane %v6148_v42, 6  ;;  %v8453_v9 = vrot.slane %v6151_v59, 2 }
 0x16e   :  { %8489 = vst [vmem:[#allocation6_spill] sm:$0xff] %v6172_v34  ;;  %v8454_v39 = vrot.slane %v6154_v50, 4  ;;  %v8455_v44 = vrot.slane %v6160_v16, 6  ;;  %v6180_v13 = vsel %vm615_vm10, %v583_v38, %v611_v4  ;;  %v8456_v51 = vrot.slane %v6166_v8, 2 }
 0x16f   :  { %v8457_v10 = vrot.slane %v6169_v46, 4  ;;  %v8459_v52 = vrot.slane %v6172_v34, 6  ;;  %v6186_v14 = vsel %vm617_vm7, %v585_v40, %v612_v26  ;;  %v6189_v54 = vsel %vm620_vm8, %v585_v40, %v612_v26 }
 0x170   :  { %8490 = vst [vmem:[#allocation7_spill] sm:$0xff] %v6186_v14  ;;  %v6192_v11 = vsel %vm623_vm9, %v612_v26, %v585_v40  ;;  %v6195_v55 = vsel %vm617_vm7, %v587_v47, %v613_v28  ;;  %v6198_v61 = vsel %vm620_vm8, %v587_v47, %v613_v28  ;;  %v6201_v15 = vsel %vm623_vm9, %v613_v28, %v587_v47 }
 0x171   :  { %8491 = vst [vmem:[#allocation8_spill] sm:$0xff] %v6189_v54  ;;  %v6204_v62 = vsel %vm615_vm10, %v589_v57, %v614_v43  ;;  %v6207_v1 = vsel %vm615_vm10, %v585_v40, %v612_v26  ;;  %v6210_v49 = vsel %vm615_vm10, %v587_v47, %v613_v28  ;;  %v6213_v2 = vsel %vm617_vm7, %v589_v57, %v614_v43 }
 0x172   :  { %8492 = vst [vmem:[#allocation9_spill] sm:$0xff] %v6192_v11  ;;  %v6216_v45 = vsel %vm620_vm8, %v589_v57, %v614_v43  ;;  %v8462_v12 = vrot.slane %v6186_v14, 2  ;;  %v8464_v23 = vrot.slane %v6189_v54, 4  ;;  %v8466_v27 = vrot.slane %v6192_v11, 6  ;;  %vm6859_vm8 = vmor %vm1611_vm6, %vm1143_vm13 }
 0x173   :  { %8493 = vst [vmem:[#allocation10_spill] sm:$0xff] %v6195_v55  ;;  %v6222_v17 = vsel %vm623_vm9, %v614_v43, %v589_v57  ;;  %v8469_v24 = vrot.slane %v6195_v55, 2  ;;  %v4637_v47 = vrot.slane %v6120_v60, 9  ;;  %v4638_v48 = vrot.slane %v8444_v63, 9  ;;  %vm7053_vm2 = vmor %vm6859_vm8, %vm1614_vm1 }
 0x174   :  { %8494 = vst [vmem:[#allocation11_spill] sm:$0xff] %v6201_v15  ;;  %v4639_v57 = vrot.slane %v8445_v6, 9  ;;  %v4640_v58 = vrot.slane %v8446_v19, 9  ;;  %v4641_v4 = vrot.slane %v6138_v22, 9  ;;  %v4642_v26 = vrot.slane %v8447_v32, 9 }
 0x175   :  { %8495 = vst [vmem:[#allocation12_spill] sm:$0xff] %v6207_v1  ;;  %v4643_v28 = vrot.slane %v8448_v53, 9  ;;  %v4644_v43 = vrot.slane %v8449_v56, 9  ;;  %v4645_v40 = vrot.slane %v6142_v35, 9  ;;  %v4646_v63 = vrot.slane %v8450_v33, 9 }
 0x176   :  { %8496 = vst [vmem:[#allocation13_spill] sm:$0xff] %v6210_v49  ;;  %v4647_v6 = vrot.slane %v8451_v0, 9  ;;  %v4648_v19 = vrot.slane %v8452_v36, 9  ;;  %v4649_v38 = vrot.slane %v6163_v41, 9  ;;  %v4650_v32 = vrot.slane %v8453_v9, 9 }
 0x177   :  { %8497 = vst [vmem:[#allocation14_spill] sm:$0xff] %v6213_v2  ;;  %v4651_v53 = vrot.slane %v8454_v39, 9  ;;  %v4652_v56 = vrot.slane %v8455_v44, 9  ;;  %v4653_v31 = vrot.slane %v6180_v13, 9  ;;  %v4654_v33 = vrot.slane %v8456_v51, 9 }
 0x178   :  { %8498 = vst [vmem:[#allocation15_spill] sm:$0xff] %v6222_v17  ;;  %v4655_v0 = vrot.slane %v8457_v10, 9  ;;  %v4656_v36 = vrot.slane %v8459_v52, 9  ;;  %v4657_v30 = vrot.slane %v6207_v1, 9  ;;  %v4658_v9 = vrot.slane %v8462_v12, 9 }
 0x179   :  { %v4659_v39 = vrot.slane %v8464_v23, 9  ;;  %v4660_v44 = vrot.slane %v8466_v27, 9  ;;  %v4661_v25 = vrot.slane %v6210_v49, 9  ;;  %v4662_v51 = vrot.slane %v8469_v24, 9 }
 0x17a   :  { %v8499_v10 = vrot.slane %v6198_v61, 4  ;;  %v8500_v52 = vrot.slane %v6201_v15, 6  ;;  %v4665_v14 = vrot.slane %v6204_v62, 9  ;;  %v8501_v12 = vrot.slane %v6213_v2, 2 }
 0x17b   :  { %v8502_v23 = vrot.slane %v6216_v45, 4  ;;  %v8503_v27 = vrot.slane %v6222_v17, 6  ;;  %v6287_v55 = vmax.f32 %v6120_v60, %v4637_v47  ;;  %v8504_v24 = vrot.slane %v6111_v3, 2 }
 0x17c   :  { %v4663_v34 = vrot.slane %v8499_v10, 9  ;;  %v4664_v1 = vrot.slane %v8500_v52, 9  ;;  %v4666_v54 = vrot.slane %v8501_v12, 9  ;;  %v8505_v52 = vrot.slane %v6114_v29, 4 }
 0x17d   :  { %v4667_v11 = vrot.slane %v8502_v23, 9  ;;  %v4668_v49 = vrot.slane %v8503_v27, 9  ;;  %v6291_v10 = vmax.f32 %v8504_v24, %v4638_v48  ;;  %v8506_v2 = vrot.slane %v6117_v37, 6 }
 0x17e   :  { %v6295_v15 = vmax.f32 %v8505_v52, %v4639_v57  ;;  %v6302_v23 = vmax.f32 %v6138_v22, %v4641_v4  ;;  %v8507_v27 = vrot.slane %v6124_v5, 2  ;;  %v8509_v60 = vrot.slane %v6128_v7, 4 }
 0x17f   :  { %v6299_v12 = vmax.f32 %v8506_v2, %v4640_v58  ;;  %v8511_v24 = vrot.slane %v6131_v18, 6  ;;  %v6317_v47 = vmax.f32 %v6142_v35, %v4645_v40  ;;  %v8514_v37 = vrot.slane %v6134_v20, 2 }
 0x180   :  { %v6306_v17 = vmax.f32 %v8507_v27, %v4642_v26  ;;  %v6310_v3 = vmax.f32 %v8509_v60, %v4643_v28  ;;  %v8515_v22 = vrot.slane %v6145_v21, 4  ;;  %v8516_v48 = vrot.slane %v6148_v42, 6 }
 0x181   :  { %v6314_v29 = vmax.f32 %v8511_v24, %v4644_v43  ;;  %8513 = vst [vmem:[#allocation19_spill] sm:$0xff] %v6317_v47  ;;  %v6321_v2 = vmax.f32 %v8514_v37, %v4646_v63  ;;  %v6332_v57 = vmax.f32 %v6163_v41, %v4649_v38  ;;  %v8517_v18 = vrot.slane %v6151_v59, 2 }
 0x182   :  { %8508 = vst [vmem:[#allocation16_spill] sm:$0xff] %v6306_v17  ;;  %v6325_v5 = vmax.f32 %v8515_v22, %v4647_v6  ;;  %v6329_v7 = vmax.f32 %v8516_v48, %v4648_v19  ;;  %v8518_v35 = vrot.slane %v6154_v50, 4  ;;  %v8519_v63 = vrot.slane %v6160_v16, 6 }
 0x183   :  { %8510 = vst [vmem:[#allocation17_spill] sm:$0xff] %v6310_v3  ;;  %v6336_v58 = vmax.f32 %v8517_v18, %v4650_v32  ;;  %v6347_v6 = vmax.f32 %v6180_v13, %v4653_v31  ;;  %v8520_v19 = vrot.slane %v6166_v8, 2  ;;  %v8521_v41 = vrot.slane %v6169_v46, 4  ;;  %v8522_v32 = vld [vmem:[#allocation6_spill] sm:$0xff]  ;;  %v8527_v13 = vld [vmem:[#allocation8_spill] sm:$0xff] }
 0x184   :  { %8512 = vst [vmem:[#allocation18_spill] sm:$0xff] %v6314_v29  ;;  %v6340_v20 = vmax.f32 %v8518_v35, %v4651_v53  ;;  %v6344_v21 = vmax.f32 %v8519_v63, %v4652_v56  ;;  %v8523_v38 = vrot.slane %v8522_v32, 6  ;;  %v8524_v53 = vld [vmem:[#allocation12_spill] sm:$0xff]  ;;  %v8525_v56 = vld [vmem:[#allocation7_spill] sm:$0xff]  ;;  %v8528_v31 = vrot.slane %v8527_v13, 4 }
 0x185   :  { %v6351_v42 = vmax.f32 %v8520_v19, %v4654_v33  ;;  %v6355_v59 = vmax.f32 %v8521_v41, %v4655_v0  ;;  %v6362_v40 = vmax.f32 %v8524_v53, %v4657_v30  ;;  %v8526_v16 = vrot.slane %v8525_v56, 2  ;;  %v8529_v33 = vld [vmem:[#allocation9_spill] sm:$0xff] }
 0x186   :  { %v6359_v50 = vmax.f32 %v8523_v38, %v4656_v36  ;;  %v6370_v8 = vmax.f32 %v8528_v31, %v4659_v39  ;;  %v8530_v26 = vrot.slane %v8529_v33, 6  ;;  %v8531_v0 = vld [vmem:[#allocation13_spill] sm:$0xff]  ;;  %v8532_v36 = vld [vmem:[#allocation10_spill] sm:$0xff]  ;;  %v8534_v30 = vrot.slane %v6198_v61, 4 }
 0x187   :  { %v6366_v4 = vmax.f32 %v8526_v16, %v4658_v9  ;;  %v6377_v28 = vmax.f32 %v8531_v0, %v4661_v25  ;;  %v8533_v43 = vrot.slane %v8532_v36, 2  ;;  %v8535_v9 = vld [vmem:[#allocation11_spill] sm:$0xff]  ;;  %v6392_v39 = vmax.f32 %v6204_v62, %v4665_v14 }
 0x188   :  { %v6374_v46 = vmax.f32 %v8530_v26, %v4660_v44  ;;  %v6385_v27 = vmax.f32 %v8534_v30, %v4663_v34  ;;  %v8536_v60 = vrot.slane %v8535_v9, 6  ;;  %v8537_v44 = vld [vmem:[#allocation14_spill] sm:$0xff]  ;;  %v8539_v25 = vrot.slane %v6216_v45, 4 }
 0x189   :  { %v6381_v52 = vmax.f32 %v8533_v43, %v4662_v51  ;;  %v8538_v37 = vrot.slane %v8537_v44, 2  ;;  %v8540_v51 = vld [vmem:[#allocation15_spill] sm:$0xff]  ;;  %v5665_v34 = vmov 0   ;;  %v880_v14 = vperm.slane %v6287_v55, 2 }
 0x18a   :  { %v6389_v24 = vmax.f32 %v8536_v60, %v4664_v1  ;;  %v6400_v48 = vmax.f32 %v8539_v25, %v4667_v11  ;;  %v8541_v18 = vrot.slane %v8540_v51, 6  ;;  %835 = vst [vmem:[#allocation2 + $0x30] sm:$0x77] %v5665_v34  ;;  %v879_v1 = vperm.slane %v6287_v55, 0 }
 0x18b   :  { %v6396_v22 = vmax.f32 %v8538_v37, %v4666_v54  ;;  %836 = vst [vmem:[#allocation2] sm:$0x77] %v5665_v34  ;;  %v881_v62 = vperm.slane %v6291_v10, 0  ;;  %v896_v31 = vperm.slane %v6317_v47, 2  ;;  %v897_v33 = vperm.slane %v6321_v2, 0 }
 0x18c   :  { %v6404_v61 = vmax.f32 %v8541_v18, %v4668_v49  ;;  %837 = vst [vmem:[#allocation2 + $0x58] sm:$0x77] %v5665_v34  ;;  %v898_v26 = vperm.slane %v6321_v2, 2  ;;  %v899_v0 = vperm.slane %v6325_v5, 0  ;;  %v900_v36 = vperm.slane %v6325_v5, 2 }
 0x18d   :  { %838 = vst [vmem:[#allocation2 + $0x18] sm:$0x77] %v5665_v34  ;;  %v901_v43 = vperm.slane %v6329_v7, 0  ;;  %v902_v30 = vperm.slane %v6329_v7, 2  ;;  %v903_v9 = vperm.slane %v6332_v57, 0  ;;  %v904_v60 = vperm.slane %v6332_v57, 2 }
 0x18e   :  { %839 = vst [vmem:[#allocation2 + $0x50] sm:$0x77] %v5665_v34  ;;  %v905_v44 = vperm.slane %v6336_v58, 0  ;;  %v906_v37 = vperm.slane %v6336_v58, 2  ;;  %v907_v2 = vperm.slane %v6340_v20, 0  ;;  %v908_v25 = vperm.slane %v6340_v20, 2 }
 0x18f   :  { %840 = vst [vmem:[#allocation2 + $0x20] sm:$0x77] %v5665_v34  ;;  %v909_v5 = vperm.slane %v6344_v21, 0  ;;  %v910_v51 = vperm.slane %v6344_v21, 2  ;;  %v911_v7 = vperm.slane %v6347_v6, 0  ;;  %v912_v18 = vperm.slane %v6347_v6, 2 }
 0x190   :  { %841 = vst [vmem:[#allocation2 + $0x8] sm:$0x77] %v5665_v34  ;;  %v913_v57 = vperm.slane %v6351_v42, 0  ;;  %v914_v13 = vperm.slane %v6351_v42, 2  ;;  %v915_v58 = vperm.slane %v6355_v59, 0  ;;  %v916_v16 = vperm.slane %v6355_v59, 2 }
 0x191   :  { %842 = vst [vmem:[#allocation2 + $0x38] sm:$0x77] %v5665_v34  ;;  %v917_v20 = vperm.slane %v6359_v50, 0  ;;  %v918_v56 = vperm.slane %v6359_v50, 2  ;;  %v919_v21 = vperm.slane %v6362_v40, 0  ;;  %v920_v53 = vperm.slane %v6362_v40, 2 }
 0x192   :  { %843 = vst [vmem:[#allocation2 + $0x28] sm:$0x77] %v5665_v34  ;;  %v921_v6 = vperm.slane %v6366_v4, 0  ;;  %v922_v38 = vperm.slane %v6366_v4, 2  ;;  %v923_v42 = vperm.slane %v6370_v8, 0  ;;  %v924_v32 = vperm.slane %v6370_v8, 2 }
 0x193   :  { %844 = vst [vmem:[#allocation2 + $0x48] sm:$0x77] %v5665_v34  ;;  %v925_v41 = vperm.slane %v6374_v46, 0  ;;  %v926_v59 = vperm.slane %v6374_v46, 2  ;;  %v927_v19 = vperm.slane %v6377_v28, 0  ;;  %v928_v50 = vperm.slane %v6377_v28, 2 }
 0x194   :  { %845 = vst [vmem:[#allocation2 + $0x10] sm:$0x77] %v5665_v34  ;;  %v930_v40 = vperm.slane %v6381_v52, 2  ;;  %v931_v63 = vperm.slane %v6385_v27, 0  ;;  %v932_v4 = vperm.slane %v6385_v27, 2  ;;  %v933_v49 = vperm.slane %v6389_v24, 0 }
 0x195   :  { %846 = vst [vmem:[#allocation2 + $0x40] sm:$0x77] %v5665_v34  ;;  %v929_v34 = vperm.slane %v6381_v52, 0  ;;  %v934_v8 = vperm.slane %v6389_v24, 2  ;;  %v935_v45 = vperm.slane %v6392_v39, 0  ;;  %v936_v46 = vperm.slane %v6392_v39, 2 }
 0x196   :  { %v937_v11 = vperm.slane %v6396_v22, 0  ;;  %v938_v28 = vperm.slane %v6396_v22, 2  ;;  %v939_v35 = vperm.slane %v6400_v48, 0  ;;  %v940_v52 = vperm.slane %v6400_v48, 2 }
 0x197   :  { %v941_v54 = vperm.slane %v6404_v61, 0  ;;  %v942_v27 = vperm.slane %v6404_v61, 2  ;;  %v6474_v24 = vpack.c.bf16 %v880_v14, %v879_v1  ;;  %v8542_v39 = vperm.slane %v6291_v10, 2  ;;  %v8553_v10 = vld [vmem:[#allocation16_spill] sm:$0xff] }
 0x198   :  { %v8544_v22 = vperm.slane %v6295_v15, 0  ;;  %v8545_v48 = vperm.slane %v6295_v15, 2  ;;  %v8547_v61 = vperm.slane %v6299_v12, 0  ;;  %v8548_v3 = vperm.slane %v6299_v12, 2  ;;  %v8556_v15 = vld [vmem:[#allocation17_spill] sm:$0xff]  ;;  %v8559_v12 = vld [vmem:[#allocation18_spill] sm:$0xff] }
 0x199   :  { %v6480_v47 = vpack.c.bf16 %v8542_v39, %v881_v62  ;;  %v8550_v55 = vperm.slane %v6302_v23, 0  ;;  %v8551_v1 = vperm.slane %v6302_v23, 2  ;;  %v8554_v62 = vperm.slane %v8553_v10, 0  ;;  %v8562_v23 = vld [vmem:[#allocation19_spill] sm:$0xff] }
 0x19a   :  { %v6486_v29 = vpack.c.bf16 %v8545_v48, %v8544_v22  ;;  %v6492_v17 = vpack.c.bf16 %v8548_v3, %v8547_v61  ;;  %v8555_v39 = vperm.slane %v8553_v10, 2  ;;  %v8557_v22 = vperm.slane %v8556_v15, 0 }
 0x19b   :  { %8543 = vst [vmem:[#allocation6_spill] sm:$0xff] %v6480_v47  ;;  %v6498_v14 = vpack.c.bf16 %v8551_v1, %v8550_v55  ;;  %v8558_v48 = vperm.slane %v8556_v15, 2  ;;  %v8560_v3 = vperm.slane %v8559_v12, 0  ;;  %v8561_v61 = vperm.slane %v8559_v12, 2 }
 0x19c   :  { %8546 = vst [vmem:[#allocation12_spill] sm:$0xff] %v6486_v29  ;;  %v6504_v47 = vpack.c.bf16 %v8555_v39, %v8554_v62  ;;  %v8563_v55 = vperm.slane %v8562_v23, 0  ;;  %v6524_v10 = vpack.c.bf16 %v900_v36, %v899_v0  ;;  %v6526_v62 = vpack.c.bf16 %v902_v30, %v901_v43 }
 0x19d   :  { %8549 = vst [vmem:[#allocation7_spill] sm:$0xff] %v6492_v17  ;;  %v6510_v29 = vpack.c.bf16 %v8558_v48, %v8557_v22  ;;  %v6516_v17 = vpack.c.bf16 %v8561_v61, %v8560_v3  ;;  %v6528_v39 = vpack.c.bf16 %v904_v60, %v903_v9  ;;  %v6530_v15 = vpack.c.bf16 %v906_v37, %v905_v44 }
 0x19e   :  { %8552 = vst [vmem:[#allocation8_spill] sm:$0xff] %v6498_v14  ;;  %v6520_v1 = vpack.c.bf16 %v896_v31, %v8563_v55  ;;  %v6522_v14 = vpack.c.bf16 %v898_v26, %v897_v33  ;;  %v6532_v22 = vpack.c.bf16 %v908_v25, %v907_v2  ;;  %v6534_v48 = vpack.c.bf16 %v910_v51, %v909_v5 }
 0x19f   :  { %v6536_v12 = vpack.c.bf16 %v912_v18, %v911_v7  ;;  %v6538_v3 = vpack.c.bf16 %v914_v13, %v913_v57  ;;  %v6540_v31 = vpack.c.bf16 %v916_v16, %v915_v58  ;;  %v6542_v33 = vpack.c.bf16 %v918_v56, %v917_v20 }
 0x1a0   :  { %v6544_v26 = vpack.c.bf16 %v920_v53, %v919_v21  ;;  %v6546_v0 = vpack.c.bf16 %v922_v38, %v921_v6  ;;  %v6548_v36 = vpack.c.bf16 %v924_v32, %v923_v42  ;;  %v6550_v43 = vpack.c.bf16 %v926_v59, %v925_v41 }
 0x1a1   :  { %v6552_v30 = vpack.c.bf16 %v928_v50, %v927_v19  ;;  %v6554_v9 = vpack.c.bf16 %v930_v40, %v929_v34  ;;  %v6556_v60 = vpack.c.bf16 %v932_v4, %v931_v63  ;;  %v6558_v13 = vpack.c.bf16 %v934_v8, %v933_v49 }
 0x1a2   :  { %v6560_v16 = vpack.c.bf16 %v936_v46, %v935_v45  ;;  %v6562_v56 = vpack.c.bf16 %v938_v28, %v937_v11  ;;  %v6564_v53 = vpack.c.bf16 %v940_v52, %v939_v35  ;;  %v6566_v38 = vpack.c.bf16 %v942_v27, %v941_v54  ;;  %v8564_v19 = vld [vmem:[#allocation6_spill] sm:$0xff] }
 0x1a3   :  { %v1071_v32 = vunpack.c.l.b16 %v6474_v24  ;;  %v1072_v41 = vunpack.c.h.b16 %v6474_v24  ;;  %v1073_v44 = vunpack.c.l.b16 %v8564_v19  ;;  %v1074_v37 = vunpack.c.h.b16 %v8564_v19  ;;  %v8565_v63 = vld [vmem:[#allocation12_spill] sm:$0xff] }
 0x1a4   :  { %v1075_v2 = vunpack.c.l.b16 %v8565_v63  ;;  %v1076_v49 = vunpack.c.h.b16 %v8565_v63  ;;  %v8566_v45 = vld [vmem:[#allocation7_spill] sm:$0xff]  ;;  %v1081_v51 = vunpack.c.l.b16 %v6504_v47  ;;  %v1082_v7 = vunpack.c.h.b16 %v6504_v47 }
 0x1a5   :  { %v1077_v25 = vunpack.c.l.b16 %v8566_v45  ;;  %v1078_v11 = vunpack.c.h.b16 %v8566_v45  ;;  %v8567_v35 = vld [vmem:[#allocation8_spill] sm:$0xff]  ;;  %v1083_v18 = vunpack.c.l.b16 %v6510_v29  ;;  %v1084_v57 = vunpack.c.h.b16 %v6510_v29 }
 0x1a6   :  { %v1079_v5 = vunpack.c.l.b16 %v8567_v35  ;;  %v1080_v54 = vunpack.c.h.b16 %v8567_v35  ;;  %v1085_v58 = vunpack.c.l.b16 %v6516_v17  ;;  %v1087_v21 = vunpack.c.l.b16 %v6520_v1 }
 0x1a7   :  { %v1088_v6 = vunpack.c.h.b16 %v6520_v1  ;;  %v1089_v42 = vunpack.c.l.b16 %v6522_v14  ;;  %v1090_v59 = vunpack.c.h.b16 %v6522_v14  ;;  %v1091_v50 = vunpack.c.l.b16 %v6524_v10 }
 0x1a8   :  { %v1092_v34 = vunpack.c.h.b16 %v6524_v10  ;;  %v1121_v23 = vunpack.c.l.b16 %v6554_v9  ;;  %v1127_v28 = vunpack.c.l.b16 %v6560_v16  ;;  %v1136_v20 = vrot.slane %v1073_v44, 6 }
 0x1a9   :  { %v1135_v4 = vrot.slane %v1071_v32, 7  ;;  %v1133_v8 = vunpack.c.l.b16 %v6566_v38  ;;  %v1139_v46 = vrot.slane %v1075_v2, 5  ;;  %v1146_v52 = vrot.slane %v1074_v37, 6 }
 0x1aa   :  { %v1145_v44 = vrot.slane %v1072_v41, 7  ;;  %v1152_v61 = vrot.slane %v1079_v5, 7  ;;  %v1153_v55 = vrot.slane %v1081_v51, 6  ;;  %v1134_v40 = vunpack.c.h.b16 %v6566_v38 }
 0x1ab   :  { %v1138_v27 = vsel %vm1137_vm11, %v1136_v20, %v1135_v4  ;;  %v1142_v32 = vrot.slane %v1077_v25, 4  ;;  %v1148_v2 = vrot.slane %v1076_v49, 5  ;;  %v1155_v19 = vrot.slane %v1083_v18, 5 }
 0x1ac   :  { %v1147_v37 = vsel %vm1137_vm11, %v1146_v52, %v1145_v44  ;;  %v1154_v24 = vsel %vm1137_vm11, %v1153_v55, %v1152_v61  ;;  %v1159_v41 = vrot.slane %v1080_v54, 7  ;;  %v1160_v5 = vrot.slane %v1082_v7, 6 }
 0x1ad   :  { %v1141_v51 = vsel %vm1140_vm12, %v1139_v46, %v1138_v27  ;;  %v1150_v63 = vrot.slane %v1078_v11, 4  ;;  %v1162_v49 = vrot.slane %v1084_v57, 5  ;;  %v1157_v25 = vrot.slane %v1085_v58, 4 }
 0x1ae   :  { %v1161_v18 = vsel %vm1137_vm11, %v1160_v5, %v1159_v41  ;;  %v1166_v35 = vrot.slane %v1087_v21, 7  ;;  %v1167_v47 = vrot.slane %v1089_v42, 6  ;;  %v1149_v54 = vsel %vm1140_vm12, %v1148_v2, %v1147_v37 }
 0x1af   :  { %v1156_v7 = vsel %vm1140_vm12, %v1155_v19, %v1154_v24  ;;  %v1163_v45 = vsel %vm1140_vm12, %v1162_v49, %v1161_v18  ;;  %v1169_v29 = vrot.slane %v1091_v50, 5  ;;  %v1173_v57 = vrot.slane %v1088_v6, 7 }
 0x1b0   :  { %v1168_v11 = vsel %vm1137_vm11, %v1167_v47, %v1166_v35  ;;  %v1174_v58 = vrot.slane %v1090_v59, 6  ;;  %v1176_v20 = vrot.slane %v1092_v34, 5  ;;  %v6678_v21 = vsel %vm1143_vm13, %v1142_v32, %v1141_v51 }
 0x1b1   :  { %v8568_v42 = vunpack.c.h.b16 %v6516_v17  ;;  %v1170_v46 = vsel %vm1140_vm12, %v1169_v29, %v1168_v11  ;;  %v8569_v50 = vunpack.c.l.b16 %v6530_v15  ;;  %v6686_v1 = vsel %vm1143_vm13, %v1150_v63, %v1149_v54 }
 0x1b2   :  { %v6689_v14 = vsel %vm1143_vm13, %v1157_v25, %v1156_v7  ;;  %v8570_v10 = vunpack.c.l.b16 %v6526_v62  ;;  %v1175_v59 = vsel %vm1137_vm11, %v1174_v58, %v1173_v57  ;;  %v8571_v27 = vunpack.c.l.b16 %v6528_v39 }
 0x1b3   :  { %v1164_v4 = vrot.slane %v8568_v42, 4  ;;  %v1181_v52 = vrot.slane %v8569_v50, 6  ;;  %v1177_v17 = vsel %vm1140_vm12, %v1176_v20, %v1175_v59  ;;  %v8572_v55 = vunpack.c.h.b16 %v6530_v15 }
 0x1b4   :  { %v1171_v6 = vrot.slane %v8570_v10, 4  ;;  %v1180_v61 = vrot.slane %v8571_v27, 7  ;;  %v8573_v2 = vunpack.c.h.b16 %v6526_v62  ;;  %v8574_v37 = vunpack.c.l.b16 %v6532_v22 }
 0x1b5   :  { %v6695_v34 = vsel %vm1143_vm13, %v1164_v4, %v1163_v45  ;;  %v1188_v44 = vrot.slane %v8572_v55, 6  ;;  %v8575_v41 = vunpack.c.h.b16 %v6528_v39  ;;  %v8576_v63 = vunpack.c.h.b16 %v6532_v22 }
 0x1b6   :  { %v6703_v32 = vsel %vm1143_vm13, %v1171_v6, %v1170_v46  ;;  %v1178_v19 = vrot.slane %v8573_v2, 4  ;;  %v1183_v24 = vrot.slane %v8574_v37, 5  ;;  %v1182_v51 = vsel %vm1137_vm11, %v1181_v52, %v1180_v61 }
 0x1b7   :  { %v1187_v5 = vrot.slane %v8575_v41, 7  ;;  %v1190_v49 = vrot.slane %v8576_v63, 5  ;;  %v8577_v15 = vunpack.c.l.b16 %v6536_v12  ;;  %v8578_v18 = vunpack.c.l.b16 %v6538_v3 }
 0x1b8   :  { %v6719_v62 = vsel %vm1143_vm13, %v1178_v19, %v1177_v17  ;;  %v8579_v47 = vunpack.c.l.b16 %v6534_v48  ;;  %v8580_v7 = vunpack.c.l.b16 %v6540_v31  ;;  %v8581_v29 = vunpack.c.h.b16 %v6536_v12 }
 0x1b9   :  { %v1194_v25 = vrot.slane %v8577_v15, 7  ;;  %v1195_v35 = vrot.slane %v8578_v18, 6  ;;  %v1189_v39 = vsel %vm1137_vm11, %v1188_v44, %v1187_v5  ;;  %v8582_v57 = vunpack.c.h.b16 %v6538_v3 }
 0x1ba   :  { %v1185_v54 = vrot.slane %v8579_v47, 4  ;;  %v1197_v45 = vrot.slane %v8580_v7, 5  ;;  %v1201_v11 = vrot.slane %v8581_v29, 7  ;;  %v8583_v20 = vunpack.c.h.b16 %v6540_v31 }
 0x1bb   :  { %v1196_v22 = vsel %vm1137_vm11, %v1195_v35, %v1194_v25  ;;  %v1202_v58 = vrot.slane %v8582_v57, 6  ;;  %v1184_v4 = vsel %vm1140_vm12, %v1183_v24, %v1182_v51  ;;  %v8584_v46 = vunpack.c.h.b16 %v6534_v48 }
 0x1bc   :  { %v1204_v42 = vrot.slane %v8583_v20, 5  ;;  %v8585_v52 = vunpack.c.l.b16 %v6544_v26  ;;  %v8586_v6 = vunpack.c.l.b16 %v6546_v0  ;;  %v1191_v12 = vsel %vm1140_vm12, %v1190_v49, %v1189_v39 }
 0x1bd   :  { %v1192_v50 = vrot.slane %v8584_v46, 4  ;;  %v1198_v17 = vsel %vm1140_vm12, %v1197_v45, %v1196_v22  ;;  %v1203_v3 = vsel %vm1137_vm11, %v1202_v58, %v1201_v11  ;;  %v8587_v31 = vunpack.c.l.b16 %v6548_v36 }
 0x1be   :  { %v1208_v10 = vrot.slane %v8585_v52, 7  ;;  %v1209_v59 = vrot.slane %v8586_v6, 6  ;;  %v1205_v61 = vsel %vm1140_vm12, %v1204_v42, %v1203_v3  ;;  %v8588_v55 = vunpack.c.h.b16 %v6544_v26 }
 0x1bf   :  { %v1211_v27 = vrot.slane %v8587_v31, 5  ;;  %v8589_v2 = vunpack.c.h.b16 %v6546_v0  ;;  %v8590_v37 = vunpack.c.l.b16 %v6542_v33  ;;  %v8591_v41 = vunpack.c.h.b16 %v6542_v33 }
 0x1c0   :  { %v1210_v48 = vsel %vm1137_vm11, %v1209_v59, %v1208_v10  ;;  %v1215_v44 = vrot.slane %v8588_v55, 7  ;;  %v8592_v63 = vunpack.c.h.b16 %v6548_v36  ;;  %v6759_v15 = vsel %vm1143_vm13, %v1185_v54, %v1184_v4 }
 0x1c1   :  { %v1216_v19 = vrot.slane %v8589_v2, 6  ;;  %v1199_v24 = vrot.slane %v8590_v37, 4  ;;  %v1206_v5 = vrot.slane %v8591_v41, 4  ;;  %v1212_v51 = vsel %vm1140_vm12, %v1211_v27, %v1210_v48  ;;  %v1298_v41 = vld [vmem:[#allocation2 + $0x30] sm:$0x33] }
 0x1c2   :  { %v1218_v49 = vrot.slane %v8592_v63, 5  ;;  %v8593_v26 = vunpack.c.l.b16 %v6550_v43  ;;  %v1223_v18 = vrot.slane %v1121_v23, 6  ;;  %v6767_v35 = vsel %vm1143_vm13, %v1192_v50, %v1191_v12 }
 0x1c3   :  { %v1217_v0 = vsel %vm1137_vm11, %v1216_v19, %v1215_v44  ;;  %v6770_v33 = vsel %vm1143_vm13, %v1199_v24, %v1198_v17  ;;  %v6773_v36 = vsel %vm1143_vm13, %v1206_v5, %v1205_v61  ;;  %v8594_v47 = vunpack.c.h.b16 %v6550_v43 }
 0x1c4   :  { %v1213_v25 = vrot.slane %v8593_v26, 4  ;;  %v8595_v7 = vunpack.c.l.b16 %v6552_v30  ;;  %v8596_v23 = vunpack.c.h.b16 %v6552_v30  ;;  %v8597_v29 = vunpack.c.h.b16 %v6554_v9  ;;  %v1280_v26 = vld [vmem:[#allocation2 + $0x18] sm:$0x77] }
 0x1c5   :  { %v1220_v54 = vrot.slane %v8594_v47, 4  ;;  %v1219_v57 = vsel %vm1140_vm12, %v1218_v49, %v1217_v0  ;;  %v8598_v58 = vunpack.c.l.b16 %v6556_v60  ;;  %v1236_v43 = vrot.slane %v1127_v28, 7  ;;  %v1286_v0 = vld [vmem:[#allocation2 + $0x38] sm:$0x77] }
 0x1c6   :  { %v6778_v39 = vsel %vm1143_vm13, %v1213_v25, %v1212_v51  ;;  %v1222_v45 = vrot.slane %v8595_v7, 7  ;;  %v1229_v22 = vrot.slane %v8596_v23, 7  ;;  %v1230_v11 = vrot.slane %v8597_v29, 6 }
 0x1c7   :  { %v1225_v20 = vrot.slane %v8598_v58, 5  ;;  %v8599_v42 = vunpack.c.l.b16 %v6562_v56  ;;  %v8600_v30 = vunpack.c.h.b16 %v6556_v60  ;;  %v8601_v9 = vunpack.c.l.b16 %v6564_v53 }
 0x1c8   :  { %v1224_v46 = vsel %vm1137_vm11, %v1223_v18, %v1222_v45  ;;  %v1231_v50 = vsel %vm1137_vm11, %v1230_v11, %v1229_v22  ;;  %v1241_v59 = vrot.slane %v1133_v8, 4  ;;  %v8602_v28 = vunpack.c.h.b16 %v6560_v16  ;;  %v1295_v45 = vld [vmem:[#allocation2 + $0x10] sm:$0x77]  ;;  %v5455_v11 = vld [vmem:[%s8437_s5 + $0x10] sm:$0xff] }
 0x1c9   :  { %v1237_v4 = vrot.slane %v8599_v42, 6  ;;  %v1232_v52 = vrot.slane %v8600_v30, 5  ;;  %v1239_v10 = vrot.slane %v8601_v9, 5  ;;  %v8603_v17 = vunpack.c.h.b16 %v6562_v56 }
 0x1ca   :  { %v1243_v12 = vrot.slane %v8602_v28, 7  ;;  %v1221_v31 = vsel %vm1143_vm13, %v1220_v54, %v1219_v57  ;;  %v8604_v27 = vunpack.c.l.b16 %v6558_v13  ;;  %v8605_v48 = vunpack.c.h.b16 %v6564_v53 }
 0x1cb   :  { %v1238_v6 = vsel %vm1137_vm11, %v1237_v4, %v1236_v43  ;;  %v1244_v3 = vrot.slane %v8603_v17, 6  ;;  %v1226_v44 = vsel %vm1140_vm12, %v1225_v20, %v1224_v46  ;;  %v1248_v56 = vrot.slane %v1134_v40, 4  ;;  %v1274_v40 = vld [vmem:[#allocation2] sm:$0x77]  ;;  %v1302_v43 = vld [vmem:[#allocation2 + $0x8] sm:$0x33] }
 0x1cc   :  { %v1227_v60 = vrot.slane %v8604_v27, 4  ;;  %v1240_v61 = vsel %vm1140_vm12, %v1239_v10, %v1238_v6  ;;  %v1246_v55 = vrot.slane %v8605_v48, 5  ;;  %v1233_v2 = vsel %vm1140_vm12, %v1232_v52, %v1231_v50  ;;  %v1350_v48 = vld [vmem:[#allocation2 + $0x8] sm:$0x77] }
 0x1cd   :  { %v1242_v8 = vsel %vm1143_vm13, %v1241_v59, %v1240_v61  ;;  %v1245_v16 = vsel %vm1137_vm11, %v1244_v3, %v1243_v12  ;;  %v8606_v19 = vunpack.c.h.b16 %v6558_v13  ;;  %v1250_v53 = vpack.c.b16 %v6686_v1, %v6678_v21  ;;  %v1277_v1 = vld [vmem:[#allocation2 + $0x58] sm:$0x77]  ;;  %v1346_v61 = vld [vmem:[#allocation2 + $0x30] sm:$0x77] }
 0x1ce   :  { %v1247_v24 = vsel %vm1140_vm12, %v1246_v55, %v1245_v16  ;;  %v1251_v51 = vpack.c.b16 %v6695_v34, %v6689_v14  ;;  %v1252_v38 = vpack.c.b16 %v6719_v62, %v6703_v32  ;;  %v1228_v13 = vsel %vm1143_vm13, %v1227_v60, %v1226_v44  ;;  %v1283_v32 = vld [vmem:[#allocation2 + $0x50] sm:$0x77] }
 0x1cf   :  { %v1234_v37 = vrot.slane %v8606_v19, 4  ;;  %v1249_v5 = vsel %vm1143_vm13, %v1248_v56, %v1247_v24  ;;  %v1253_v21 = vpack.c.b16 %v6767_v35, %v6759_v15  ;;  %v1314_v14 = vrot.slane %v1298_v41, 2 }
 0x1d0   :  { %v1257_v63 = vpack.c.b16 %v1249_v5, %v1242_v8  ;;  %v1254_v34 = vpack.c.b16 %v6773_v36, %v6770_v33  ;;  %v1255_v62 = vpack.c.b16 %v1221_v31, %v6778_v39  ;;  %v1275_v15 = vsel %vm6835_vm4, %v1250_v53, %v1274_v40  ;;  %v1289_v36 = vld [vmem:[#allocation2 + $0x28] sm:$0x77] }
 0x1d1   :  { %v1235_v49 = vsel %vm1143_vm13, %v1234_v37, %v1233_v2  ;;  %v1324_v18 = vsel %vm615_vm10, %v1298_v41, %v1314_v14  ;;  %v1278_v35 = vsel %vm6835_vm4, %v1251_v51, %v1277_v1  ;;  %v1281_v33 = vsel %vm6835_vm4, %v1252_v38, %v1280_v26  ;;  %1276 = vst [vmem:[#allocation2] sm:$0x77] %v1275_v15  ;;  %v1292_v39 = vld [vmem:[#allocation2 + $0x48] sm:$0x77] }
 0x1d2   :  { %v1256_v47 = vpack.c.b16 %v1235_v49, %v1228_v13  ;;  %2321 = vst [vmem:[#allocation1] ss:$4 sm:$0xff] %v1324_v18  ;;  %v1284_v54 = vsel %vm6835_vm4, %v1253_v21, %v1283_v32  ;;  %v1287_v7 = vsel %vm6835_vm4, %v1254_v34, %v1286_v0  ;;  %v1290_v23 = vsel %vm6835_vm4, %v1255_v62, %v1289_v36 }
 0x1d3   :  { %1279 = vst [vmem:[#allocation2 + $0x58] sm:$0x77] %v1278_v35  ;;  %v1296_v29 = vsel %vm6835_vm4, %v1257_v63, %v1295_v45  ;;  %v1318_v9 = vrot.slane %v1302_v43, 2  ;;  %v1362_v55 = vrot.slane %v1346_v61, 2  ;;  %v1366_v44 = vrot.slane %v1350_v48, 2 }
 0x1d4   :  { %1282 = vst [vmem:[#allocation2 + $0x18] sm:$0x77] %v1281_v33  ;;  %v1293_v22 = vsel %vm6835_vm4, %v1256_v47, %v1292_v39  ;;  %vm1418_vm9 = vsmask.f32 1280  ;;  %vm1419_vm11 = vsmask.f32 3336 }
 0x1d5   :  { %1285 = vst [vmem:[#allocation2 + $0x50] sm:$0x77] %v1284_v54  ;;  %v1336_v3 = vsel %vm615_vm10, %v1302_v43, %v1318_v9  ;;  %v1373_v8 = vsel %vm617_vm7, %v1346_v61, %v1362_v55  ;;  %v1372_v16 = vsel %vm615_vm10, %v1346_v61, %v1362_v55  ;;  %v1397_v56 = vsel %vm617_vm7, %v1350_v48, %v1366_v44  ;;  %v6888_v54 = vld [vmem:[#allocation2 + $0x30] sm:$0x66]  ;;  %vm6903_vm14 = vmor %vm1418_vm9, %vm1419_vm11 }
 0x1d6   :  { %1288 = vst [vmem:[#allocation2 + $0x38] sm:$0x77] %v1287_v7  ;;  %v1375_v2 = vrot.slane %v1373_v8, 2  ;;  %v1396_v37 = vsel %vm615_vm10, %v1350_v48, %v1366_v44  ;;  %v1425_v24 = vshrl.u32 %v1372_v16, 16  ;;  %v1428_v53 = vshll.u32 %v1372_v16, 16  ;;  %v5460_v55 = vld [vmem:[%s8437_s5 + $0x38] sm:$0xff] }
 0x1d7   :  { %1291 = vst [vmem:[#allocation2 + $0x28] sm:$0x77] %v1290_v23  ;;  %v1399_v5 = vrot.slane %v1397_v56, 2  ;;  %v1477_v13 = vshrl.u32 %v1396_v37, 16  ;;  %v1480_v14 = vshll.u32 %v1396_v37, 16  ;;  %v5468_v44 = vld [vmem:[%s8437_s5 + $0x78] sm:$0xff]  ;;  %3732 = vmatpush.bf16.msra.mxu2 %v5460_v55 }
 0x1d8   :  { %1294 = vst [vmem:[#allocation2 + $0x48] sm:$0x77] %v1293_v22  ;;  %v1299_v57 = vld [vmem:[#allocation2] sm:$0x33]  ;;  %v6874_v63 = vshll.u32 %v1375_v2, 16  ;;  %v6876_v1 = vrot.slane %v1425_v24, 6  ;;  %3751 = vmatpush.bf16.msra.mxu3 %v5468_v44 }
 0x1d9   :  { %1297 = vst [vmem:[#allocation2 + $0x10] sm:$0x77] %v1296_v29  ;;  %v1315_v42 = vrot.slane %v1299_v57, 2  ;;  %v1347_v19 = vld [vmem:[#allocation2] sm:$0x77]  ;;  %v1430_v26 = vrot.slane %v1428_v53, 7 }
 0x1da   :  { %v1300_v58 = vld [vmem:[#allocation2 + $0x58] sm:$0x33]  ;;  %2329 = vst [vmem:[#allocation1 + $0x20] ss:$4 sm:$0xff] %v1336_v3  ;;  %v1363_v40 = vrot.slane %v1347_v19, 2  ;;  %v6878_v62 = vshll.u32 %v1399_v5, 16 }
 0x1db   :  { %v1301_v20 = vld [vmem:[#allocation2 + $0x18] sm:$0x33]  ;;  %v1316_v46 = vrot.slane %v1300_v58, 2  ;;  %v1327_v6 = vsel %vm615_vm10, %v1299_v57, %v1315_v42  ;;  %vm1421_vm12 = vsmask.f32 5392  ;;  %v6881_v47 = vrot.slane %v1477_v13, 6 }
 0x1dc   :  { %v1317_v30 = vrot.slane %v1301_v20, 2  ;;  %2323 = vst [vmem:[#allocation1 + $0x1] ss:$4 sm:$0xff] %v1327_v6  ;;  %v1348_v41 = vld [vmem:[#allocation2 + $0x58] sm:$0x77]  ;;  %v1378_v18 = vsel %vm615_vm10, %v1347_v19, %v1363_v40  ;;  %v1431_v35 = vor.u32 %v1430_v26, %v6876_v1  ;;  %v1436_v33 = vrot.slane %v6874_v63, 7  ;;  %vm6917_vm15 = vmor %vm6903_vm14, %vm1421_vm12 }
 0x1dd   :  { %v1303_v4 = vld [vmem:[#allocation2 + $0x38] sm:$0x33]  ;;  %v1330_v28 = vsel %vm615_vm10, %v1300_v58, %v1316_v46  ;;  %v1364_v21 = vrot.slane %v1348_v41, 2  ;;  %v6886_v36 = vrot.slane %v1480_v14, 7  ;;  %v1379_v39 = vsel %vm617_vm7, %v1347_v19, %v1363_v40  ;;  %v5459_v26 = vld [vmem:[%s8437_s5 + $0x30] sm:$0xff] }
 0x1de   :  { %v1304_v50 = vld [vmem:[#allocation2 + $0x28] sm:$0x33]  ;;  %v1319_v10 = vrot.slane %v1303_v4, 2  ;;  %v1333_v17 = vsel %vm615_vm10, %v1301_v20, %v1317_v30  ;;  %2325 = vst [vmem:[#allocation1 + $0x2] ss:$4 sm:$0xff] %v1330_v28  ;;  %v1488_v23 = vrot.slane %v6878_v62, 7  ;;  %3733 = vmatpush.bf16.msra.mxu2 %v5459_v26 }
 0x1df   :  { %v1305_v52 = vld [vmem:[#allocation2 + $0x48] sm:$0x33]  ;;  %v1320_v59 = vrot.slane %v1304_v50, 2  ;;  %2327 = vst [vmem:[#allocation1 + $0x3] ss:$4 sm:$0xff] %v1333_v17  ;;  %v1384_v15 = vsel %vm615_vm10, %v1348_v41, %v1364_v21  ;;  %v1385_v29 = vsel %vm617_vm7, %v1348_v41, %v1364_v21  ;;  %v1438_v57 = vshrl.u32 %v1378_v18, 16 }
 0x1e0   :  { %v1321_v12 = vrot.slane %v1305_v52, 2  ;;  %v1339_v31 = vsel %vm615_vm10, %v1303_v4, %v1319_v10  ;;  %v1349_v51 = vld [vmem:[#allocation2 + $0x18] sm:$0x77]  ;;  %v1352_v49 = vld [vmem:[#allocation2 + $0x28] sm:$0x77]  ;;  %v1441_v58 = vshll.u32 %v1378_v18, 16  ;;  %v1483_v40 = vor.u32 %v6886_v36, %v6881_v47 }
 0x1e1   :  { %v1342_v27 = vsel %vm615_vm10, %v1304_v50, %v1320_v59  ;;  %2331 = vst [vmem:[#allocation1 + $0x21] ss:$4 sm:$0xff] %v1339_v31  ;;  %v1351_v38 = vld [vmem:[#allocation2 + $0x38] sm:$0x77]  ;;  %v1365_v34 = vrot.slane %v1349_v51, 2  ;;  %v1368_v0 = vrot.slane %v1352_v49, 2 }
 0x1e2   :  { %v1345_v60 = vsel %vm615_vm10, %v1305_v52, %v1321_v12  ;;  %2333 = vst [vmem:[#allocation1 + $0x22] ss:$4 sm:$0xff] %v1342_v27  ;;  %v1367_v32 = vrot.slane %v1351_v38, 2  ;;  %v1353_v25 = vld [vmem:[#allocation2 + $0x48] sm:$0x77]  ;;  %v1451_v43 = vshrl.u32 %v1384_v15, 16 }
 0x1e3   :  { %2335 = vst [vmem:[#allocation1 + $0x23] ss:$4 sm:$0xff] %v1345_v60  ;;  %v1390_v7 = vsel %vm615_vm10, %v1349_v51, %v1365_v34  ;;  %vm1423_vm13 = vsmask.f32 7448  ;;  %v1369_v22 = vrot.slane %v1353_v25, 2  ;;  %v1408_v20 = vsel %vm615_vm10, %v1352_v49, %v1368_v0  ;;  %v5467_v14 = vld [vmem:[%s8437_s5 + $0x70] sm:$0xff] }
 0x1e4   :  { %v1402_v45 = vsel %vm615_vm10, %v1351_v38, %v1367_v32  ;;  %v1454_v42 = vshll.u32 %v1384_v15, 16  ;;  %v1545_v4 = vrot.slane %v6888_v54, 2  ;;  %v1464_v46 = vshrl.u32 %v1390_v7, 16  ;;  %vm6932_vm0 = vmor %vm6917_vm15, %vm1423_vm13  ;;  %3752 = vmatpush.bf16.msra.mxu3 %v5467_v14  ;;  %v1534_v63 = vld [vmem:[#allocation2 + $0x38] sm:$0x66] }
 0x1e5   :  { %v1467_v50 = vshll.u32 %v1390_v7, 16  ;;  %v1490_v30 = vshrl.u32 %v1402_v45, 16  ;;  %v1493_v52 = vshll.u32 %v1402_v45, 16  ;;  %v1381_v9 = vrot.slane %v1379_v39, 2  ;;  %v1535_v17 = vld [vmem:[#allocation2 + $0x28] sm:$0x66] }
 0x1e6   :  { %v1387_v10 = vrot.slane %v1385_v29, 2  ;;  %v1391_v6 = vsel %vm617_vm7, %v1349_v51, %v1365_v34  ;;  %v1403_v59 = vsel %vm617_vm7, %v1351_v38, %v1367_v32  ;;  %v1409_v28 = vsel %vm617_vm7, %v1352_v49, %v1368_v0  ;;  %v5457_v55 = vld [vmem:[%s8437_s5 + $0x20] sm:$0xff] }
 0x1e7   :  { %v1414_v12 = vsel %vm615_vm10, %v1353_v25, %v1369_v22  ;;  %v1440_v3 = vrot.slane %v1438_v57, 6  ;;  %v1443_v31 = vrot.slane %v1441_v58, 7  ;;  %v1453_v27 = vrot.slane %v1451_v43, 6  ;;  %v1530_v43 = vld [vmem:[#allocation2] sm:$0x66] }
 0x1e8   :  { %v1456_v60 = vrot.slane %v1454_v42, 7  ;;  %v1503_v61 = vshrl.u32 %v1408_v20, 16  ;;  %v1506_v48 = vshll.u32 %v1408_v20, 16  ;;  %v1466_v8 = vrot.slane %v1464_v46, 6  ;;  %v1531_v42 = vld [vmem:[#allocation2 + $0x58] sm:$0x66] }
 0x1e9   :  { %v1469_v16 = vrot.slane %v1467_v50, 7  ;;  %v1492_v56 = vrot.slane %v1490_v30, 6  ;;  %v1495_v2 = vrot.slane %v1493_v52, 7  ;;  %v1393_v19 = vrot.slane %v1391_v6, 2  ;;  %v1533_v46 = vld [vmem:[#allocation2 + $0x8] sm:$0x66] }
 0x1ea   :  { %v1415_v37 = vsel %vm617_vm7, %v1353_v25, %v1369_v22  ;;  %v1516_v53 = vshrl.u32 %v1414_v12, 16  ;;  %v1519_v41 = vshll.u32 %v1414_v12, 16  ;;  %v1405_v5 = vrot.slane %v1403_v59, 2 }
 0x1eb   :  { %v1411_v51 = vrot.slane %v1409_v28, 2  ;;  %v1432_v38 = vrot.slane %v1431_v35, 2  ;;  %v1444_v13 = vor.u32 %v1443_v31, %v1440_v3  ;;  %v1457_v49 = vor.u32 %v1456_v60, %v1453_v27  ;;  %v5466_v27 = vld [vmem:[%s8437_s5 + $0x68] sm:$0xff] }
 0x1ec   :  { %v1505_v21 = vrot.slane %v1503_v61, 6  ;;  %v1508_v1 = vrot.slane %v1506_v48, 7  ;;  %v1417_v34 = vrot.slane %v1415_v37, 2  ;;  %v1447_v25 = vshll.u32 %v1381_v9, 16  ;;  %v1536_v48 = vld [vmem:[#allocation2 + $0x48] sm:$0x66]  ;;  %3753 = vmatpush.bf16.msra.mxu3 %v5466_v27 }
 0x1ed   :  { %v1470_v0 = vor.u32 %v1469_v16, %v1466_v8  ;;  %v1496_v18 = vor.u32 %v1495_v2, %v1492_v56  ;;  %v1460_v47 = vshll.u32 %v1387_v10, 16  ;;  %v1473_v15 = vshll.u32 %v1393_v19, 16  ;;  %v1532_v10 = vld [vmem:[#allocation2 + $0x18] sm:$0x66] }
 0x1ee   :  { %v1518_v35 = vrot.slane %v1516_v53, 6  ;;  %v1521_v36 = vrot.slane %v1519_v41, 7  ;;  %v1484_v39 = vrot.slane %v1483_v40, 2  ;;  %v1499_v7 = vshll.u32 %v1405_v5, 16  ;;  %v5465_v2 = vld [vmem:[%s8437_s5 + $0x60] sm:$0xff] }
 0x1ef   :  { %v6938_v45 = vsel %vm615_vm10, %v6888_v54, %v1545_v4  ;;  %v6942_v22 = vsel %vm617_vm7, %v6888_v54, %v1545_v4  ;;  %v6948_v29 = vsel %vm6932_vm0, %v1432_v38, %v1436_v33  ;;  %v1445_v57 = vrot.slane %v1444_v13, 2  ;;  %v5458_v33 = vld [vmem:[%s8437_s5 + $0x28] sm:$0xff]  ;;  %v7084_v27 = vld [vmem:[#allocation2 + $0x38] sm:$0x77] }
 0x1f0   :  { %v1458_v58 = vrot.slane %v1457_v49, 2  ;;  %v1509_v20 = vor.u32 %v1508_v1, %v1505_v21  ;;  %v1449_v50 = vrot.slane %v1447_v25, 7  ;;  %v1471_v30 = vrot.slane %v1470_v0, 2  ;;  %3734 = vmatpush.bf16.msra.mxu2 %v5458_v33  ;;  %v5456_v1 = vld [vmem:[%s8437_s5 + $0x18] sm:$0xff]  ;;  %3754 = vmatpush.bf16.msra.mxu3 %v5465_v2  ;;  %v1698_v33 = vld [vmem:[#allocation2 + $0x18] sm:$0x77] }
 0x1f1   :  { %v1497_v52 = vrot.slane %v1496_v18, 2  ;;  %v1512_v9 = vshll.u32 %v1411_v51, 16  ;;  %v1462_v6 = vrot.slane %v1460_v47, 7  ;;  %v1475_v54 = vrot.slane %v1473_v15, 7  ;;  %v5464_v25 = vld [vmem:[%s8437_s5 + $0x58] sm:$0xff] }
 0x1f2   :  { %v1522_v4 = vor.u32 %v1521_v36, %v1518_v35  ;;  %v1525_v59 = vshll.u32 %v1417_v34, 16  ;;  %v6957_v28 = vsel %vm6932_vm0, %v1484_v39, %v1488_v23  ;;  %v1501_v12 = vrot.slane %v1499_v7, 7 }
 0x1f3   :  { %v1546_v3 = vrot.slane %v1530_v43, 2  ;;  %v1547_v31 = vrot.slane %v1531_v42, 2  ;;  %v6964_v60 = vsel %vm6932_vm0, %v1445_v57, %v1449_v50  ;;  %v6968_v61 = vsel %vm6932_vm0, %v1458_v58, %v1462_v6  ;;  %v7046_v57 = vld [vmem:[#allocation2 + $0x18] sm:$0x33]  ;;  %v1696_v58 = vld [vmem:[#allocation2] sm:$0x77] }
 0x1f4   :  { %v1510_v62 = vrot.slane %v1509_v20, 2  ;;  %v1548_v23 = vrot.slane %v1532_v10, 2  ;;  %v6975_v44 = vsel %vm6932_vm0, %v1471_v30, %v1475_v54  ;;  %v6979_v8 = vsel %vm6932_vm0, %v1497_v52, %v1501_v12  ;;  %3735 = vmatpush.bf16.msra.mxu2 %v5457_v55  ;;  %v7048_v20 = vld [vmem:[#allocation2 + $0x58] sm:$0x77]  ;;  %v7061_v52 = vld [vmem:[#allocation2 + $0x50] sm:$0x33]  ;;  %3755 = vmatpush.bf16.msra.mxu3 %v5464_v25 }
 0x1f5   :  { %v1514_v16 = vrot.slane %v1512_v9, 7  ;;  %v1549_v56 = vrot.slane %v1533_v46, 2  ;;  %v1523_v19 = vrot.slane %v1522_v4, 2  ;;  %v1527_v37 = vrot.slane %v1525_v59, 7  ;;  %v7063_v9 = vld [vmem:[#allocation2 + $0x38] sm:$0x33] }
 0x1f6   :  { %v1550_v24 = vrot.slane %v1534_v63, 2  ;;  %v1551_v53 = vrot.slane %v1535_v17, 2  ;;  %v1552_v41 = vrot.slane %v1536_v48, 2  ;;  %v6985_v5 = vsel %vm615_vm10, %v1530_v43, %v1546_v3  ;;  %v5463_v12 = vld [vmem:[%s8437_s5 + $0x50] sm:$0xff] }
 0x1f7   :  { %v6988_v51 = vsel %vm617_vm7, %v1530_v43, %v1546_v3  ;;  %v6991_v38 = vsel %vm615_vm10, %v1531_v42, %v1547_v31  ;;  %v6995_v40 = vsel %vm6932_vm0, %v1510_v62, %v1514_v16  ;;  %v6998_v13 = vsel %vm617_vm7, %v1531_v42, %v1547_v31  ;;  %v1699_v31 = vld [vmem:[#allocation2 + $0x50] sm:$0x77]  ;;  %v7086_v62 = vld [vmem:[#allocation2 + $0x28] sm:$0x77]  ;;  %v5582_v43 = vld [vmem:[%s8437_s5 + $0x408] sm:$0xff] }
 0x1f8   :  { %v7001_v49 = vsel %vm615_vm10, %v1532_v10, %v1548_v23  ;;  %v7004_v21 = vsel %vm617_vm7, %v1532_v10, %v1548_v23  ;;  %v7010_v26 = vsel %vm615_vm10, %v1533_v46, %v1549_v56  ;;  %v4669_v14 = vrot.slane %v6938_v45, 9  ;;  %v7042_v45 = vld [vmem:[#allocation2] sm:$0x33]  ;;  %v7065_v10 = vld [vmem:[#allocation2 + $0x28] sm:$0x33]  ;;  %3736 = vmatpush.bf16.msra.mxu2 %v5456_v1  ;;  %3756 = vmatpush.bf16.msra.mxu3 %v5463_v12 }
 0x1f9   :  { %v4670_v34 = vrot.slane %v6942_v22, 9  ;;  %v7019_v0 = vsel %vm6932_vm0, %v1523_v19, %v1527_v37  ;;  %v7022_v18 = vsel %vm617_vm7, %v1533_v46, %v1549_v56  ;;  %v7025_v47 = vsel %vm615_vm10, %v1534_v63, %v1550_v24  ;;  %v7044_v22 = vld [vmem:[#allocation2 + $0x58] sm:$0x33]  ;;  %v7093_v19 = vld [vmem:[#allocation2 + $0x48] sm:$0x77]  ;;  %v5462_v1 = vld [vmem:[%s8437_s5 + $0x48] sm:$0xff] }
 0x1fa   :  { %v7028_v15 = vsel %vm617_vm7, %v1534_v63, %v1550_v24  ;;  %v7031_v35 = vsel %vm615_vm10, %v1535_v17, %v1551_v53  ;;  %v7034_v36 = vsel %vm617_vm7, %v1535_v17, %v1551_v53  ;;  %v7037_v39 = vsel %vm615_vm10, %v1536_v48, %v1552_v41  ;;  %v7077_v63 = vld [vmem:[#allocation2 + $0x48] sm:$0x33]  ;;  %v7095_v37 = vld [vmem:[#allocation2 + $0x10] sm:$0x77] }
 0x1fb   :  { %v7040_v7 = vsel %vm617_vm7, %v1536_v48, %v1552_v41  ;;  %v4671_v42 = vrot.slane %v6985_v5, 9  ;;  %v4672_v46 = vrot.slane %v6988_v51, 9  ;;  %v4673_v50 = vrot.slane %v6991_v38, 9  ;;  %v5454_v51 = vld [vmem:[%s8437_s5 + $0x8] sm:$0xff] }
 0x1fc   :  { %v4674_v30 = vrot.slane %v6998_v13, 9  ;;  %v7072_v6 = vsel %vm7053_vm2, %v4669_v14, %v4670_v34  ;;  %v4675_v54 = vrot.slane %v7001_v49, 9  ;;  %v4676_v4 = vrot.slane %v7004_v21, 9  ;;  %3737 = vmatpush.bf16.msra.mxu2 %v5455_v11  ;;  %v2336_v11 = vld.sshfl [vmem:[#allocation1] sm:$0xff pattern:$0x73625140]  ;;  %3757 = vmatpush.bf16.msra.mxu3 %v5462_v1 }
 0x1fd   :  { %v4677_v59 = vrot.slane %v7010_v26, 9  ;;  %v4678_v17 = vrot.slane %v7022_v18, 9  ;;  %v4679_v3 = vrot.slane %v7025_v47, 9  ;;  %v1712_v48 = vrot.slane %v1696_v58, 2  ;;  %v7110_v26 = vld [vmem:[#allocation2 + $0x10] sm:$0x33] }
 0x1fe   :  { %v1713_v23 = vrot.slane %v7048_v20, 2  ;;  %v4680_v55 = vrot.slane %v7028_v15, 9  ;;  %v4681_v16 = vrot.slane %v7031_v35, 9  ;;  %v4682_v56 = vrot.slane %v7034_v36, 9  ;;  %v7572_v5 = vld [vmem:[#allocation2 + $0x40] sm:$0x77] }
 0x1ff   :  { %v4683_v2 = vrot.slane %v7037_v39, 9  ;;  %v4684_v24 = vrot.slane %v7040_v7, 9  ;;  %v1664_v53 = vrot.slane %v7042_v45, 2  ;;  %v1665_v41 = vrot.slane %v7044_v22, 2  ;;  %v5475_v7 = vld [vmem:[%s8437_s5 + $0xb0] sm:$0xff] }
 0x200   :  { %v1714_v21 = vrot.slane %v1698_v33, 2  ;;  %v1722_v34 = vsel %vm615_vm10, %v1696_v58, %v1712_v48  ;;  %v1723_v25 = vsel %vm617_vm7, %v1696_v58, %v1712_v48  ;;  %v1729_v18 = vsel %vm617_vm7, %v7048_v20, %v1713_v23  ;;  %3738 = vmatpush.bf16.msra.mxu2 %v5454_v51 }
 0x201   :  { %v7119_v47 = vsel %vm7053_vm2, %v4671_v42, %v4672_v46  ;;  %v1715_v15 = vrot.slane %v1699_v31, 2  ;;  %v1716_v35 = vrot.slane %v7084_v27, 2  ;;  %v1717_v36 = vrot.slane %v7086_v62, 2  ;;  %v2337_v42 = vld.sshfl [vmem:[#allocation1 + $0x8] sm:$0xff pattern:$0x73625140] }
 0x202   :  { %v7125_v12 = vsel %vm7053_vm2, %v4673_v50, %v4674_v30  ;;  %v7129_v58 = vsel %vm7053_vm2, %v4675_v54, %v4676_v4  ;;  %v1718_v48 = vrot.slane %v7093_v19, 2  ;;  %v1719_v14 = vrot.slane %v7095_v37, 2  ;;  %v5453_v46 = vld [vmem:[%s8437_s5] sm:$0xff]  ;;  %2345 = vst [vmem:[#allocation1] ss:$4 sm:$0xff] %v6948_v29 }
 0x203   :  { %v1725_v49 = vrot.slane %v1723_v25, 2  ;;  %v1731_v13 = vrot.slane %v1729_v18, 2  ;;  %v1735_v38 = vsel %vm617_vm7, %v1698_v33, %v1714_v21  ;;  %v1768_v50 = vshrl.u32 %v1722_v34, 16  ;;  %v5461_v30 = vld [vmem:[%s8437_s5 + $0x40] sm:$0xff]  ;;  %2348 = vst [vmem:[#allocation1 + $0x1] ss:$4 sm:$0xff] %v6964_v60 }
 0x204   :  { %v7142_v54 = vsel %vm7053_vm2, %v4677_v59, %v4678_v17  ;;  %v7146_v4 = vsel %vm7053_vm2, %v4679_v3, %v4680_v55  ;;  %v1728_v51 = vsel %vm615_vm10, %v7048_v20, %v1713_v23  ;;  %v1771_v25 = vshll.u32 %v1722_v34, 16  ;;  %v7150_v18 = vld.sshfl [vmem:[#allocation1 + $0x20] sm:$0xff pattern:$0x73625140]  ;;  %2351 = vst [vmem:[#allocation1 + $0x2] ss:$4 sm:$0xff] %v6968_v61  ;;  %3739 = vmatpush.bf16.msra.mxu2 %v5453_v46 }
 0x205   :  { %v7155_v1 = vsel %vm7053_vm2, %v4681_v16, %v4682_v56  ;;  %v1734_v59 = vsel %vm615_vm10, %v1698_v33, %v1714_v21  ;;  %v7160_v17 = vsel %vm615_vm10, %v1699_v31, %v1715_v15  ;;  %v7162_v3 = vld.sshfl [vmem:[#allocation1 + $0x28] sm:$0xff pattern:$0x73625140]  ;;  %v1737_v20 = vrot.slane %v1735_v38, 2  ;;  %2354 = vst [vmem:[#allocation1 + $0x3] ss:$4 sm:$0xff] %v6975_v44  ;;  %3758 = vmatpush.bf16.msra.mxu3 %v5461_v30 }
 0x206   :  { %v1741_v23 = vsel %vm617_vm7, %v1699_v31, %v1715_v15  ;;  %v7168_v29 = vsel %vm617_vm7, %v7084_v27, %v1716_v35  ;;  %v7172_v55 = vsel %vm617_vm7, %v7086_v62, %v1717_v36  ;;  %v7177_v33 = vsel %vm617_vm7, %v7093_v19, %v1718_v48  ;;  %2357 = vst [vmem:[#allocation1 + $0x20] ss:$4 sm:$0xff] %v6957_v28  ;;  %v5524_v44 = vld [vmem:[%s8437_s5 + $0x238] sm:$0xff] }
 0x207   :  { %v7183_v60 = vsel %vm617_vm7, %v7095_v37, %v1719_v14  ;;  %v7185_v31 = vshll.u32 %v1725_v49, 16  ;;  %v1781_v16 = vshrl.u32 %v1728_v51, 16  ;;  %v1770_v56 = vrot.slane %v1768_v50, 6  ;;  %2360 = vst [vmem:[#allocation1 + $0x21] ss:$4 sm:$0xff] %v6979_v8  ;;  %3740 = vmatmul.bf16.vlgmr.msra.gmra.mxu2 %v2336_v11  ;;  %v5532_v8 = vld [vmem:[%s8437_s5 + $0x278] sm:$0xff]  ;;  %3884 = vmatpush.bf16.msrb.mxu0 %v5524_v44 }
 0x208   :  { %v1773_v38 = vrot.slane %v1771_v25, 7  ;;  %v1784_v61 = vshll.u32 %v1728_v51, 16  ;;  %v7188_v21 = vshll.u32 %v1731_v13, 16  ;;  %v1743_v34 = vrot.slane %v1741_v23, 2  ;;  %2363 = vst [vmem:[#allocation1 + $0x22] ss:$4 sm:$0xff] %v6995_v40  ;;  %3759 = vmatmul.bf16.vlgmr.msra.gmra.mxu3 %v2337_v42  ;;  %3903 = vmatpush.bf16.msrb.mxu1 %v5532_v8 }
 0x209   :  { %v1746_v15 = vsel %vm615_vm10, %v7084_v27, %v1716_v35  ;;  %v7195_v46 = vsel %vm615_vm10, %v7086_v62, %v1717_v36  ;;  %v1794_v49 = vshrl.u32 %v1734_v59, 16  ;;  %v1749_v13 = vrot.slane %v7168_v29, 2  ;;  %2366 = vst [vmem:[#allocation1 + $0x23] ss:$4 sm:$0xff] %v7019_v0  ;;  %v5523_v42 = vld [vmem:[%s8437_s5 + $0x230] sm:$0xff]  ;;  %v5476_v0 = vld [vmem:[%s8437_s5 + $0xb8] sm:$0xff] }
 0x20a   :  { %v1755_v28 = vrot.slane %v7172_v55, 2  ;;  %v7205_v50 = vsel %vm615_vm10, %v7093_v19, %v1718_v48  ;;  %v1761_v27 = vrot.slane %v7177_v33, 2  ;;  %v1767_v62 = vrot.slane %v7183_v60, 2  ;;  %v5531_v51 = vld [vmem:[%s8437_s5 + $0x270] sm:$0xff]  ;;  %3770 = vmatpush.bf16.msrb.mxu2 %v5476_v0  ;;  %v5518_v35 = vld [vmem:[%s8437_s5 + $0x208] sm:$0xff] }
 0x20b   :  { %v7214_v36 = vrot.slane %v1781_v16, 6  ;;  %v1797_v11 = vshll.u32 %v1734_v59, 16  ;;  %v1774_v19 = vor.u32 %v1773_v38, %v1770_v56  ;;  %v1786_v48 = vrot.slane %v1784_v61, 7  ;;  %v5484_v16 = vld [vmem:[%s8437_s5 + $0xf8] sm:$0xff]  ;;  %3885 = vmatpush.bf16.msrb.mxu0 %v5523_v42 }
 0x20c   :  { %v7218_v40 = vshll.u32 %v1737_v20, 16  ;;  %v7229_v25 = vrot.slane %v1794_v49, 6  ;;  %v1807_v59 = vshrl.u32 %v7160_v17, 16  ;;  %v1810_v20 = vshll.u32 %v7160_v17, 16  ;;  %3789 = vmatpush.bf16.msrb.mxu3 %v5484_v16  ;;  %3904 = vmatpush.bf16.msrb.mxu1 %v5531_v51 }
 0x20d   :  { %v1820_v23 = vshrl.u32 %v1746_v15, 16  ;;  %v7242_v56 = vsel %vm7053_vm2, %v4683_v2, %v4684_v24  ;;  %v1764_v38 = vsel %vm615_vm10, %v7095_v37, %v1719_v14  ;;  %v1823_v61 = vshll.u32 %v1746_v15, 16  ;;  %v7249_v49 = vld.sshfl [vmem:[#allocation1] sm:$0xff pattern:$0x73625140]  ;;  %v5483_v37 = vld [vmem:[%s8437_s5 + $0xf0] sm:$0xff] }
 0x20e   :  { %v1833_v17 = vshrl.u32 %v7195_v46, 16  ;;  %v7254_v39 = vrot.slane %v1797_v11, 7  ;;  %v7256_v44 = vshll.u32 %v1743_v34, 16  ;;  %v1836_v2 = vshll.u32 %v7195_v46, 16  ;;  %v5522_v14 = vld [vmem:[%s8437_s5 + $0x228] sm:$0xff]  ;;  %3771 = vmatpush.bf16.msrb.mxu2 %v5475_v7 }
 0x20f   :  { %v1846_v24 = vshrl.u32 %v7205_v50, 16  ;;  %v7270_v34 = vsel %vm615_vm10, %v7042_v45, %v1664_v53  ;;  %v7272_v15 = vrot.slane %v1774_v19, 2  ;;  %v1849_v8 = vshll.u32 %v7205_v50, 16  ;;  %v7276_v11 = vld.sshfl [vmem:[#allocation1 + $0x8] sm:$0xff pattern:$0x73625140]  ;;  %3886 = vmatpush.bf16.msrb.mxu0 %v5522_v14 }
 0x210   :  { %v1787_v42 = vor.u32 %v1786_v48, %v7214_v36  ;;  %v1809_v0 = vrot.slane %v1807_v59, 6  ;;  %v1812_v16 = vrot.slane %v1810_v20, 7  ;;  %v7279_v30 = vrot.slane %v1820_v23, 6  ;;  %2376 = vst [vmem:[#allocation1] ss:$4 sm:$0xff] %v7072_v6  ;;  %v5530_v45 = vld [vmem:[%s8437_s5 + $0x268] sm:$0xff]  ;;  %3790 = vmatpush.bf16.msrb.mxu3 %v5483_v37 }
 0x211   :  { %v1825_v53 = vrot.slane %v1823_v61, 7  ;;  %v7285_v19 = vrot.slane %v1833_v17, 6  ;;  %v1859_v46 = vshrl.u32 %v1764_v38, 16  ;;  %v1862_v50 = vshll.u32 %v1764_v38, 16  ;;  %v5474_v36 = vld [vmem:[%s8437_s5 + $0xa8] sm:$0xff]  ;;  %3905 = vmatpush.bf16.msrb.mxu1 %v5530_v45 }
 0x212   :  { %v7294_v48 = vsel %vm615_vm10, %v7044_v22, %v1665_v41  ;;  %v8619_v6 = vrot.slane %v7046_v57, 2  ;;  %v1838_v59 = vrot.slane %v1836_v2, 7  ;;  %v7302_v20 = vrot.slane %v1846_v24, 6  ;;  %v7304_v23 = vld [vmem:[#allocation2] sm:$0x66]  ;;  %3772 = vmatpush.bf16.msrb.mxu2 %v5474_v36 }
 0x213   :  { %v7306_v38 = vld.sshfl [vmem:[#allocation1 + $0x20] sm:$0xff pattern:$0x73625140]  ;;  %v5482_v61 = vld [vmem:[%s8437_s5 + $0xe8] sm:$0xff]  ;;  %v8620_v22 = vrot.slane %v7061_v52, 2  ;;  %v1800_v7 = vor.u32 %v7254_v39, %v7229_v25  ;;  %v1851_v2 = vrot.slane %v1849_v8, 7  ;;  %v1826_v8 = vor.u32 %v1825_v53, %v7279_v30 }
 0x214   :  { %v7300_v51 = vsel %vm615_vm10, %v7046_v57, %v8619_v6  ;;  %v8621_v57 = vrot.slane %v7063_v9, 2  ;;  %v7325_v24 = vld [vmem:[#allocation2 + $0x58] sm:$0x66]  ;;  %v7327_v37 = vld.sshfl [vmem:[#allocation1 + $0x28] sm:$0xff pattern:$0x73625140]  ;;  %3791 = vmatpush.bf16.msrb.mxu3 %v5482_v61 }
 0x215   :  { %v7315_v41 = vsel %vm615_vm10, %v7061_v52, %v8620_v22  ;;  %8622 = vst [vmem:[#allocation9_spill] sm:$0xff] %v7327_v37  ;;  %v7330_v14 = vrot.slane %v1787_v42, 2  ;;  %v1813_v52 = vor.u32 %v1812_v16, %v1809_v0  ;;  %v7334_v6 = vshll.u32 %v1749_v13, 16  ;;  %v7340_v25 = vld [vmem:[#allocation2 + $0x18] sm:$0x66] }
 0x216   :  { %v7321_v17 = vsel %vm615_vm10, %v7063_v9, %v8621_v57  ;;  %2379 = vst [vmem:[#allocation1 + $0x1] ss:$4 sm:$0xff] %v7119_v47  ;;  %v7338_v9 = vshll.u32 %v1755_v28, 16  ;;  %v7342_v39 = vld [vmem:[#allocation2 + $0x50] sm:$0x66]  ;;  %v1861_v42 = vrot.slane %v1859_v46, 6  ;;  %v1839_v13 = vor.u32 %v1838_v59, %v7285_v19 }
 0x217   :  { %2382 = vst [vmem:[#allocation1 + $0x2] ss:$4 sm:$0xff] %v7125_v12  ;;  %v1864_v0 = vrot.slane %v1862_v50, 7  ;;  %v7347_v16 = vld [vmem:[#allocation2 + $0x38] sm:$0x66]  ;;  %v8623_v29 = vrot.slane %v7065_v10, 2  ;;  %3745 = vmatmul.bf16.gmra.mxu2 %v7150_v18 }
 0x218   :  { %2385 = vst [vmem:[#allocation1 + $0x3] ss:$4 sm:$0xff] %v7129_v58  ;;  %v7359_v12 = vshll.u32 %v1761_v27, 16  ;;  %v7363_v28 = vshll.u32 %v1767_v62, 16  ;;  %v7365_v30 = vld [vmem:[#allocation2 + $0x28] sm:$0x66]  ;;  %v1852_v62 = vor.u32 %v1851_v2, %v7302_v20  ;;  %3764 = vmatmul.bf16.gmra.mxu3 %v7162_v3 }
 0x219   :  { %v7354_v55 = vsel %vm615_vm10, %v7065_v10, %v8623_v29  ;;  %2388 = vst [vmem:[#allocation1 + $0x20] ss:$4 sm:$0xff] %v7142_v54  ;;  %v5473_v10 = vld [vmem:[%s8437_s5 + $0xa0] sm:$0xff]  ;;  %v8624_v33 = vrot.slane %v7077_v63, 2  ;;  %v7380_v27 = vrot.slane %v1800_v7, 2  ;;  %v1888_v45 = vrot.slane %v7304_v23, 2 }
 0x21a   :  { %v5521_v58 = vld [vmem:[%s8437_s5 + $0x220] sm:$0xff]  ;;  %v7383_v54 = vld [vmem:[#allocation2 + $0x48] sm:$0x66]  ;;  %v7385_v46 = vld [vmem:[#allocation2 + $0x10] sm:$0x66]  ;;  %v7395_v19 = vrot.slane %v1813_v52, 2  ;;  %v1865_v20 = vor.u32 %v1864_v0, %v1861_v42  ;;  %3773 = vmatpush.bf16.msrb.mxu2 %v5473_v10 }
 0x21b   :  { %v7378_v60 = vsel %vm615_vm10, %v7077_v63, %v8624_v33  ;;  %2391 = vst [vmem:[#allocation1 + $0x21] ss:$4 sm:$0xff] %v7146_v4  ;;  %v5481_v53 = vld [vmem:[%s8437_s5 + $0xe0] sm:$0xff]  ;;  %v1889_v59 = vrot.slane %v7325_v24, 2  ;;  %3887 = vmatpush.bf16.msrb.mxu0 %v5521_v58  ;;  %v7401_v4 = vrot.slane %v1826_v8, 2  ;;  %v1890_v61 = vrot.slane %v7340_v25, 2 }
 0x21c   :  { %v5529_v63 = vld [vmem:[%s8437_s5 + $0x260] sm:$0xff]  ;;  %2394 = vst [vmem:[#allocation1 + $0x22] ss:$4 sm:$0xff] %v7155_v1  ;;  %v1891_v22 = vrot.slane %v7342_v39, 2  ;;  %v5520_v57 = vld [vmem:[%s8437_s5 + $0x218] sm:$0xff]  ;;  %v7409_v7 = vrot.slane %v1839_v13, 2  ;;  %v7422_v0 = vsel %vm615_vm10, %v7304_v23, %v1888_v45  ;;  %v7426_v29 = vsel %vm617_vm7, %v7304_v23, %v1888_v45  ;;  %3792 = vmatpush.bf16.msrb.mxu3 %v5481_v53 }
 0x21d   :  { %2397 = vst [vmem:[#allocation1 + $0x23] ss:$4 sm:$0xff] %v7242_v56  ;;  %v1892_v52 = vrot.slane %v7347_v16, 2  ;;  %v5472_v8 = vld [vmem:[%s8437_s5 + $0x98] sm:$0xff]  ;;  %v7417_v42 = vrot.slane %v1852_v62, 2  ;;  %v1893_v56 = vrot.slane %v7365_v30, 2  ;;  %3906 = vmatpush.bf16.msrb.mxu1 %v5529_v63  ;;  %v7438_v62 = vsel %vm615_vm10, %v7325_v24, %v1889_v59 }
 0x21e   :  { %v5480_v13 = vld [vmem:[%s8437_s5 + $0xd8] sm:$0xff]  ;;  %v1894_v58 = vrot.slane %v7383_v54, 2  ;;  %v1895_v33 = vrot.slane %v7385_v46, 2  ;;  %v7442_v23 = vsel %vm617_vm7, %v7325_v24, %v1889_v59  ;;  %v7444_v45 = vld [vmem:[#allocation2 + $0x58] sm:$0x77]  ;;  %v7448_v53 = vrot.slane %v1865_v20, 2  ;;  %3774 = vmatpush.bf16.msrb.mxu2 %v5472_v8 }
 0x21f   :  { %v5528_v10 = vld [vmem:[%s8437_s5 + $0x258] sm:$0xff]  ;;  %v7452_v63 = vsel %vm615_vm10, %v7340_v25, %v1890_v61  ;;  %v7456_v1 = vsel %vm617_vm7, %v7340_v25, %v1890_v61  ;;  %v7460_v24 = vsel %vm615_vm10, %v7342_v39, %v1891_v22  ;;  %v7462_v59 = vld [vmem:[#allocation2 + $0x18] sm:$0x77]  ;;  %3888 = vmatpush.bf16.msrb.mxu0 %v5520_v57  ;;  %v5519_v18 = vld [vmem:[%s8437_s5 + $0x210] sm:$0xff]  ;;  %v7471_v3 = vsel %vm617_vm7, %v7342_v39, %v1891_v22 }
 0x220   :  { %v7464_v2 = vld.sshfl [vmem:[#allocation1] sm:$0xff pattern:$0x73625140]  ;;  %v7475_v25 = vsel %vm615_vm10, %v7347_v16, %v1892_v52  ;;  %v7479_v36 = vld.sshfl [vmem:[#allocation1 + $0x8] sm:$0xff pattern:$0x73625140]  ;;  %v7486_v50 = vsel %vm617_vm7, %v7347_v16, %v1892_v52  ;;  %v7490_v39 = vsel %vm615_vm10, %v7365_v30, %v1893_v56  ;;  %3793 = vmatpush.bf16.msrb.mxu3 %v5480_v13  ;;  %v7505_v52 = vsel %vm617_vm7, %v7365_v30, %v1893_v56 }
 0x221   :  { %8625 = vst [vmem:[#allocation13_spill] sm:$0xff] %v7464_v2  ;;  %v5471_v57 = vld [vmem:[%s8437_s5 + $0x90] sm:$0xff]  ;;  %v7494_v61 = vld [vmem:[#allocation2 + $0x50] sm:$0x77]  ;;  %3907 = vmatpush.bf16.msrb.mxu1 %v5528_v10  ;;  %v7514_v10 = vsel %vm615_vm10, %v7383_v54, %v1894_v58  ;;  %v7518_v47 = vsel %vm617_vm7, %v7383_v54, %v1894_v58  ;;  %v7522_v30 = vsel %vm615_vm10, %v7385_v46, %v1895_v33  ;;  %v7526_v22 = vld [vmem:[#allocation2 + $0x20] sm:$0x77] }
 0x222   :  { %8626 = vst [vmem:[#allocation10_spill] sm:$0xff] %v7479_v36  ;;  %v5479_v8 = vld [vmem:[%s8437_s5 + $0xd0] sm:$0xff]  ;;  %v7524_v56 = vld [vmem:[#allocation2 + $0x10] sm:$0x33]  ;;  %v7536_v54 = vsel %vm617_vm7, %v7385_v46, %v1895_v33  ;;  %3775 = vmatpush.bf16.msrb.mxu2 %v5471_v57  ;;  %v8632_v46 = vrot.slane %v7110_v26, 2  ;;  %v5478_v57 = vld [vmem:[%s8437_s5 + $0xc8] sm:$0xff] }
 0x223   :  { %2406 = vst [vmem:[#allocation1] ss:$4 sm:$0xff] %v7270_v34  ;;  %v5527_v16 = vld [vmem:[%s8437_s5 + $0x250] sm:$0xff]  ;;  %v2049_v34 = vrot.slane %v7444_v45, 2  ;;  %3889 = vmatpush.bf16.msrb.mxu0 %v5519_v18  ;;  %v8633_v18 = vrot.slane %v7185_v31, 7  ;;  %v5564_v2 = vld [vmem:[%s8437_s5 + $0x378] sm:$0xff] }
 0x224   :  { %v7510_v13 = vld.sshfl [vmem:[#allocation1 + $0x20] sm:$0xff pattern:$0x73625140]  ;;  %8628 = vst [vmem:[#allocation14_spill] sm:$0xff] %v7522_v30  ;;  %v7542_v36 = vld [vmem:[#allocation2 + $0x48] sm:$0x77]  ;;  %v1695_v33 = vsel %vm615_vm10, %v7110_v26, %v8632_v46  ;;  %3794 = vmatpush.bf16.msrb.mxu3 %v5479_v8 }
 0x225   :  { %8627 = vst [vmem:[#allocation11_spill] sm:$0xff] %v7510_v13  ;;  %v7528_v20 = vld.sshfl [vmem:[#allocation1 + $0x28] sm:$0xff pattern:$0x73625140]  ;;  %v7540_v13 = vld [vmem:[#allocation2 + $0x28] sm:$0x77]  ;;  %v1780_v58 = vsel %vm6932_vm0, %v7272_v15, %v8633_v18  ;;  %3908 = vmatpush.bf16.msrb.mxu1 %v5527_v16  ;;  %v2059_v31 = vsel %vm615_vm10, %v7444_v45, %v2049_v34 }
 0x226   :  { %8629 = vst [vmem:[#allocation15_spill] sm:$0xff] %v7524_v56  ;;  %v5526_v26 = vld [vmem:[%s8437_s5 + $0x248] sm:$0xff]  ;;  %v7570_v18 = vld [vmem:[#allocation2 + $0x10] sm:$0x77]  ;;  %v5517_v46 = vld [vmem:[%s8437_s5 + $0x200] sm:$0xff]  ;;  %v8634_v15 = vrot.slane %v7188_v21, 7 }
 0x227   :  { %8630 = vst [vmem:[#allocation16_spill] sm:$0xff] %v7528_v20  ;;  %v2050_v20 = vrot.slane %v7462_v59, 2  ;;  %3890 = vmatpush.bf16.msrb.mxu0 %v5518_v35  ;;  %v5469_v35 = vld [vmem:[%s8437_s5 + $0x80] sm:$0xff]  ;;  %v5556_v21 = vld [vmem:[%s8437_s5 + $0x338] sm:$0xff]  ;;  %v8635_v56 = vrot.slane %v7218_v40, 7  ;;  %vm4197_vm4 = vcmask 1041409  }
 0x228   :  { %2408 = vst [vmem:[#allocation1 + $0x1] ss:$4 sm:$0xff] %v7294_v48  ;;  %v5470_v48 = vld [vmem:[%s8437_s5 + $0x88] sm:$0xff]  ;;  %3795 = vmatpush.bf16.msrb.mxu3 %v5478_v57  ;;  %v8636_v57 = vrot.slane %v7256_v44, 7 }
 0x229   :  { %8631 = vst [vmem:[#allocation17_spill] sm:$0xff] %v7536_v54  ;;  %v2065_v8 = vsel %vm615_vm10, %v7462_v59, %v2050_v20  ;;  %3776 = vmatpush.bf16.msrb.mxu2 %v5470_v48  ;;  %v2066_v16 = vsel %vm617_vm7, %v7462_v59, %v2050_v20  ;;  %3909 = vmatpush.bf16.msrb.mxu1 %v5526_v26  ;;  %v5525_v48 = vld [vmem:[%s8437_s5 + $0x240] sm:$0xff]  ;;  %v2105_v59 = vshrl.u32 %v2059_v31, 16  ;;  %v2108_v20 = vshll.u32 %v2059_v31, 16  ;;  %v5555_v31 = vld [vmem:[%s8437_s5 + $0x330] sm:$0xff] }
 0x22a   :  { %2410 = vst [vmem:[#allocation1 + $0x2] ss:$4 sm:$0xff] %v7300_v51  ;;  %v2052_v51 = vrot.slane %v7526_v22, 2  ;;  %v1806_v37 = vsel %vm6932_vm0, %v7380_v27, %v8635_v56  ;;  %v2068_v27 = vrot.slane %v2066_v16, 2 }
 0x22b   :  { %2412 = vst [vmem:[#allocation1 + $0x3] ss:$4 sm:$0xff] %v7315_v41  ;;  %v8484_v41 = vrot.slane %v7494_v61, 2  ;;  %3891 = vmatpush.bf16.msrb.mxu0 %v5517_v46  ;;  %v1819_v46 = vsel %vm6932_vm0, %v7395_v19, %v8636_v57  ;;  %v2107_v16 = vrot.slane %v2105_v59, 6 }
 0x22c   :  { %2414 = vst [vmem:[#allocation1 + $0x20] ss:$4 sm:$0xff] %v7321_v17  ;;  %v1793_v17 = vsel %vm6932_vm0, %v7330_v14, %v8634_v15  ;;  %v2060_v15 = vsel %vm617_vm7, %v7444_v45, %v2049_v34  ;;  %v7621_v45 = vsel %vm617_vm7, %v7526_v22, %v2052_v51  ;;  %v5492_v34 = vld [vmem:[%s8437_s5 + $0x138] sm:$0xff]  ;;  %v2118_v14 = vshrl.u32 %v2065_v8, 16 }
 0x22d   :  { %2416 = vst [vmem:[#allocation1 + $0x21] ss:$4 sm:$0xff] %v7354_v55  ;;  %v7617_v55 = vsel %vm617_vm7, %v7494_v61, %v8484_v41  ;;  %v2121_v41 = vshll.u32 %v2065_v8, 16  ;;  %v8637_v8 = vrot.slane %v7334_v6, 7  ;;  %3777 = vmatpush.bf16.msrb.mxu2 %v5469_v35  ;;  %v2062_v40 = vrot.slane %v2060_v15, 2  ;;  %3910 = vmatpush.bf16.msrb.mxu1 %v5525_v48 }
 0x22e   :  { %2418 = vst [vmem:[#allocation1 + $0x22] ss:$4 sm:$0xff] %v7378_v60  ;;  %v5477_v60 = vld [vmem:[%s8437_s5 + $0xc0] sm:$0xff]  ;;  %v2074_v44 = vrot.slane %v7617_v55, 2  ;;  %v2080_v56 = vrot.slane %v7621_v45, 2  ;;  %v8638_v6 = vrot.slane %v7338_v9, 7 }
 0x22f   :  { %2420 = vst [vmem:[#allocation1 + $0x23] ss:$4 sm:$0xff] %v1695_v33  ;;  %v5500_v33 = vld [vmem:[%s8437_s5 + $0x178] sm:$0xff]  ;;  %v1832_v26 = vsel %vm6932_vm0, %v7401_v4, %v8637_v8  ;;  %3960 = vmatpush.bf16.msra.mxu0 %v5556_v21  ;;  %3796 = vmatpush.bf16.msrb.mxu3 %v5477_v60  ;;  %v8639_v4 = vrot.slane %v7359_v12, 7  ;;  %v2110_v21 = vrot.slane %v2108_v20, 7  ;;  %v5499_v9 = vld [vmem:[%s8437_s5 + $0x170] sm:$0xff] }
 0x230   :  { %v1845_v19 = vsel %vm6932_vm0, %v7409_v7, %v8638_v6  ;;  %v8640_v7 = vrot.slane %v7363_v28, 7  ;;  %v2120_v55 = vrot.slane %v2118_v14, 6  ;;  %v2123_v15 = vrot.slane %v2121_v41, 7  ;;  %3778 = vmatmul.bf16.vlgmr.msrb.gmra.mxu2 %v7249_v49  ;;  %v5563_v60 = vld [vmem:[%s8437_s5 + $0x370] sm:$0xff]  ;;  %v5554_v28 = vld [vmem:[%s8437_s5 + $0x328] sm:$0xff] }
 0x231   :  { %v1858_v35 = vsel %vm6932_vm0, %v7417_v42, %v8639_v4  ;;  %3808 = vmatpush.bf16.msra.mxu2 %v5492_v34  ;;  %v8641_v42 = vrot.slane %v7494_v61, 2  ;;  %3979 = vmatpush.bf16.msra.mxu1 %v5564_v2  ;;  %v8642_v48 = vrot.slane %v7540_v13, 2  ;;  %v8643_v49 = vrot.slane %v7542_v36, 2 }
 0x232   :  { %v7652_v30 = vld.sshfl [vmem:[#allocation1] sm:$0xff pattern:$0x73625140]  ;;  %v7654_v54 = vld.sshfl [vmem:[#allocation1 + $0x8] sm:$0xff pattern:$0x73625140]  ;;  %v1871_v12 = vsel %vm6932_vm0, %v7448_v53, %v8640_v7  ;;  %v2077_v53 = vsel %vm615_vm10, %v7526_v22, %v2052_v51  ;;  %3797 = vmatmul.bf16.vlgmr.msrb.gmra.mxu3 %v7276_v11  ;;  %v2111_v57 = vor.u32 %v2110_v21, %v2107_v16  ;;  %v2124_v4 = vor.u32 %v2123_v15, %v2120_v55 }
 0x233   :  { %2430 = vst [vmem:[#allocation1] ss:$4 sm:$0xff] %v1780_v58  ;;  %3827 = vmatpush.bf16.msra.mxu3 %v5500_v33  ;;  %v5491_v58 = vld [vmem:[%s8437_s5 + $0x130] sm:$0xff]  ;;  %3961 = vmatpush.bf16.msra.mxu0 %v5555_v31  ;;  %v8644_v22 = vrot.slane %v7570_v18, 2  ;;  %v8645_v14 = vrot.slane %v7572_v5, 2  ;;  %v7721_v20 = vshll.u32 %v2062_v40, 16  ;;  %v8646_v11 = vmov %v8642_v48 }
 0x234   :  { %2433 = vst [vmem:[#allocation1 + $0x1] ss:$4 sm:$0xff] %v1793_v17  ;;  %v2071_v17 = vsel %vm615_vm10, %v7494_v61, %v8641_v42  ;;  %v7696_v61 = vsel %vm617_vm7, %v7540_v13, %v8642_v48  ;;  %v7723_v34 = vshll.u32 %v2068_v27, 16  ;;  %v7729_v33 = vsel %vm615_vm10, %v7540_v13, %v8646_v11  ;;  %v5490_v40 = vld [vmem:[%s8437_s5 + $0x128] sm:$0xff] }
 0x235   :  { %2436 = vst [vmem:[#allocation1 + $0x2] ss:$4 sm:$0xff] %v1806_v37  ;;  %v7702_v37 = vsel %vm617_vm7, %v7542_v36, %v8643_v49  ;;  %v7713_v51 = vsel %vm617_vm7, %v7570_v18, %v8644_v22  ;;  %v7719_v59 = vsel %vm617_vm7, %v7572_v5, %v8645_v14  ;;  %v2131_v31 = vshrl.u32 %v2071_v17, 16  ;;  %3809 = vmatpush.bf16.msra.mxu2 %v5491_v58  ;;  %v5562_v16 = vld [vmem:[%s8437_s5 + $0x368] sm:$0xff] }
 0x236   :  { %v7704_v2 = vld.sshfl [vmem:[#allocation1 + $0x20] sm:$0xff pattern:$0x73625140]  ;;  %v7706_v41 = vld.sshfl [vmem:[#allocation1 + $0x28] sm:$0xff pattern:$0x73625140]  ;;  %v8647_v6 = vmov %v8643_v49  ;;  %3980 = vmatpush.bf16.msra.mxu1 %v5563_v60  ;;  %v8648_v58 = vmov %v8644_v22 }
 0x237   :  { %2439 = vst [vmem:[#allocation1 + $0x3] ss:$4 sm:$0xff] %v1819_v46  ;;  %v2134_v8 = vshll.u32 %v2071_v17, 16  ;;  %3828 = vmatpush.bf16.msra.mxu3 %v5499_v9  ;;  %v5498_v46 = vld [vmem:[%s8437_s5 + $0x168] sm:$0xff]  ;;  %v2086_v27 = vrot.slane %v7696_v61, 2  ;;  %v7742_v13 = vsel %vm615_vm10, %v7542_v36, %v8647_v6  ;;  %v2092_v21 = vrot.slane %v7702_v37, 2  ;;  %3962 = vmatpush.bf16.msra.mxu0 %v5554_v28 }
 0x238   :  { %2442 = vst [vmem:[#allocation1 + $0x20] ss:$4 sm:$0xff] %v1832_v26  ;;  %v7744_v26 = vshll.u32 %v2074_v44, 16  ;;  %v7754_v9 = vsel %vm615_vm10, %v7570_v18, %v8648_v58  ;;  %v2098_v36 = vrot.slane %v7713_v51, 2  ;;  %v2104_v7 = vrot.slane %v7719_v59, 2  ;;  %v5553_v44 = vld [vmem:[%s8437_s5 + $0x320] sm:$0xff] }
 0x239   :  { %2445 = vst [vmem:[#allocation1 + $0x21] ss:$4 sm:$0xff] %v1845_v19  ;;  %v2116_v19 = vrot.slane %v7721_v20, 7  ;;  %v2144_v42 = vshrl.u32 %v2077_v53, 16  ;;  %v2147_v17 = vshll.u32 %v2077_v53, 16  ;;  %v2157_v55 = vshrl.u32 %v7729_v33, 16  ;;  %3810 = vmatpush.bf16.msra.mxu2 %v5490_v40 }
 0x23a   :  { %2448 = vst [vmem:[#allocation1 + $0x22] ss:$4 sm:$0xff] %v1858_v35  ;;  %v7763_v15 = vrot.slane %v2111_v57, 2  ;;  %v2129_v18 = vrot.slane %v7723_v34, 7  ;;  %v7766_v60 = vrot.slane %v2131_v31, 6  ;;  %v7768_v48 = vrot.slane %v2134_v8, 7  ;;  %3981 = vmatpush.bf16.msra.mxu1 %v5562_v16 }
 0x23b   :  { %2451 = vst [vmem:[#allocation1 + $0x23] ss:$4 sm:$0xff] %v1871_v12  ;;  %3829 = vmatpush.bf16.msra.mxu3 %v5498_v46  ;;  %v5489_v35 = vld [vmem:[%s8437_s5 + $0x120] sm:$0xff]  ;;  %v7776_v53 = vrot.slane %v2124_v4, 2  ;;  %v2142_v12 = vrot.slane %v7744_v26, 7  ;;  %v7781_v61 = vshll.u32 %v2080_v56, 16  ;;  %3963 = vmatpush.bf16.msra.mxu0 %v5553_v44 }
 0x23c   :  { %v5497_v28 = vld [vmem:[%s8437_s5 + $0x160] sm:$0xff]  ;;  %v2160_v49 = vshll.u32 %v7729_v33, 16  ;;  %v5552_v22 = vld [vmem:[%s8437_s5 + $0x318] sm:$0xff]  ;;  %v8649_v14 = vrot.slane %v7426_v29, 9  ;;  %v8650_v11 = vrot.slane %v7422_v0, 9  ;;  %v8651_v56 = vrot.slane %v7442_v23, 9 }
 0x23d   :  { %v5561_v37 = vld [vmem:[%s8437_s5 + $0x360] sm:$0xff]  ;;  %v8652_v33 = vrot.slane %v7438_v62, 9  ;;  %v7802_v40 = vrot.slane %v2144_v42, 6  ;;  %v7804_v46 = vrot.slane %v2147_v17, 7  ;;  %v7806_v29 = vrot.slane %v2157_v55, 6  ;;  %3811 = vmatpush.bf16.msra.mxu2 %v5489_v35  ;;  %v5488_v58 = vld [vmem:[%s8437_s5 + $0x118] sm:$0xff] }
 0x23e   :  { %v1955_v45 = vsel %vm7053_vm2, %v8650_v11, %v8649_v14  ;;  %v2452_v31 = vld.sshfl [vmem:[#allocation1] sm:$0xff pattern:$0x73625140]  ;;  %v2453_v8 = vld.sshfl [vmem:[#allocation1 + $0x8] sm:$0xff pattern:$0x73625140]  ;;  %3982 = vmatpush.bf16.msra.mxu1 %v5561_v37 }
 0x23f   :  { %v1959_v57 = vsel %vm7053_vm2, %v8652_v33, %v8651_v56  ;;  %v2170_v0 = vshrl.u32 %v7742_v13, 16  ;;  %3892 = vmatmul.bf16.vlgmr.msrb.gmra.mxu0 %v2452_v31  ;;  %3911 = vmatmul.bf16.vlgmr.msrb.gmra.mxu1 %v2453_v8  ;;  %2461 = vst [vmem:[#allocation1] ss:$4 sm:$0xff] %v1955_v45  ;;  %v8653_v23 = vrot.slane %v7456_v1, 9  ;;  %v8654_v62 = vrot.slane %v7452_v63, 9  ;;  %v5496_v1 = vld [vmem:[%s8437_s5 + $0x158] sm:$0xff] }
 0x240   :  { %v2173_v4 = vshll.u32 %v7742_v13, 16  ;;  %v2183_v16 = vshrl.u32 %v7754_v9, 16  ;;  %2464 = vst [vmem:[#allocation1 + $0x1] ss:$4 sm:$0xff] %v1959_v57  ;;  %3830 = vmatpush.bf16.msra.mxu3 %v5497_v28  ;;  %v1985_v44 = vld [vmem:[#allocation2 + $0x58] sm:$0x33]  ;;  %3964 = vmatpush.bf16.msra.mxu0 %v5552_v22 }
 0x241   :  { %v1963_v6 = vsel %vm7053_vm2, %v8654_v62, %v8653_v23  ;;  %v1986_v63 = vld [vmem:[#allocation2 + $0x18] sm:$0x33]  ;;  %v8655_v42 = vrot.slane %v7471_v3, 9  ;;  %v8656_v17 = vrot.slane %v7460_v24, 9  ;;  %v7829_v55 = vrot.slane %v2160_v49, 7  ;;  %v5560_v14 = vld [vmem:[%s8437_s5 + $0x358] sm:$0xff]  ;;  %3812 = vmatpush.bf16.msra.mxu2 %v5488_v58 }
 0x242   :  { %v7831_v35 = vshll.u32 %v2086_v27, 16  ;;  %v7833_v28 = vshll.u32 %v2092_v21, 16  ;;  %2467 = vst [vmem:[#allocation1 + $0x2] ss:$4 sm:$0xff] %v1963_v6  ;;  %v5551_v24 = vld [vmem:[%s8437_s5 + $0x310] sm:$0xff]  ;;  %v8657_v27 = vrot.slane %v7486_v50, 9  ;;  %3783 = vmatmul.bf16.gmra.mxu2 %v7306_v38  ;;  %3983 = vmatpush.bf16.msra.mxu1 %v5560_v14 }
 0x243   :  { %v1967_v13 = vsel %vm7053_vm2, %v8656_v17, %v8655_v42  ;;  %v7838_v11 = vld.sshfl [vmem:[#allocation1 + $0x20] sm:$0xff pattern:$0x73625140]  ;;  %v1987_v3 = vld [vmem:[#allocation2 + $0x50] sm:$0x33]  ;;  %v8658_v21 = vrot.slane %v7475_v25, 9 }
 0x244   :  { %2470 = vst [vmem:[#allocation1 + $0x3] ss:$4 sm:$0xff] %v1967_v13  ;;  %v7849_v37 = vrot.slane %v2170_v0, 6  ;;  %v7851_v45 = vld.sshfl [vmem:[#allocation1 + $0x28] sm:$0xff pattern:$0x73625140]  ;;  %3831 = vmatpush.bf16.msra.mxu3 %v5496_v1  ;;  %3965 = vmatpush.bf16.msra.mxu0 %v5551_v24 }
 0x245   :  { %v1971_v49 = vsel %vm7053_vm2, %v8658_v21, %v8657_v27  ;;  %v1988_v56 = vld [vmem:[#allocation2 + $0x20] sm:$0x33]  ;;  %v8659_v33 = vrot.slane %v7505_v52, 9  ;;  %v8660_v22 = vrot.slane %v7490_v39, 9  ;;  %v8661_v31 = vrot.slane %v7518_v47, 9  ;;  %v5487_v39 = vld [vmem:[%s8437_s5 + $0x110] sm:$0xff] }
 0x246   :  { %v8662_v50 = vrot.slane %v7514_v10, 9  ;;  %v7865_v8 = vrot.slane %v2173_v4, 7  ;;  %v7867_v0 = vrot.slane %v2183_v16, 6  ;;  %2473 = vst [vmem:[#allocation1 + $0x20] ss:$4 sm:$0xff] %v1971_v49  ;;  %v5495_v47 = vld [vmem:[%s8437_s5 + $0x150] sm:$0xff]  ;;  %3813 = vmatpush.bf16.msra.mxu2 %v5487_v39 }
 0x247   :  { %v1975_v57 = vsel %vm7053_vm2, %v8660_v22, %v8659_v33  ;;  %v8663_v52 = vrot.slane %v7572_v5, 2  ;;  %v2186_v23 = vshll.u32 %v7754_v9, 16  ;;  %v5559_v62 = vld [vmem:[%s8437_s5 + $0x350] sm:$0xff]  ;;  %v2001_v6 = vrot.slane %v1985_v44, 2  ;;  %v8664_v16 = vld [vmem:[#allocation17_spill] sm:$0xff] }
 0x248   :  { %v1979_v25 = vsel %vm7053_vm2, %v8662_v50, %v8661_v31  ;;  %2476 = vst [vmem:[#allocation1 + $0x21] ss:$4 sm:$0xff] %v1975_v57  ;;  %v2002_v4 = vrot.slane %v1986_v63, 2  ;;  %v8665_v58 = vrot.slane %v8664_v16, 9  ;;  %v8666_v1 = vld [vmem:[#allocation14_spill] sm:$0xff]  ;;  %v2004_v9 = vrot.slane %v1988_v56, 2  ;;  %3832 = vmatpush.bf16.msra.mxu3 %v5495_v47  ;;  %3984 = vmatpush.bf16.msra.mxu1 %v5559_v62 }
 0x249   :  { %v2101_v10 = vsel %vm615_vm10, %v7572_v5, %v8663_v52  ;;  %v8667_v42 = vrot.slane %v8666_v1, 9  ;;  %v8668_v5 = vld [vmem:[#allocation9_spill] sm:$0xff]  ;;  %2479 = vst [vmem:[#allocation1 + $0x22] ss:$4 sm:$0xff] %v1979_v25  ;;  %v1989_v13 = vld [vmem:[#allocation2 + $0x28] sm:$0x33]  ;;  %v2011_v31 = vsel %vm615_vm10, %v1985_v44, %v2001_v6 }
 0x24a   :  { %3802 = vmatmul.bf16.gmra.mxu3 %v8668_v5  ;;  %v5550_v38 = vld [vmem:[%s8437_s5 + $0x308] sm:$0xff]  ;;  %v2003_v27 = vrot.slane %v1987_v3, 2  ;;  %v1990_v21 = vld [vmem:[#allocation2 + $0x48] sm:$0x33]  ;;  %v2196_v49 = vshrl.u32 %v2101_v10, 16  ;;  %v2199_v33 = vshll.u32 %v2101_v10, 16  ;;  %v2014_v52 = vsel %vm615_vm10, %v1986_v63, %v2002_v4 }
 0x24b   :  { %v1983_v17 = vsel %vm7053_vm2, %v8667_v42, %v8665_v58  ;;  %v5486_v14 = vld [vmem:[%s8437_s5 + $0x108] sm:$0xff]  ;;  %v7904_v50 = vld.sshfl [vmem:[#allocation1] sm:$0xff pattern:$0x73625140]  ;;  %v7910_v39 = vshll.u32 %v2098_v36, 16  ;;  %3966 = vmatpush.bf16.msra.mxu0 %v5550_v38  ;;  %v2020_v10 = vsel %vm615_vm10, %v1988_v56, %v2004_v9  ;;  %v2005_v62 = vrot.slane %v1989_v13, 2 }
 0x24c   :  { %2482 = vst [vmem:[#allocation1 + $0x23] ss:$4 sm:$0xff] %v1983_v17  ;;  %v5494_v24 = vld [vmem:[%s8437_s5 + $0x148] sm:$0xff]  ;;  %v5549_v47 = vld [vmem:[%s8437_s5 + $0x300] sm:$0xff]  ;;  %v7917_v44 = vrot.slane %v2186_v23, 7  ;;  %v2017_v6 = vsel %vm615_vm10, %v1987_v3, %v2003_v27  ;;  %v2006_v16 = vrot.slane %v1990_v21, 2  ;;  %v2137_v36 = vor.u32 %v7768_v48, %v7766_v60  ;;  %3814 = vmatpush.bf16.msra.mxu2 %v5486_v14 }
 0x24d   :  { %v5558_v22 = vld [vmem:[%s8437_s5 + $0x348] sm:$0xff]  ;;  %v2150_v58 = vor.u32 %v7804_v46, %v7802_v40  ;;  %v7924_v1 = vrot.slane %v2196_v49, 6  ;;  %3833 = vmatpush.bf16.msra.mxu3 %v5494_v24  ;;  %v5485_v63 = vld [vmem:[%s8437_s5 + $0x100] sm:$0xff]  ;;  %v2163_v60 = vor.u32 %v7829_v55, %v7806_v29  ;;  %v7937_v48 = vrot.slane %v2199_v33, 7  ;;  %v5508_v40 = vld [vmem:[%s8437_s5 + $0x1b8] sm:$0xff] }
 0x24e   :  { %v1992_v57 = vld [vmem:[#allocation2 + $0x40] sm:$0x33]  ;;  %v5493_v3 = vld [vmem:[%s8437_s5 + $0x140] sm:$0xff]  ;;  %3985 = vmatpush.bf16.msra.mxu1 %v5558_v22  ;;  %v5516_v46 = vld [vmem:[%s8437_s5 + $0x1f8] sm:$0xff]  ;;  %v2023_v17 = vsel %vm615_vm10, %v1989_v13, %v2005_v62  ;;  %v2176_v9 = vor.u32 %v7865_v8, %v7849_v37  ;;  %v2026_v49 = vsel %vm615_vm10, %v1990_v21, %v2006_v16  ;;  %v2138_v33 = vrot.slane %v2137_v36, 2 }
 0x24f   :  { %v7906_v25 = vld.sshfl [vmem:[#allocation1 + $0x8] sm:$0xff pattern:$0x73625140]  ;;  %v2008_v51 = vrot.slane %v1992_v57, 2  ;;  %v5557_v56 = vld [vmem:[%s8437_s5 + $0x340] sm:$0xff]  ;;  %v5588_v23 = vld [vmem:[%s8437_s5 + $0x438] sm:$0xff]  ;;  %3967 = vmatpush.bf16.msra.mxu0 %v5549_v47  ;;  %3916 = vmatmul.bf16.gmra.mxu1 %v7851_v45  ;;  %v2189_v21 = vor.u32 %v7917_v44, %v7867_v0  ;;  %v2202_v47 = vor.u32 %v7937_v48, %v7924_v1  ;;  %v2130_v16 = vsel %vm6932_vm0, %v7776_v53, %v2129_v18 }
 0x250   :  { %2491 = vst [vmem:[#allocation1] ss:$4 sm:$0xff] %v2011_v31  ;;  %v8669_v4 = vld [vmem:[#allocation15_spill] sm:$0xff]  ;;  %v7952_v55 = vld [vmem:[#allocation2 + $0x58] sm:$0x66]  ;;  %3897 = vmatmul.bf16.gmra.mxu0 %v7838_v11  ;;  %v2151_v24 = vrot.slane %v2150_v58, 2  ;;  %3815 = vmatpush.bf16.msra.mxu2 %v5485_v63 }
 0x251   :  { %2493 = vst [vmem:[#allocation1 + $0x1] ss:$4 sm:$0xff] %v2014_v52  ;;  %v8670_v42 = vrot.slane %v8669_v4, 2  ;;  %v7961_v14 = vld [vmem:[#allocation2 + $0x18] sm:$0x66]  ;;  %v5596_v27 = vld [vmem:[%s8437_s5 + $0x478] sm:$0xff]  ;;  %v2032_v13 = vsel %vm615_vm10, %v1992_v57, %v2008_v51  ;;  %3834 = vmatpush.bf16.msra.mxu3 %v5493_v3 }
 0x252   :  { %2495 = vst [vmem:[#allocation1 + $0x2] ss:$4 sm:$0xff] %v2017_v6  ;;  %v2155_v22 = vrot.slane %v7781_v61, 7  ;;  %v2168_v37 = vrot.slane %v7831_v35, 7  ;;  %v7972_v8 = vld [vmem:[#allocation2 + $0x50] sm:$0x66]  ;;  %3986 = vmatpush.bf16.msra.mxu1 %v5557_v56  ;;  %v2117_v6 = vsel %vm6932_vm0, %v7763_v15, %v2116_v19  ;;  %v2143_v19 = vsel %vm6932_vm0, %v2138_v33, %v2142_v12 }
 0x253   :  { %2497 = vst [vmem:[#allocation1 + $0x3] ss:$4 sm:$0xff] %v2020_v10  ;;  %v2029_v29 = vsel %vm615_vm10, %v8669_v4, %v8670_v42  ;;  %v7955_v5 = vld.sshfl [vmem:[#allocation1 + $0x20] sm:$0xff pattern:$0x73625140]  ;;  %v2164_v11 = vrot.slane %v2163_v60, 2  ;;  %4036 = vmatpush.bf16.msrb.mxu0 %v5588_v23 }
 0x254   :  { %v7957_v38 = vld.sshfl [vmem:[#allocation1 + $0x28] sm:$0xff pattern:$0x73625140]  ;;  %v2181_v45 = vrot.slane %v7833_v28, 7  ;;  %v7979_v57 = vshll.u32 %v2104_v7, 16  ;;  %3846 = vmatpush.bf16.msrb.mxu2 %v5508_v40  ;;  %v2194_v35 = vrot.slane %v7910_v39, 7  ;;  %v2156_v51 = vsel %vm6932_vm0, %v2151_v24, %v2155_v22 }
 0x255   :  { %2499 = vst [vmem:[#allocation1 + $0x20] ss:$4 sm:$0xff] %v2023_v17  ;;  %v7981_v31 = vld [vmem:[#allocation2 + $0x28] sm:$0x66]  ;;  %3865 = vmatpush.bf16.msrb.mxu3 %v5516_v46  ;;  %v2212_v7 = vld [vmem:[#allocation2 + $0x20] sm:$0x66]  ;;  %v2169_v48 = vsel %vm6932_vm0, %v2164_v11, %v2168_v37 }
 0x256   :  { %2501 = vst [vmem:[#allocation1 + $0x21] ss:$4 sm:$0xff] %v2026_v49  ;;  %v7983_v61 = vld [vmem:[#allocation2 + $0x48] sm:$0x66]  ;;  %v2177_v28 = vrot.slane %v2176_v9, 2  ;;  %v2225_v52 = vrot.slane %v7952_v55, 2  ;;  %4055 = vmatpush.bf16.msrb.mxu1 %v5596_v27 }
 0x257   :  { %2503 = vst [vmem:[#allocation1 + $0x22] ss:$4 sm:$0xff] %v2029_v29  ;;  %v5507_v59 = vld [vmem:[%s8437_s5 + $0x1b0] sm:$0xff]  ;;  %v7991_v0 = vld [vmem:[#allocation2 + $0x10] sm:$0x66]  ;;  %v2226_v10 = vrot.slane %v7961_v14, 2 }
 0x258   :  { %2505 = vst [vmem:[#allocation1 + $0x23] ss:$4 sm:$0xff] %v2032_v13  ;;  %v5515_v39 = vld [vmem:[%s8437_s5 + $0x1f0] sm:$0xff]  ;;  %v2190_v1 = vrot.slane %v2189_v21, 2  ;;  %v2207_v20 = vrot.slane %v7979_v57, 7  ;;  %v2227_v63 = vrot.slane %v7972_v8, 2  ;;  %3847 = vmatpush.bf16.msrb.mxu2 %v5507_v59  ;;  %v2182_v26 = vsel %vm6932_vm0, %v2177_v28, %v2181_v45 }
 0x259   :  { %v5587_v62 = vld [vmem:[%s8437_s5 + $0x430] sm:$0xff]  ;;  %v8671_v3 = vld [vmem:[#allocation13_spill] sm:$0xff]  ;;  %v2228_v34 = vrot.slane %v2212_v7, 2  ;;  %v2203_v15 = vrot.slane %v2202_v47, 2  ;;  %v2229_v18 = vrot.slane %v7981_v31, 2  ;;  %v2230_v53 = vrot.slane %v7983_v61, 2  ;;  %3866 = vmatpush.bf16.msrb.mxu3 %v5515_v39 }
 0x25a   :  { %v5595_v44 = vld [vmem:[%s8437_s5 + $0x470] sm:$0xff]  ;;  %v8016_v36 = vld.sshfl [vmem:[#allocation1] sm:$0xff pattern:$0x73625140]  ;;  %3816 = vmatmul.bf16.vlgmr.msra.gmra.mxu2 %v8671_v3  ;;  %v5506_v60 = vld [vmem:[%s8437_s5 + $0x1a8] sm:$0xff]  ;;  %v2235_v12 = vsel %vm615_vm10, %v7952_v55, %v2225_v52  ;;  %4037 = vmatpush.bf16.msrb.mxu0 %v5587_v62  ;;  %v2231_v4 = vrot.slane %v7991_v0, 2  ;;  %v2237_v42 = vsel %vm617_vm7, %v7952_v55, %v2225_v52  ;;  %v2242_v29 = vsel %vm615_vm10, %v7961_v14, %v2226_v10 }
 0x25b   :  { %v8018_v58 = vld.sshfl [vmem:[#allocation1 + $0x8] sm:$0xff pattern:$0x73625140]  ;;  %v2244_v17 = vsel %vm617_vm7, %v7961_v14, %v2226_v10  ;;  %4056 = vmatpush.bf16.msrb.mxu1 %v5595_v44  ;;  %v2195_v27 = vsel %vm6932_vm0, %v2190_v1, %v2194_v35  ;;  %v2249_v49 = vsel %vm615_vm10, %v7972_v8, %v2227_v63  ;;  %v2256_v33 = vsel %vm615_vm10, %v2212_v7, %v2228_v34  ;;  %v5505_v37 = vld [vmem:[%s8437_s5 + $0x1a0] sm:$0xff] }
 0x25c   :  { %2515 = vst [vmem:[#allocation1] ss:$4 sm:$0xff] %v2117_v6  ;;  %v8672_v56 = vld [vmem:[#allocation10_spill] sm:$0xff]  ;;  %v2258_v14 = vsel %vm617_vm7, %v2212_v7, %v2228_v34  ;;  %v2251_v24 = vsel %vm617_vm7, %v7972_v8, %v2227_v63  ;;  %v8069_v22 = vsel %vm615_vm10, %v7981_v31, %v2229_v18  ;;  %3848 = vmatpush.bf16.msrb.mxu2 %v5506_v60  ;;  %v4701_v21 = vrot.slane %v2235_v12, 9  ;;  %v5513_v8 = vld [vmem:[%s8437_s5 + $0x1e0] sm:$0xff] }
 0x25d   :  { %3835 = vmatmul.bf16.vlgmr.msra.gmra.mxu3 %v8672_v56  ;;  %2518 = vst [vmem:[#allocation1 + $0x1] ss:$4 sm:$0xff] %v2130_v16  ;;  %v5514_v40 = vld [vmem:[%s8437_s5 + $0x1e8] sm:$0xff]  ;;  %v2208_v11 = vsel %vm6932_vm0, %v2203_v15, %v2207_v20  ;;  %v4702_v57 = vrot.slane %v2237_v42, 9  ;;  %v4703_v35 = vrot.slane %v2242_v29, 9  ;;  %v4704_v47 = vrot.slane %v2244_v17, 9 }
 0x25e   :  { %2521 = vst [vmem:[#allocation1 + $0x2] ss:$4 sm:$0xff] %v2143_v19  ;;  %v5586_v46 = vld [vmem:[%s8437_s5 + $0x428] sm:$0xff]  ;;  %3867 = vmatpush.bf16.msrb.mxu3 %v5514_v40  ;;  %v5585_v59 = vld [vmem:[%s8437_s5 + $0x420] sm:$0xff]  ;;  %v4707_v32 = vrot.slane %v2256_v33, 9  ;;  %v4708_v7 = vrot.slane %v2258_v14, 9  ;;  %v2265_v28 = vsel %vm617_vm7, %v7981_v31, %v2229_v18  ;;  %v2270_v52 = vsel %vm615_vm10, %v7983_v61, %v2230_v53 }
 0x25f   :  { %v2216_v23 = vld [vmem:[#allocation2 + $0x40] sm:$0x66]  ;;  %2524 = vst [vmem:[#allocation1 + $0x3] ss:$4 sm:$0xff] %v2156_v51  ;;  %4038 = vmatpush.bf16.msrb.mxu0 %v5586_v46  ;;  %v4705_v10 = vrot.slane %v2249_v49, 9  ;;  %v4706_v39 = vrot.slane %v2251_v24, 9  ;;  %v2272_v44 = vsel %vm617_vm7, %v7983_v61, %v2230_v53  ;;  %v2277_v1 = vsel %vm615_vm10, %v7991_v0, %v2231_v4  ;;  %3987 = vmatmul.bf16.vlgmr.msra.gmra.mxu1 %v8018_v58 }
 0x260   :  { %v5594_v9 = vld [vmem:[%s8437_s5 + $0x468] sm:$0xff]  ;;  %v8059_v13 = vld.sshfl [vmem:[#allocation1 + $0x20] sm:$0xff pattern:$0x73625140]  ;;  %v2232_v45 = vrot.slane %v2216_v23, 2  ;;  %v4709_v6 = vrot.slane %v8069_v22, 9  ;;  %3849 = vmatpush.bf16.msrb.mxu2 %v5505_v37  ;;  %v2279_v20 = vsel %vm617_vm7, %v7991_v0, %v2231_v4  ;;  %v2292_v61 = vsel %vm7053_vm2, %v4701_v21, %v4702_v57  ;;  %3968 = vmatmul.bf16.vlgmr.msra.gmra.mxu0 %v8016_v36 }
 0x261   :  { %v8061_v55 = vld.sshfl [vmem:[#allocation1 + $0x28] sm:$0xff pattern:$0x73625140]  ;;  %4057 = vmatpush.bf16.msrb.mxu1 %v5594_v9  ;;  %v5593_v62 = vld [vmem:[%s8437_s5 + $0x460] sm:$0xff]  ;;  %v5504_v31 = vld [vmem:[%s8437_s5 + $0x198] sm:$0xff]  ;;  %v2296_v34 = vsel %vm7053_vm2, %v4703_v35, %v4704_v47  ;;  %v4710_v19 = vrot.slane %v2265_v28, 9  ;;  %v2304_v18 = vsel %vm7053_vm2, %v4707_v32, %v4708_v7  ;;  %v2300_v58 = vsel %vm7053_vm2, %v4705_v10, %v4706_v39 }
 0x262   :  { %2527 = vst [vmem:[#allocation1 + $0x20] ss:$4 sm:$0xff] %v2169_v48  ;;  %v2284_v16 = vsel %vm615_vm10, %v2216_v23, %v2232_v45  ;;  %v2286_v51 = vsel %vm617_vm7, %v2216_v23, %v2232_v45  ;;  %v4711_v15 = vrot.slane %v2270_v52, 9  ;;  %3868 = vmatpush.bf16.msrb.mxu3 %v5513_v8  ;;  %v5512_v0 = vld [vmem:[%s8437_s5 + $0x1d8] sm:$0xff]  ;;  %v4712_v53 = vrot.slane %v2272_v44, 9  ;;  %v5503_v40 = vld [vmem:[%s8437_s5 + $0x190] sm:$0xff] }
 0x263   :  { %2530 = vst [vmem:[#allocation1 + $0x21] ss:$4 sm:$0xff] %v2182_v26  ;;  %4039 = vmatpush.bf16.msrb.mxu0 %v5585_v59  ;;  %v5584_v36 = vld [vmem:[%s8437_s5 + $0x418] sm:$0xff]  ;;  %v4715_v60 = vrot.slane %v2284_v16, 9  ;;  %v4716_v48 = vrot.slane %v2286_v51, 9  ;;  %v4713_v26 = vrot.slane %v2277_v1, 9  ;;  %v2308_v4 = vsel %vm7053_vm2, %v4709_v6, %v4710_v19 }
 0x264   :  { %2533 = vst [vmem:[#allocation1 + $0x22] ss:$4 sm:$0xff] %v2195_v27  ;;  %v5592_v56 = vld [vmem:[%s8437_s5 + $0x458] sm:$0xff]  ;;  %v4714_v12 = vrot.slane %v2279_v20, 9  ;;  %3850 = vmatpush.bf16.msrb.mxu2 %v5504_v31  ;;  %v5511_v46 = vld [vmem:[%s8437_s5 + $0x1d0] sm:$0xff]  ;;  %v2312_v17 = vsel %vm7053_vm2, %v4711_v15, %v4712_v53  ;;  %v5502_v24 = vld [vmem:[%s8437_s5 + $0x188] sm:$0xff] }
 0x265   :  { %2536 = vst [vmem:[#allocation1 + $0x23] ss:$4 sm:$0xff] %v2208_v11  ;;  %4058 = vmatpush.bf16.msrb.mxu1 %v5593_v62  ;;  %v5583_v23 = vld [vmem:[%s8437_s5 + $0x410] sm:$0xff]  ;;  %v2320_v49 = vsel %vm7053_vm2, %v4715_v60, %v4716_v48  ;;  %v8674_v14 = vld [vmem:[#allocation16_spill] sm:$0xff]  ;;  %v5510_v22 = vld [vmem:[%s8437_s5 + $0x1c8] sm:$0xff] }
 0x266   :  { %v8104_v63 = vld.sshfl [vmem:[#allocation1] sm:$0xff pattern:$0x73625140]  ;;  %v8106_v3 = vld.sshfl [vmem:[#allocation1 + $0x8] sm:$0xff pattern:$0x73625140]  ;;  %3869 = vmatpush.bf16.msrb.mxu3 %v5512_v0  ;;  %v2316_v33 = vsel %vm7053_vm2, %v4713_v26, %v4714_v12 }
 0x267   :  { %2546 = vst [vmem:[#allocation1] ss:$4 sm:$0xff] %v2292_v61  ;;  %4040 = vmatpush.bf16.msrb.mxu0 %v5584_v36  ;;  %v8673_v9 = vld [vmem:[#allocation11_spill] sm:$0xff]  ;;  %v5590_v37 = vld [vmem:[%s8437_s5 + $0x448] sm:$0xff]  ;;  %v5501_v11 = vld [vmem:[%s8437_s5 + $0x180] sm:$0xff] }
 0x268   :  { %2549 = vst [vmem:[#allocation1 + $0x1] ss:$4 sm:$0xff] %v2296_v34  ;;  %v5591_v27 = vld [vmem:[%s8437_s5 + $0x450] sm:$0xff]  ;;  %3851 = vmatpush.bf16.msrb.mxu2 %v5503_v40  ;;  %v5509_v45 = vld [vmem:[%s8437_s5 + $0x1c0] sm:$0xff]  ;;  %v5540_v35 = vld [vmem:[%s8437_s5 + $0x2b8] sm:$0xff] }
 0x269   :  { %2552 = vst [vmem:[#allocation1 + $0x2] ss:$4 sm:$0xff] %v2300_v58  ;;  %4059 = vmatpush.bf16.msrb.mxu1 %v5592_v56  ;;  %v5581_v21 = vld [vmem:[%s8437_s5 + $0x400] sm:$0xff]  ;;  %v5548_v47 = vld [vmem:[%s8437_s5 + $0x2f8] sm:$0xff]  ;;  %v5539_v8 = vld [vmem:[%s8437_s5 + $0x2b0] sm:$0xff] }
 0x26a   :  { %2555 = vst [vmem:[#allocation1 + $0x3] ss:$4 sm:$0xff] %v2304_v18  ;;  %3821 = vmatmul.bf16.gmra.mxu2 %v8673_v9  ;;  %3870 = vmatpush.bf16.msrb.mxu3 %v5511_v46  ;;  %v5589_v57 = vld [vmem:[%s8437_s5 + $0x440] sm:$0xff]  ;;  %v5547_v59 = vld [vmem:[%s8437_s5 + $0x2f0] sm:$0xff]  ;;  %v5544_v52 = vld [vmem:[%s8437_s5 + $0x2d8] sm:$0xff] }
 0x26b   :  { %4041 = vmatpush.bf16.msrb.mxu0 %v5583_v23  ;;  %v5537_v32 = vld [vmem:[%s8437_s5 + $0x2a0] sm:$0xff]  ;;  %v5535_v10 = vld [vmem:[%s8437_s5 + $0x290] sm:$0xff]  ;;  %v5534_v62 = vld [vmem:[%s8437_s5 + $0x288] sm:$0xff] }
 0x26c   :  { %v8135_v42 = vld.sshfl [vmem:[#allocation1 + $0x20] sm:$0xff pattern:$0x73625140]  ;;  %v8137_v29 = vld.sshfl [vmem:[#allocation1 + $0x28] sm:$0xff pattern:$0x73625140]  ;;  %3852 = vmatpush.bf16.msrb.mxu2 %v5502_v24 }
 0x26d   :  { %2558 = vst [vmem:[#allocation1 + $0x20] ss:$4 sm:$0xff] %v2308_v4  ;;  %3840 = vmatmul.bf16.gmra.mxu3 %v8674_v14  ;;  %4060 = vmatpush.bf16.msrb.mxu1 %v5591_v27  ;;  %v5543_v39 = vld [vmem:[%s8437_s5 + $0x2d0] sm:$0xff]  ;;  %v5542_v44 = vld [vmem:[%s8437_s5 + $0x2c8] sm:$0xff]  ;;  %v5533_v6 = vld [vmem:[%s8437_s5 + $0x280] sm:$0xff] }
 0x26e   :  { %2561 = vst [vmem:[#allocation1 + $0x21] ss:$4 sm:$0xff] %v2312_v17  ;;  %3871 = vmatpush.bf16.msrb.mxu3 %v5510_v22  ;;  %v5580_v31 = vld [vmem:[%s8437_s5 + $0x3f8] sm:$0xff]  ;;  %v5631_v1 = vld [vmem:[%s8438_s6] ss:$0 sm:$0xff]  ;;  %v5571_v20 = vld [vmem:[%s8437_s5 + $0x3b0] sm:$0xff] }
 0x26f   :  { %2564 = vst [vmem:[#allocation1 + $0x22] ss:$4 sm:$0xff] %v2316_v33  ;;  %4042 = vmatpush.bf16.msrb.mxu0 %v5582_v43  ;;  %3992 = vmatmul.bf16.gmra.mxu1 %v8061_v55  ;;  %v5546_v55 = vld [vmem:[%s8437_s5 + $0x2e8] sm:$0xff]  ;;  %v5579_v61 = vld [vmem:[%s8437_s5 + $0x3f0] sm:$0xff]  ;;  %v5569_v58 = vld [vmem:[%s8437_s5 + $0x3a0] sm:$0xff] }
 0x270   :  { %2567 = vst [vmem:[#allocation1 + $0x23] ss:$4 sm:$0xff] %v2320_v49  ;;  %3853 = vmatpush.bf16.msrb.mxu2 %v5501_v11  ;;  %3973 = vmatmul.bf16.gmra.mxu0 %v8059_v13  ;;  %v5538_v13 = vld [vmem:[%s8437_s5 + $0x2a8] sm:$0xff]  ;;  %v5577_v53 = vld [vmem:[%s8437_s5 + $0x3e0] sm:$0xff]  ;;  %v5567_v48 = vld [vmem:[%s8437_s5 + $0x390] sm:$0xff] }
 0x271   :  { %4061 = vmatpush.bf16.msrb.mxu1 %v5590_v37  ;;  %v2568_v7 = vld.sshfl [vmem:[#allocation1] sm:$0xff pattern:$0x73625140]  ;;  %v2569_v28 = vld.sshfl [vmem:[#allocation1 + $0x8] sm:$0xff pattern:$0x73625140] }
 0x272   :  { %3872 = vmatpush.bf16.msrb.mxu3 %v5509_v45  ;;  %v5570_v0 = vld [vmem:[%s8437_s5 + $0x3a8] sm:$0xff]  ;;  %v5575_v26 = vld [vmem:[%s8437_s5 + $0x3d0] sm:$0xff]  ;;  %v5565_v17 = vld [vmem:[%s8437_s5 + $0x380] sm:$0xff] }
 0x273   :  { %4043 = vmatpush.bf16.msrb.mxu0 %v5581_v21  ;;  %v5578_v36 = vld [vmem:[%s8437_s5 + $0x3e8] sm:$0xff] }
 0x274   :  { %3922 = vmatpush.bf16.msra.mxu2 %v5540_v35  ;;  %v5566_v12 = vld [vmem:[%s8437_s5 + $0x388] sm:$0xff] }
 0x275   :  { %4062 = vmatpush.bf16.msrb.mxu1 %v5589_v57  ;;  %v5574_v40 = vld [vmem:[%s8437_s5 + $0x3c8] sm:$0xff] }
 0x276   :  { %3941 = vmatpush.bf16.msra.mxu3 %v5548_v47 }
 0x277   :  { %v2570_v16 = vld.sshfl [vmem:[#allocation1 + $0x20] sm:$0xff pattern:$0x73625140]  ;;  %v2571_v51 = vld.sshfl [vmem:[#allocation1 + $0x28] sm:$0xff pattern:$0x73625140] }
 0x278   :  { %3923 = vmatpush.bf16.msra.mxu2 %v5539_v8 }
 0x27a   :  { %3854 = vmatmul.bf16.vlgmr.msrb.gmra.mxu2 %v7652_v30  ;;  %3942 = vmatpush.bf16.msra.mxu3 %v5547_v59  ;;  %v5545_v30 = vld [vmem:[%s8437_s5 + $0x2e0] sm:$0xff] }
 0x27c   :  { %3924 = vmatpush.bf16.msra.mxu2 %v5538_v13 }
 0x27d   :  { %3873 = vmatmul.bf16.vlgmr.msrb.gmra.mxu3 %v7654_v54  ;;  %v5536_v54 = vld [vmem:[%s8437_s5 + $0x298] sm:$0xff] }
 0x27e   :  { %3943 = vmatpush.bf16.msra.mxu3 %v5546_v55 }
 0x27f   :  { %4063 = vmatmul.bf16.vlgmr.msrb.gmra.mxu1 %v2569_v28 }
 0x280   :  { %3925 = vmatpush.bf16.msra.mxu2 %v5537_v32  ;;  %4044 = vmatmul.bf16.vlgmr.msrb.gmra.mxu0 %v2568_v7 }
 0x282   :  { %3944 = vmatpush.bf16.msra.mxu3 %v5545_v30 }
 0x284   :  { %3926 = vmatpush.bf16.msra.mxu2 %v5536_v54 }
 0x286   :  { %3945 = vmatpush.bf16.msra.mxu3 %v5544_v52 }
 0x288   :  { %3927 = vmatpush.bf16.msra.mxu2 %v5535_v10 }
 0x28a   :  { %3859 = vmatmul.bf16.gmra.mxu2 %v7704_v2  ;;  %3946 = vmatpush.bf16.msra.mxu3 %v5543_v39  ;;  %v5541_v2 = vld [vmem:[%s8437_s5 + $0x2c0] sm:$0xff]  ;;  %v3741_v34 = vpop.f32.mrf.mxu2 }
 0x28b   :  { %v3742_v19 = vadd.f32 %v5631_v1, %v3741_v34  ;;  %v3760_v15 = vpop.f32.mrf.mxu3 }
 0x28c   :  { %3928 = vmatpush.bf16.msra.mxu2 %v5534_v62 }
 0x28d   :  { %3878 = vmatmul.bf16.gmra.mxu3 %v7706_v41  ;;  %v5572_v41 = vld [vmem:[%s8437_s5 + $0x3b8] sm:$0xff]  ;;  %v3761_v18 = vadd.f32 %v3760_v15, %v3742_v19 }
 0x28e   :  { %3947 = vmatpush.bf16.msra.mxu3 %v5542_v44 }
 0x28f   :  { %4068 = vmatmul.bf16.gmra.mxu1 %v2571_v51 }
 0x290   :  { %3929 = vmatpush.bf16.msra.mxu2 %v5533_v6  ;;  %4049 = vmatmul.bf16.gmra.mxu0 %v2570_v16 }
 0x292   :  { %3948 = vmatpush.bf16.msra.mxu3 %v5541_v2  ;;  %v3743_v56 = vpop.f32.mrf.mxu2 }
 0x293   :  { %v3762_v60 = vpop.f32.mrf.mxu3  ;;  %v3744_v43 = vadd.f32 %v5631_v1, %v3743_v56 }
 0x294   :  { %3998 = vmatpush.bf16.msrb.mxu2 %v5572_v41 }
 0x295   :  { %v3763_v11 = vadd.f32 %v3762_v60, %v3744_v43 }
 0x296   :  { %4017 = vmatpush.bf16.msrb.mxu3 %v5580_v31 }
 0x298   :  { %3999 = vmatpush.bf16.msrb.mxu2 %v5571_v20 }
 0x29a   :  { %3930 = vmatmul.bf16.vlgmr.msra.gmra.mxu2 %v7904_v50  ;;  %4018 = vmatpush.bf16.msrb.mxu3 %v5579_v61  ;;  %v5568_v50 = vld [vmem:[%s8437_s5 + $0x398] sm:$0xff]  ;;  %v3746_v46 = vpop.f32.mrf.mxu2 }
 0x29b   :  { %v3765_v23 = vpop.f32.mrf.mxu3  ;;  %v3747_v4 = vadd.f32 %v5631_v1, %v3746_v46 }
 0x29c   :  { %4000 = vmatpush.bf16.msrb.mxu2 %v5570_v0 }
 0x29d   :  { %3949 = vmatmul.bf16.vlgmr.msra.gmra.mxu3 %v7906_v25  ;;  %v5576_v25 = vld [vmem:[%s8437_s5 + $0x3d8] sm:$0xff]  ;;  %v3766_v9 = vadd.f32 %v3765_v23, %v3747_v4 }
 0x29e   :  { %4019 = vmatpush.bf16.msrb.mxu3 %v5578_v36 }
 0x2a0   :  { %4001 = vmatpush.bf16.msrb.mxu2 %v5569_v58 }
 0x2a2   :  { %4020 = vmatpush.bf16.msrb.mxu3 %v5577_v53  ;;  %v3748_v27 = vpop.f32.mrf.mxu2 }
 0x2a3   :  { %v3767_v49 = vpop.f32.mrf.mxu3  ;;  %v3749_v33 = vadd.f32 %v5631_v1, %v3748_v27 }
 0x2a4   :  { %4002 = vmatpush.bf16.msrb.mxu2 %v5568_v50 }
 0x2a6   :  { %4021 = vmatpush.bf16.msrb.mxu3 %v5576_v25 }
 0x2a8   :  { %4003 = vmatpush.bf16.msrb.mxu2 %v5567_v48 }
 0x2aa   :  { %3935 = vmatmul.bf16.gmra.mxu2 %v7955_v5  ;;  %4022 = vmatpush.bf16.msrb.mxu3 %v5575_v26  ;;  %v5573_v5 = vld [vmem:[%s8437_s5 + $0x3c0] sm:$0xff] }
 0x2ac   :  { %4004 = vmatpush.bf16.msrb.mxu2 %v5566_v12 }
 0x2ad   :  { %3954 = vmatmul.bf16.gmra.mxu3 %v7957_v38  ;;  %v3768_v38 = vadd.f32 %v3767_v49, %v3749_v33 }
 0x2ae   :  { %4023 = vmatpush.bf16.msrb.mxu3 %v5574_v40 }
 0x2b0   :  { %4005 = vmatpush.bf16.msrb.mxu2 %v5565_v17 }
 0x2b2   :  { %4024 = vmatpush.bf16.msrb.mxu3 %v5573_v5 }
 0x2b3   :  { %v3779_v14 = vpop.f32.mrf.mxu2 }
 0x2b4   :  { %v3780_v24 = vadd.f32 %v3779_v14, %v3761_v18 }
 0x2b5   :  { %v3798_v22 = vpop.f32.mrf.mxu3 }
 0x2b6   :  { %v3799_v37 = vadd.f32 %v3798_v22, %v3780_v24 }
 0x2ba   :  { %4006 = vmatmul.bf16.vlgmr.msrb.gmra.mxu2 %v8104_v63 }
 0x2bb   :  { %v3781_v45 = vpop.f32.mrf.mxu2 }
 0x2bc   :  { %v3782_v21 = vadd.f32 %v3781_v45, %v3763_v11  ;;  %v3893_v44 = vpop.f32.mrf.mxu0 }
 0x2bd   :  { %4025 = vmatmul.bf16.vlgmr.msrb.gmra.mxu3 %v8106_v3  ;;  %v3800_v57 = vpop.f32.mrf.mxu3 }
 0x2be   :  { %v3801_v35 = vadd.f32 %v3800_v57, %v3782_v21 }
 0x2c4   :  { %v3895_v31 = vpop.f32.mrf.mxu0 }
 0x2c5   :  { %v3784_v47 = vpop.f32.mrf.mxu2 }
 0x2c6   :  { %v3785_v8 = vadd.f32 %v3784_v47, %v3766_v9 }
 0x2ca   :  { %4011 = vmatmul.bf16.gmra.mxu2 %v8135_v42  ;;  %v3912_v42 = vpop.f32.mrf.mxu1 }
 0x2cd   :  { %4030 = vmatmul.bf16.gmra.mxu3 %v8137_v29  ;;  %v3803_v59 = vpop.f32.mrf.mxu3  ;;  %v3786_v13 = vpop.f32.mrf.mxu2 }
 0x2ce   :  { %v3804_v63 = vadd.f32 %v3803_v59, %v3785_v8  ;;  %v3787_v3 = vadd.f32 %v3786_v13, %v3768_v38  ;;  %v3898_v0 = vpop.f32.mrf.mxu0 }
 0x2d2   :  { %v3914_v20 = vpop.f32.mrf.mxu1 }
 0x2d5   :  { %v3805_v55 = vpop.f32.mrf.mxu3 }
 0x2d6   :  { %v3806_v32 = vadd.f32 %v3805_v55, %v3787_v3  ;;  %v3900_v60 = vpop.f32.mrf.mxu0 }
 0x2da   :  { %v3917_v18 = vpop.f32.mrf.mxu1 }
 0x2dd   :  { %v3817_v30 = vpop.f32.mrf.mxu2 }
 0x2de   :  { %v3818_v54 = vadd.f32 %v3817_v30, %v3799_v37  ;;  %v3969_v12 = vpop.f32.mrf.mxu0 }
 0x2e0   :  { %v3836_v7 = vpop.f32.mrf.mxu3 }
 0x2e1   :  { %v3837_v28 = vadd.f32 %v3836_v7, %v3818_v54 }
 0x2e2   :  { %v3919_v25 = vpop.f32.mrf.mxu1 }
 0x2e5   :  { %v3819_v52 = vpop.f32.mrf.mxu2 }
 0x2e6   :  { %v3820_v10 = vadd.f32 %v3819_v52, %v3801_v35  ;;  %v3971_v4 = vpop.f32.mrf.mxu0 }
 0x2e8   :  { %v3838_v39 = vpop.f32.mrf.mxu3 }
 0x2e9   :  { %v3839_v62 = vadd.f32 %v3838_v39, %v3820_v10 }
 0x2ea   :  { %v3988_v40 = vpop.f32.mrf.mxu1 }
 0x2ed   :  { %v3822_v6 = vpop.f32.mrf.mxu2 }
 0x2ee   :  { %v3823_v29 = vadd.f32 %v3822_v6, %v3804_v63  ;;  %v3974_v33 = vpop.f32.mrf.mxu0 }
 0x2f0   :  { %v3841_v2 = vpop.f32.mrf.mxu3 }
 0x2f1   :  { %v3842_v41 = vadd.f32 %v3841_v2, %v3823_v29 }
 0x2f2   :  { %v3990_v9 = vpop.f32.mrf.mxu1 }
 0x2f5   :  { %v3824_v16 = vpop.f32.mrf.mxu2 }
 0x2f6   :  { %v3825_v51 = vadd.f32 %v3824_v16, %v3806_v32  ;;  %v3976_v11 = vpop.f32.mrf.mxu0 }
 0x2f8   :  { %v3843_v1 = vpop.f32.mrf.mxu3 }
 0x2f9   :  { %v3844_v61 = vadd.f32 %v3843_v1, %v3825_v51 }
 0x2fa   :  { %v3993_v38 = vpop.f32.mrf.mxu1 }
 0x2fd   :  { %v3855_v34 = vpop.f32.mrf.mxu2 }
 0x2fe   :  { %v3856_v19 = vadd.f32 %v3855_v34, %v3837_v28  ;;  %v4045_v30 = vpop.f32.mrf.mxu0 }
 0x300   :  { %v3874_v15 = vpop.f32.mrf.mxu3 }
 0x301   :  { %v3875_v36 = vadd.f32 %v3874_v15, %v3856_v19 }
 0x302   :  { %v3995_v57 = vpop.f32.mrf.mxu1 }
 0x303   :  { %v3894_v58 = vadd.f32 %v3893_v44, %v3875_v36 }
 0x305   :  { %v3913_v53 = vadd.f32 %v3912_v42, %v3894_v58  ;;  %v3857_v50 = vpop.f32.mrf.mxu2 }
 0x306   :  { %v3858_v14 = vadd.f32 %v3857_v50, %v3839_v62  ;;  %v4047_v51 = vpop.f32.mrf.mxu0 }
 0x308   :  { %v3876_v56 = vpop.f32.mrf.mxu3 }
 0x309   :  { %v3877_v22 = vadd.f32 %v3876_v56, %v3858_v14 }
 0x30a   :  { %v4064_v28 = vpop.f32.mrf.mxu1 }
 0x30b   :  { %v3896_v45 = vadd.f32 %v3895_v31, %v3877_v22 }
 0x30d   :  { %v3860_v48 = vpop.f32.mrf.mxu2  ;;  %v3915_v59 = vadd.f32 %v3914_v20, %v3896_v45 }
 0x30e   :  { %v3861_v21 = vadd.f32 %v3860_v48, %v3842_v41 }
 0x310   :  { %v3879_v26 = vpop.f32.mrf.mxu3 }
 0x311   :  { %v3880_v8 = vadd.f32 %v3879_v26, %v3861_v21 }
 0x312   :  { %v4066_v19 = vpop.f32.mrf.mxu1 }
 0x313   :  { %v3899_v32 = vadd.f32 %v3898_v0, %v3880_v8 }
 0x315   :  { %v3862_v46 = vpop.f32.mrf.mxu2  ;;  %v3918_v39 = vadd.f32 %v3917_v18, %v3899_v32 }
 0x316   :  { %v3863_v55 = vadd.f32 %v3862_v46, %v3844_v61 }
 0x318   :  { %v3881_v23 = vpop.f32.mrf.mxu3 }
 0x319   :  { %v3882_v52 = vadd.f32 %v3881_v23, %v3863_v55 }
 0x31b   :  { %v3901_v2 = vadd.f32 %v3900_v60, %v3882_v52 }
 0x31d   :  { %v3931_v17 = vpop.f32.mrf.mxu2  ;;  %v3920_v1 = vadd.f32 %v3919_v25, %v3901_v2  ;;  %v4050_v25 = vpop.f32.mrf.mxu0 }
 0x31e   :  { %v3932_v37 = vadd.f32 %v3931_v17, %v3913_v53 }
 0x320   :  { %v3950_v5 = vpop.f32.mrf.mxu3 }
 0x321   :  { %v3951_v35 = vadd.f32 %v3950_v5, %v3932_v37 }
 0x323   :  { %v3970_v13 = vadd.f32 %v3969_v12, %v3951_v35 }
 0x325   :  { %v3933_v27 = vpop.f32.mrf.mxu2  ;;  %v3989_v7 = vadd.f32 %v3988_v40, %v3970_v13  ;;  %v4052_v21 = vpop.f32.mrf.mxu0 }
 0x326   :  { %v3934_v3 = vadd.f32 %v3933_v27, %v3915_v59 }
 0x328   :  { %v3952_v49 = vpop.f32.mrf.mxu3 }
 0x329   :  { %v3953_v54 = vadd.f32 %v3952_v49, %v3934_v3 }
 0x32b   :  { %v3972_v42 = vadd.f32 %v3971_v4, %v3953_v54 }
 0x32d   :  { %v3936_v24 = vpop.f32.mrf.mxu2  ;;  %v3991_v16 = vadd.f32 %v3990_v9, %v3972_v42  ;;  %v4069_v9 = vpop.f32.mrf.mxu1 }
 0x32e   :  { %v3937_v6 = vadd.f32 %v3936_v24, %v3918_v39 }
 0x330   :  { %v3955_v43 = vpop.f32.mrf.mxu3 }
 0x331   :  { %v3956_v41 = vadd.f32 %v3955_v43, %v3937_v6 }
 0x333   :  { %v3975_v0 = vadd.f32 %v3974_v33, %v3956_v41 }
 0x335   :  { %v3938_v47 = vpop.f32.mrf.mxu2  ;;  %v3994_v48 = vadd.f32 %v3993_v38, %v3975_v0  ;;  %v4071_v8 = vpop.f32.mrf.mxu1  ;;  %v5627_v0 = vld [vmem:[%s8441_s9 + $0xf0] sm:$0xff] }
 0x336   :  { %v3939_v15 = vadd.f32 %v3938_v47, %v3920_v1  ;;  %v5620_v1 = vld [vmem:[%s8441_s9 + $0xb8] sm:$0xff] }
 0x337   :  { %4498 = vmatpush.bf16.msra.mxu0 %v5620_v1 }
 0x338   :  { %v3957_v63 = vpop.f32.mrf.mxu3 }
 0x339   :  { %v3958_v53 = vadd.f32 %v3957_v63, %v3939_v15  ;;  %v5611_v15 = vld [vmem:[%s8441_s9 + $0x70] sm:$0xff] }
 0x33b   :  { %v3977_v46 = vadd.f32 %v3976_v11, %v3958_v53 }
 0x33d   :  { %v4007_v10 = vpop.f32.mrf.mxu2  ;;  %v3996_v38 = vadd.f32 %v3995_v57, %v3977_v46  ;;  %v5609_v46 = vld [vmem:[%s8441_s9 + $0x60] sm:$0xff] }
 0x33e   :  { %v4008_v62 = vadd.f32 %v4007_v10, %v3989_v7 }
 0x340   :  { %v4026_v44 = vpop.f32.mrf.mxu3 }
 0x341   :  { %v4027_v29 = vadd.f32 %v4026_v44, %v4008_v62 }
 0x343   :  { %v4046_v31 = vadd.f32 %v4045_v30, %v4027_v29 }
 0x345   :  { %v4009_v20 = vpop.f32.mrf.mxu2  ;;  %v4065_v36 = vadd.f32 %v4064_v28, %v4046_v31 }
 0x346   :  { %v4010_v61 = vadd.f32 %v4009_v20, %v3991_v16  ;;  %v5612_v20 = vld [vmem:[%s8441_s9 + $0x78] sm:$0xff] }
 0x347   :  { %v8287_v50 = vmax.f32 %v4065_v36, 0.0  ;;  %4485 = vmatpush.bf16.msra.mxu3 %v5612_v20 }
 0x348   :  { %v4028_v34 = vpop.f32.mrf.mxu3 }
 0x349   :  { %v4029_v58 = vadd.f32 %v4028_v34, %v4010_v61  ;;  %v4089_v23 = vmul.f32 %v8287_v50, %v8287_v50  ;;  %v5628_v61 = vld [vmem:[%s8441_s9 + $0xf8] sm:$0xff]  ;;  %v5603_v34 = vld [vmem:[%s8441_s9 + $0x30] sm:$0xff] }
 0x34a   :  { %4511 = vmatpush.bf16.msra.mxu1 %v5628_v61 }
 0x34b   :  { %v4048_v18 = vadd.f32 %v4047_v51, %v4029_v58  ;;  %v5604_v51 = vld [vmem:[%s8441_s9 + $0x38] sm:$0xff]  ;;  %v5602_v58 = vld [vmem:[%s8441_s9 + $0x28] sm:$0xff]  ;;  %4486 = vmatpush.bf16.msra.mxu3 %v5611_v15 }
 0x34c   :  { %4472 = vmatpush.bf16.msra.mxu2 %v5604_v51 }
 0x34d   :  { %v4067_v56 = vadd.f32 %v4066_v19, %v4048_v18  ;;  %v4012_v60 = vpop.f32.mrf.mxu2  ;;  %v5619_v19 = vld [vmem:[%s8441_s9 + $0xb0] sm:$0xff]  ;;  %v5618_v18 = vld [vmem:[%s8441_s9 + $0xa8] sm:$0xff] }
 0x34e   :  { %v4013_v12 = vadd.f32 %v4012_v60, %v3994_v48  ;;  %4499 = vmatpush.bf16.msra.mxu0 %v5619_v19  ;;  %4512 = vmatpush.bf16.msra.mxu1 %v5627_v0  ;;  %v5626_v48 = vld [vmem:[%s8441_s9 + $0xe8] sm:$0xff] }
 0x34f   :  { %v8289_v26 = vmax.f32 %v4067_v56, 0.0  ;;  %v5610_v56 = vld [vmem:[%s8441_s9 + $0x68] sm:$0xff] }
 0x350   :  { %v4031_v40 = vpop.f32.mrf.mxu3  ;;  %4473 = vmatpush.bf16.msra.mxu2 %v5603_v34  ;;  %4487 = vmatpush.bf16.msra.mxu3 %v5610_v56 }
 0x351   :  { %v4080_v4 = vadd.f32 %v8289_v26, %v8287_v50  ;;  %v4090_v17 = vmul.f32 %v8289_v26, %v8289_v26  ;;  %v4032_v5 = vadd.f32 %v4031_v40, %v4013_v12  ;;  %v5601_v12 = vld [vmem:[%s8441_s9 + $0x20] sm:$0xff] }
 0x352   :  { %4500 = vmatpush.bf16.msra.mxu0 %v5618_v18  ;;  %v5617_v40 = vld [vmem:[%s8441_s9 + $0xa0] sm:$0xff]  ;;  %4513 = vmatpush.bf16.msra.mxu1 %v5626_v48 }
 0x353   :  { %v4093_v27 = vadd.f32 %v4090_v17, %v4089_v23  ;;  %v4051_v49 = vadd.f32 %v4050_v25, %v4032_v5  ;;  %v5625_v23 = vld [vmem:[%s8441_s9 + $0xe0] sm:$0xff]  ;;  %v5600_v17 = vld [vmem:[%s8441_s9 + $0x18] sm:$0xff] }
 0x354   :  { %4474 = vmatpush.bf16.msra.mxu2 %v5602_v58  ;;  %v5616_v5 = vld [vmem:[%s8441_s9 + $0x98] sm:$0xff]  ;;  %4488 = vmatpush.bf16.msra.mxu3 %v5609_v46 }
 0x355   :  { %v4070_v33 = vadd.f32 %v4069_v9, %v4051_v49  ;;  %v4014_v14 = vpop.f32.mrf.mxu2  ;;  %v4078_v9 = vld [vmem:[%s8439_s7] sm:$0x1]  ;;  %v5608_v49 = vld [vmem:[%s8441_s9 + $0x58] sm:$0xff] }
 0x356   :  { %v4015_v22 = vadd.f32 %v4014_v14, %v3996_v38  ;;  %4501 = vmatpush.bf16.msra.mxu0 %v5617_v40  ;;  %4514 = vmatpush.bf16.msra.mxu1 %v5625_v23 }
 0x357   :  { %v8297_v24 = vmax.f32 %v4070_v33, 0.0  ;;  %v5624_v33 = vld [vmem:[%s8441_s9 + $0xd8] sm:$0xff] }
 0x358   :  { %v4033_v43 = vpop.f32.mrf.mxu3  ;;  %4475 = vmatpush.bf16.msra.mxu2 %v5601_v12  ;;  %4489 = vmatpush.bf16.msra.mxu3 %v5608_v49 }
 0x359   :  { %v4081_v37 = vadd.f32 %v4080_v4, %v8297_v24  ;;  %v4091_v11 = vmul.f32 %v8297_v24, %v8297_v24  ;;  %v4034_v45 = vadd.f32 %v4033_v43, %v4015_v22  ;;  %v5599_v22 = vld [vmem:[%s8441_s9 + $0x10] sm:$0xff] }
 0x35a   :  { %4502 = vmatpush.bf16.msra.mxu0 %v5616_v5  ;;  %v5615_v43 = vld [vmem:[%s8441_s9 + $0x90] sm:$0xff]  ;;  %4515 = vmatpush.bf16.msra.mxu1 %v5624_v33 }
 0x35b   :  { %v4094_v35 = vadd.f32 %v4093_v27, %v4091_v11  ;;  %v4053_v47 = vadd.f32 %v4052_v21, %v4034_v45  ;;  %v5607_v11 = vld [vmem:[%s8441_s9 + $0x50] sm:$0xff] }
 0x35c   :  { %4476 = vmatpush.bf16.msra.mxu2 %v5600_v17  ;;  %v5623_v45 = vld [vmem:[%s8441_s9 + $0xd0] sm:$0xff]  ;;  %4490 = vmatpush.bf16.msra.mxu3 %v5607_v11 }
 0x35d   :  { %v4072_v59 = vadd.f32 %v4071_v8, %v4053_v47 }
 0x35e   :  { %4503 = vmatpush.bf16.msra.mxu0 %v5615_v43  ;;  %4516 = vmatpush.bf16.msra.mxu1 %v5623_v45 }
 0x35f   :  { %v8302_v63 = vmax.f32 %v4072_v59, 0.0 }
 0x360   :  { %4477 = vmatpush.bf16.msra.mxu2 %v5599_v22 }
 0x361   :  { %v4082_v57 = vadd.f32 %v4081_v37, %v8302_v63  ;;  %v4092_v13 = vmul.f32 %v8302_v63, %v8302_v63  ;;  %v4079_v37 = vld [vmem:[%s8440_s8] sm:$0x1] }
 0x363   :  { %v4083_v3 = vrot.slane %v4082_v57, 4  ;;  %v4095_v55 = vadd.f32 %v4094_v35, %v4092_v13  ;;  %v5614_v13 = vld [vmem:[%s8441_s9 + $0x88] sm:$0xff] }
 0x364   :  { %4504 = vmatpush.bf16.msra.mxu0 %v5614_v13 }
 0x365   :  { %v4084_v32 = vadd.f32 %v4083_v3, %v4082_v57  ;;  %v4096_v30 = vrot.slane %v4095_v55, 4  ;;  %v5598_v57 = vld [vmem:[%s8441_s9 + $0x8] sm:$0xff] }
 0x366   :  { %v5606_v3 = vld [vmem:[%s8441_s9 + $0x48] sm:$0xff]  ;;  %4478 = vmatpush.bf16.msra.mxu2 %v5598_v57 }
 0x367   :  { %v4085_v54 = vrot.slane %v4084_v32, 2  ;;  %v4097_v7 = vadd.f32 %v4096_v30, %v4095_v55  ;;  %4491 = vmatpush.bf16.msra.mxu3 %v5606_v3 }
 0x369   :  { %v4086_v28 = vadd.f32 %v4085_v54, %v4084_v32  ;;  %v4098_v52 = vrot.slane %v4097_v7, 2  ;;  %v5597_v54 = vld [vmem:[%s8441_s9] sm:$0xff] }
 0x36a   :  { %4479 = vmatpush.bf16.msra.mxu2 %v5597_v54 }
 0x36b   :  { %v4087_v10 = vrot.slane %v4086_v28, 1  ;;  %v4099_v39 = vadd.f32 %v4098_v52, %v4097_v7  ;;  %v5613_v7 = vld [vmem:[%s8441_s9 + $0x80] sm:$0xff] }
 0x36c   :  { %4505 = vmatpush.bf16.msra.mxu0 %v5613_v7 }
 0x36d   :  { %v4088_v62 = vadd.f32 %v4087_v10, %v4086_v28  ;;  %v4100_v44 = vrot.slane %v4099_v39, 1 }
 0x36f   :  { %v4101_v42 = vadd.f32 %v4100_v44, %v4099_v39  ;;  %v8307_v6 = vmul.f32 0.03125, %v4088_v62 }
 0x371   :  { %v4103_v29 = vmul.f32 0.03125, %v4101_v42  ;;  %v4104_v2 = vmul.f32 %v8307_v6, %v8307_v6 }
 0x373   :  { %v4105_v41 = vsub.f32 %v4103_v29, %v4104_v2 }
 0x375   :  { %v4106_v31 = vmax.f32 %v4105_v41, 0.0 }
 0x377   :  { %v4107_v16 = vadd.f32 1e-05, %v4106_v31 }
 0x379   :  { %5637 = vrsqrt.f32 %v4107_v16  ;;  %vm4114_vm10 = vweird.f32 %v4107_v16 }
 0x37f   :  { %v5638_v36 = vpop.eup %5637 }
 0x380   :  { %v4109_v53 = vmul.f32 %v5638_v36, %v4107_v16  ;;  %vm4115_vm7 = vweird.f32 %v5638_v36 }
 0x381   :  { %vm4116_vm3 = vmor %vm4114_vm10, %vm4115_vm7 }
 0x382   :  { %v4110_v60 = vmul.f32 %v5638_v36, %v4109_v53 }
 0x384   :  { %v4111_v25 = vmul.f32 0.5, %v4110_v60 }
 0x386   :  { %v4112_v4 = vsub.f32 1.5, %v4111_v25 }
 0x388   :  { %v4113_v27 = vmul.f32 %v5638_v36, %v4112_v4 }
 0x38a   :  { %v4117_v38 = vsel %vm4116_vm3, %v5638_v36, %v4113_v27 }
 0x38b   :  { %v4118_v14 = vmul.f32 %v4117_v38, %v4078_v9 }
 0x38d   :  { %v4119_v21 = vmul.f32 %v4118_v14, %v8307_v6  ;;  %v4122_v35 = vperm.slane %v4118_v14, 0 }
 0x38f   :  { %v4120_v47 = vsub.f32 %v4079_v37, %v4119_v21  ;;  %v4126_v8 = vmul.f32 %v4122_v35, %v8297_v24  ;;  %v4127_v59 = vmul.f32 %v4122_v35, %v8302_v63  ;;  %v5622_v24 = vld [vmem:[%s8441_s9 + $0xc8] sm:$0xff]  ;;  %v4124_v63 = vmul.f32 %v4122_v35, %v8287_v50  ;;  %v5605_v50 = vld [vmem:[%s8441_s9 + $0x40] sm:$0xff] }
 0x390   :  { %v4125_v55 = vmul.f32 %v4122_v35, %v8289_v26  ;;  %4517 = vmatpush.bf16.msra.mxu1 %v5622_v24  ;;  %v5621_v26 = vld [vmem:[%s8441_s9 + $0xc0] sm:$0xff]  ;;  %4492 = vmatpush.bf16.msra.mxu3 %v5605_v50 }
 0x391   :  { %v4129_v32 = vperm.slane %v4120_v47, 0  ;;  %v5632_v47 = vld [vmem:[%s8442_s10] ss:$0 sm:$0xff] }
 0x393   :  { %v4134_v30 = vadd.f32 %v4129_v32, %v4127_v59  ;;  %v4131_v28 = vadd.f32 %v4129_v32, %v4124_v63  ;;  %v4133_v52 = vadd.f32 %v4129_v32, %v4126_v8  ;;  %v4132_v10 = vadd.f32 %v4129_v32, %v4125_v55 }
 0x394   :  { %4518 = vmatpush.bf16.msra.mxu1 %v5621_v26 }
 0x395   :  { %v4142_v39 = vrot.slane %v4134_v30, 4  ;;  %v4139_v62 = vrot.slane %v4131_v28, 4  ;;  %v4141_v44 = vrot.slane %v4133_v52, 4  ;;  %v4140_v42 = vrot.slane %v4132_v10, 4 }
 0x397   :  { %v4150_v6 = vmax.f32 %v4134_v30, %v4142_v39  ;;  %v4147_v29 = vmax.f32 %v4131_v28, %v4139_v62  ;;  %v4149_v2 = vmax.f32 %v4133_v52, %v4141_v44  ;;  %v4148_v41 = vmax.f32 %v4132_v10, %v4140_v42 }
 0x399   :  { %v4158_v31 = vrot.slane %v4150_v6, 2  ;;  %v5299_v16 = vrot.slane %v4150_v6, 9  ;;  %v5293_v51 = vrot.slane %v4147_v29, 9  ;;  %v5297_v1 = vrot.slane %v4149_v2, 9 }
 0x39a   :  { %v5295_v20 = vrot.slane %v4148_v41, 9  ;;  %v4155_v61 = vrot.slane %v4147_v29, 2  ;;  %v4157_v34 = vrot.slane %v4149_v2, 2  ;;  %v4156_v19 = vrot.slane %v4148_v41, 2 }
 0x39b   :  { %v4187_v15 = vmax.f32 %v4147_v29, %v5293_v51  ;;  %v4191_v0 = vmax.f32 %v4149_v2, %v5297_v1  ;;  %v4193_v36 = vmax.f32 %v4150_v6, %v5299_v16  ;;  %v5300_v58 = vrot.slane %v4158_v31, 9 }
 0x39c   :  { %v4189_v18 = vmax.f32 %v4148_v41, %v5295_v20  ;;  %v5294_v53 = vrot.slane %v4155_v61, 9  ;;  %v5298_v56 = vrot.slane %v4157_v34, 9  ;;  %v5296_v48 = vrot.slane %v4156_v19, 9 }
 0x39d   :  { %v4195_v60 = vsel %vm489_vm5, %v4187_v15, 0.0  ;;  %v4196_v12 = vrot.slane %v4191_v0, 7  ;;  %v4203_v40 = vrot.slane %v4193_v36, 7  ;;  %v4194_v25 = vmax.f32 %v4158_v31, %v5300_v58 }
 0x39e   :  { %v4202_v46 = vsel %vm489_vm5, %v4189_v18, 0.0  ;;  %v4188_v23 = vmax.f32 %v4155_v61, %v5294_v53  ;;  %v4192_v4 = vmax.f32 %v4157_v34, %v5298_v56  ;;  %v4190_v17 = vmax.f32 %v4156_v19, %v5296_v48 }
 0x39f   :  { %v4198_v5 = vsel %vm4197_vm4, %v4196_v12, %v4195_v60  ;;  %v4204_v9 = vsel %vm4197_vm4, %v4203_v40, %v4202_v46  ;;  %v4206_v27 = vrot.slane %v4194_v25, 7 }
 0x3a0   :  { %v4208_v49 = vpack.c.bf16 %v4198_v5, %v4198_v5  ;;  %v4210_v33 = vpack.c.bf16 %v4204_v9, %v4204_v9  ;;  %v4199_v38 = vsel %vm489_vm5, %v4188_v23, 0.0  ;;  %v4200_v14 = vrot.slane %v4192_v4, 7 }
 0x3a1   :  { %v4205_v22 = vsel %vm489_vm5, %v4190_v17, 0.0 }
 0x3a2   :  { %4480 = vmatmul.bf16.vlgmr.msra.gmra.mxu2 %v4208_v49  ;;  %4506 = vmatmul.bf16.vlgmr.msra.gmra.mxu0 %v4210_v33  ;;  %v4201_v43 = vsel %vm4197_vm4, %v4200_v14, %v4199_v38  ;;  %v4207_v37 = vsel %vm4197_vm4, %v4206_v27, %v4205_v22 }
 0x3a3   :  { %v4209_v11 = vpack.c.bf16 %v4201_v43, %v4201_v43  ;;  %v4211_v45 = vpack.c.bf16 %v4207_v37, %v4207_v37 }
 0x3a5   :  { %4493 = vmatmul.bf16.vlgmr.msra.gmra.mxu3 %v4209_v11  ;;  %4519 = vmatmul.bf16.vlgmr.msra.gmra.mxu1 %v4211_v45 }
 0x41f   :  { %v4507_v21 = vpop.f32.mrf.mxu0 }
 0x422   :  { %v4520_v35 = vpop.f32.mrf.mxu1 }
 0x425   :  { %v4481_v8 = vpop.f32.mrf.mxu2 }
 0x426   :  { %v4482_v59 = vadd.f32 %v5632_v47, %v4481_v8 }
 0x427   :  { %v4509_v57 = vpop.f32.mrf.mxu0 }
 0x428   :  { %v4494_v13 = vpop.f32.mrf.mxu3 }
 0x429   :  { %v4495_v3 = vadd.f32 %v4494_v13, %v4482_v59 }
 0x42a   :  { %v4522_v24 = vpop.f32.mrf.mxu1 }
 0x42b   :  { %v4508_v63 = vadd.f32 %v4507_v21, %v4495_v3 }
 0x42d   :  { %v4483_v55 = vpop.f32.mrf.mxu2  ;;  %v4521_v32 = vadd.f32 %v4520_v35, %v4508_v63 }
 0x42f   :  { %4524 = vst [vmem:[#allocation3] sm:$0x3] %v4521_v32 }
 0x430   :  { %v4496_v30 = vpop.f32.mrf.mxu3  ;;  %4535 = dma.vmem_to_hbm [thread:$0]  %s4531_s17, 32, %s4533_s19, [#allocation4]  }
 0x431   :  { %5663 = dma.done.wait [#allocation4], 32  }
 0x432   :  { %5664 = vsyncadd [#allocation4], 4294967264 }
 0x433   :  { %4540 = vsyncpa [#allocation4], 1 }

</bundles_post_ra>
